<compile_context>
chip_gen: v7x
topology: tpu7x:2x2x1
jax: 0.10.0
libtpu: 0.0.40
codegen_flags: <defaults>
</compile_context>

<pallas_src>
import functools

import jax
import jax.numpy as jnp
from jax import lax
from jax.experimental import pallas as pl
from jax.experimental.pallas import tpu as pltpu


def _round_up(n, m):
    return ((n + m - 1) // m) * m


_MAX_TC = 64  # time-chunk ceiling; amortizes the ~0.35us fixed per-grid-step cost


def _choose_time_chunk(T, max_tc=_MAX_TC):
    """Chunk size: multiple of 8, <= max_tc; T gets padded up to a multiple of it."""
    Tp8 = _round_up(T, 8)
    if Tp8 <= max_tc:
        return Tp8
    for tc in range(max_tc, 7, -8):  # largest chunk with zero padding waste
        if Tp8 % tc == 0:
            return tc
    return max_tc


# ----------------------------------------------------------------------------
# Kernel building blocks
# ----------------------------------------------------------------------------
def _lstm_cell_step(gx_t, h_prev, c_prev, whh_gates, Hp):
    """One LSTM cell update. gx_t already contains x@W_ih^T + (b_ih+b_hh).

    W_hh is pre-split per gate so the EUP sigmoid/tanh of gate k can start
    while the MXU computes gate k+1 (the recurrence is latency-bound at M=Bp).
    Hp is a multiple of 128 -> all slices are vreg-aligned lane slices.
    """
    whh_i, whh_f, whh_g, whh_o = whh_gates
    i_g = jax.nn.sigmoid(
        gx_t[:, 0 * Hp:1 * Hp]
        + jnp.dot(h_prev, whh_i, preferred_element_type=jnp.float32))
    f_g = jax.nn.sigmoid(
        gx_t[:, 1 * Hp:2 * Hp]
        + jnp.dot(h_prev, whh_f, preferred_element_type=jnp.float32))
    g_g = jnp.tanh(
        gx_t[:, 2 * Hp:3 * Hp]
        + jnp.dot(h_prev, whh_g, preferred_element_type=jnp.float32))
    o_g = jax.nn.sigmoid(
        gx_t[:, 3 * Hp:4 * Hp]
        + jnp.dot(h_prev, whh_o, preferred_element_type=jnp.float32))
    c_new = f_g * c_prev + i_g * g_g
    h_new = o_g * jnp.tanh(c_new)
    return h_new, c_new


def _chunk_input_proj(x_ref, wih_ref, bias_ref, gx_scr):
    """Fused input projection for a whole time chunk (one big MXU matmul,
    off the serial path, no gx round trip through HBM)."""
    Tc, Bp, Din = x_ref.shape
    G4 = gx_scr.shape[-1]
    x2d = x_ref[...].reshape(Tc * Bp, Din)          # leading-dim merge, no relayout
    gx = (jnp.dot(x2d, wih_ref[...], preferred_element_type=jnp.float32)
          + bias_ref[...])
    gx_scr[...] = gx.reshape(Tc, Bp, G4)


def _chunk_recurrence(gx_scr, whh_ref, h_scr, c_scr, h_out_ref):
    """Serial LSTM recurrence over one time chunk.

    gx_scr    : (Tc, Bp, 4Hp) precomputed input projection (+bias), time-major
    whh_ref   : (Hp, 4Hp)     W_hh^T (gate-blocked, zero-padded)
    h_scr/c_scr : (Bp, Hp)    state carried across chunks (grid steps)
    h_out_ref : (Tc, Bp, Hp)  receives h_t for every step (dense slab stores)
    """
    Tc = gx_scr.shape[0]
    Hp = h_scr.shape[-1]

    @pl.when(pl.program_id(0) == 0)
    def _():
        h_scr[...] = jnp.zeros_like(h_scr)
        c_scr[...] = jnp.zeros_like(c_scr)

    # Load + split W_hh once per chunk (lane-aligned static column slices).
    whh_gates = tuple(whh_ref[:, g * Hp:(g + 1) * Hp] for g in range(4))

    def step(tt, carry):
        h, c = carry
        h, c = _lstm_cell_step(gx_scr[tt], h, c, whh_gates, Hp)
        h_out_ref[tt] = h.astype(h_out_ref.dtype)
        return (h, c)

    init = (h_scr[...], c_scr[...])
    if Tc <= 16:
        # Small chunk: full static unroll, static ref indices.
        h, c = init
        for tt in range(Tc):
            h, c = step(tt, (h, c))
    else:
        # Large chunk: bounded code size, partial unroll keeps LLO visibility.
        h, c = lax.fori_loop(0, Tc, step, init, unroll=8)

    h_scr[...] = h
    c_scr[...] = c


# ----------------------------------------------------------------------------
# Pallas kernels
# ----------------------------------------------------------------------------
def _lstm_chunk_kernel(x_ref, wih_ref, bias_ref, whh_ref, out_ref,
                       h_scr, c_scr, gx_scr):
    """Intermediate layer: fused input projection + recurrence for one chunk."""
    _chunk_input_proj(x_ref, wih_ref, bias_ref, gx_scr)
    _chunk_recurrence(gx_scr, whh_ref, h_scr, c_scr, out_ref)


def _lstm_chunk_fc_kernel(x_ref, wih_ref, bias_ref, whh_ref, wfc_ref, bfc_ref,
                          out_ref, h_scr, c_scr, gx_scr, hbuf_scr):
    """Last layer: fused input projection + recurrence; ReLU + id_fc done as a
    single chunk-level matmul in the epilogue (off the serial chain)."""
    _chunk_input_proj(x_ref, wih_ref, bias_ref, gx_scr)
    _chunk_recurrence(gx_scr, whh_ref, h_scr, c_scr, hbuf_scr)

    Tc, Bp, Hp = hbuf_scr.shape
    IDp = out_ref.shape[-1]
    h_relu = jnp.maximum(hbuf_scr[...].reshape(Tc * Bp, Hp), 0.0)
    y = (jnp.dot(h_relu, wfc_ref[...], preferred_element_type=jnp.float32)
         + bfc_ref[...])
    out_ref[...] = y.reshape(Tc, Bp, IDp).astype(out_ref.dtype)


# ----------------------------------------------------------------------------
# pallas_call wrappers (time-major layer in/out: (Tp, Bp, .))
# ----------------------------------------------------------------------------
def _vmem_limit_bytes(block_bytes, scratch_bytes):
    # Pipeline double-buffers the blocks; add 2x headroom for compiler
    # internals; clamp well under the smallest physical VMEM (64 MiB on v7x).
    need = 2 * block_bytes + scratch_bytes
    return int(min(max(2 * need, 4 << 20), 56 << 20))


def lstm_layer(x_tm, wih_t, bias, whh_t, Tc):
    """x_tm: (Tp, Bp, Din) time-major -> h_seq: (Tp, Bp, Hp) time-major."""
    Tp, Bp, Din = x_tm.shape
    G4 = wih_t.shape[1]
    Hp = whh_t.shape[0]
    f32 = 4
    block_bytes = (Tc * Bp * Din + Din * G4 + G4 + Hp * G4 + Tc * Bp * Hp) * f32
    scratch_bytes = (2 * Bp * Hp + Tc * Bp * G4) * f32
    return pl.pallas_call(
        _lstm_chunk_kernel,
        out_shape=jax.ShapeDtypeStruct((Tp, Bp, Hp), jnp.float32),
        grid_spec=pltpu.PrefetchScalarGridSpec(
            num_scalar_prefetch=0,
            grid=(Tp // Tc,),
            in_specs=[
                pl.BlockSpec((Tc, Bp, Din), lambda t: (t, 0, 0)),   # layer input chunk
                pl.BlockSpec((Din, G4), lambda t: (0, 0)),          # W_ih^T
                pl.BlockSpec((1, G4), lambda t: (0, 0)),            # b_ih + b_hh
                pl.BlockSpec((Hp, G4), lambda t: (0, 0)),           # W_hh^T
            ],
            out_specs=pl.BlockSpec((Tc, Bp, Hp), lambda t: (t, 0, 0)),
            scratch_shapes=[
                pltpu.VMEM((Bp, Hp), jnp.float32),        # h carry
                pltpu.VMEM((Bp, Hp), jnp.float32),        # c carry
                pltpu.VMEM((Tc, Bp, G4), jnp.float32),    # gates_x for the chunk
            ],
        ),
        compiler_params=pltpu.CompilerParams(
            dimension_semantics=("arbitrary",),   # time recurrence is serial
            vmem_limit_bytes=_vmem_limit_bytes(block_bytes, scratch_bytes),
        ),
    )(x_tm, wih_t, bias, whh_t)


def lstm_layer_fc(x_tm, wih_t, bias, whh_t, wfc_t, bfc, Tc):
    """Last layer: (Tp, Bp, Din) -> fc(relu(h)) as (Tp, Bp, IDp), time-major."""
    Tp, Bp, Din = x_tm.shape
    G4 = wih_t.shape[1]
    Hp = whh_t.shape[0]
    IDp = wfc_t.shape[1]
    f32 = 4
    block_bytes = (Tc * Bp * Din + Din * G4 + G4 + Hp * G4
                   + Hp * IDp + IDp + Tc * Bp * IDp) * f32
    scratch_bytes = (2 * Bp * Hp + Tc * Bp * G4 + Tc * Bp * Hp) * f32
    return pl.pallas_call(
        _lstm_chunk_fc_kernel,
        out_shape=jax.ShapeDtypeStruct((Tp, Bp, IDp), jnp.float32),
        grid_spec=pltpu.PrefetchScalarGridSpec(
            num_scalar_prefetch=0,
            grid=(Tp // Tc,),
            in_specs=[
                pl.BlockSpec((Tc, Bp, Din), lambda t: (t, 0, 0)),
                pl.BlockSpec((Din, G4), lambda t: (0, 0)),
                pl.BlockSpec((1, G4), lambda t: (0, 0)),
                pl.BlockSpec((Hp, G4), lambda t: (0, 0)),
                pl.BlockSpec((Hp, IDp), lambda t: (0, 0)),           # W_fc^T
                pl.BlockSpec((1, IDp), lambda t: (0, 0)),            # b_fc
            ],
            out_specs=pl.BlockSpec((Tc, Bp, IDp), lambda t: (t, 0, 0)),
            scratch_shapes=[
                pltpu.VMEM((Bp, Hp), jnp.float32),        # h carry
                pltpu.VMEM((Bp, Hp), jnp.float32),        # c carry
                pltpu.VMEM((Tc, Bp, G4), jnp.float32),    # gates_x for the chunk
                pltpu.VMEM((Tc, Bp, Hp), jnp.float32),    # chunk h for fused FC
            ],
        ),
        compiler_params=pltpu.CompilerParams(
            dimension_semantics=("arbitrary",),
            vmem_limit_bytes=_vmem_limit_bytes(block_bytes, scratch_bytes),
        ),
    )(x_tm, wih_t, bias, whh_t, wfc_t, bfc)


# ----------------------------------------------------------------------------
# Forward pass (equivalent of LSTM.forward)
# ----------------------------------------------------------------------------
@functools.partial(jax.jit, static_argnames=("layer_num", "id_dim"))
def lstm_forward(x, kparams, layer_num, id_dim):
    """x: (B, T, in_dim) batch-first -> (B, T, id_dim) batch-first."""
    B, T, Din = x.shape
    Bp = _round_up(B, 8)
    Tc = _choose_time_chunk(T)
    Tp = _round_up(T, Tc)
    Din_p = kparams["lstm"][0][0].shape[0]   # padded layer-0 input features

    # One tiny transpose/pad at the boundary; everything inside is time-major.
    h = jnp.transpose(x, (1, 0, 2))                                  # (T, B, Din)
    h = jnp.pad(h, ((0, Tp - T), (0, Bp - B), (0, Din_p - Din)))     # (Tp, Bp, Din_p)

    out = None
    for l in range(layer_num):
        wih_t, whh_t, bias = kparams["lstm"][l]
        if l < layer_num - 1:
            h = lstm_layer(h, wih_t, bias, whh_t, Tc)                # (Tp, Bp, Hp)
        else:
            wfc_t, bfc = kparams["fc"]
            out = lstm_layer_fc(h, wih_t, bias, whh_t, wfc_t, bfc, Tc)  # (Tp, Bp, IDp)

    out = jnp.transpose(out, (1, 0, 2))                              # (Bp, Tp, IDp)
    return out[:B, :T, :id_dim]


# ----------------------------------------------------------------------------
# Parameters: raw PyTorch-layout init + padded/transposed kernel layout
# ----------------------------------------------------------------------------
def init_raw_params(key, in_dim, hidden_dim, id_dim, layer_num):
    """PyTorch-style uniform(-1/sqrt(H), 1/sqrt(H)), PyTorch shapes."""
    bound = 1.0 / (hidden_dim ** 0.5)
    raw = {"lstm": [], "fc": None}
    for l in range(layer_num):
        d_in = in_dim if l == 0 else hidden_dim
        key, k1, k2, k3, k4 = jax.random.split(key, 5)
        w_ih = jax.random.uniform(k1, (4 * hidden_dim, d_in), jnp.float32, -bound, bound)
        w_hh = jax.random.uniform(k2, (4 * hidden_dim, hidden_dim), jnp.float32, -bound, bound)
        b_ih = jax.random.uniform(k3, (4 * hidden_dim,), jnp.float32, -bound, bound)
        b_hh = jax.random.uniform(k4, (4 * hidden_dim,), jnp.float32, -bound, bound)
        raw["lstm"].append((w_ih, w_hh, b_ih, b_hh))
    key, k1, k2 = jax.random.split(key, 3)
    w_fc = jax.random.uniform(k1, (id_dim, hidden_dim), jnp.float32, -bound, bound)
    b_fc = jax.random.uniform(k2, (id_dim,), jnp.float32, -bound, bound)
    raw["fc"] = (w_fc, b_fc)
    return raw


def prepare_params(raw, in_dim, hidden_dim, id_dim):
    """Pad H / id_dim / layer-0 in_dim to lane multiples, transpose, fuse biases."""
    # TODO(synk): add a bf16-weight variant (f32 accumulate, f32 h/c) for
    #             large H on v6e/v7x to halve weight VMEM/HBM traffic.
    H = hidden_dim
    Hp = _round_up(H, 128)
    IDp = _round_up(id_dim, 128)
    Din0p = _round_up(in_dim, 128)   # lane-dense layer-0 input features

    def pad_gates_T(w, d_in, d_in_p):
        # w: (4H, d_in) PyTorch layout; pad each gate block H->Hp, input d_in->d_in_p,
        # return W^T laid out as (d_in_p, 4*Hp) with columns [i|f|g|o] each Hp wide.
        w4 = w.reshape(4, H, d_in)
        w4 = jnp.pad(w4, ((0, 0), (0, Hp - H), (0, d_in_p - d_in)))
        return jnp.transpose(w4, (2, 0, 1)).reshape(d_in_p, 4 * Hp)

    def pad_bias(b):
        b4 = b.reshape(4, H)
        b4 = jnp.pad(b4, ((0, 0), (0, Hp - H)))
        return b4.reshape(1, 4 * Hp)

    kp = {"lstm": [], "fc": None}
    for l, (w_ih, w_hh, b_ih, b_hh) in enumerate(raw["lstm"]):
        d_in = in_dim if l == 0 else H
        d_in_p = Din0p if l == 0 else Hp
        kp["lstm"].append(
            (pad_gates_T(w_ih, d_in, d_in_p),
             pad_gates_T(w_hh, H, Hp),
             pad_bias(b_ih + b_hh))
        )
    w_fc, b_fc = raw["fc"]  # (id_dim, H), (id_dim,)
    wfc_t = jnp.pad(w_fc, ((0, IDp - id_dim), (0, Hp - H))).T  # (Hp, IDp)
    bfc = jnp.pad(b_fc, (0, IDp - id_dim)).reshape(1, IDp)
    kp["fc"] = (wfc_t, bfc)
    return kp


# ----------------------------------------------------------------------------
# Pure-JAX reference on the RAW (unpadded) params
# ----------------------------------------------------------------------------
def lstm_forward_ref(x, raw, layer_num):
    h_seq = jnp.transpose(x, (1, 0, 2))  # (T, B, D)
    for l in range(layer_num):
        w_ih, w_hh, b_ih, b_hh = raw["lstm"][l]
        H = w_hh.shape[1]
        B = h_seq.shape[1]
        wih_t, whh_t = w_ih.T, w_hh.T
        bias = (b_ih + b_hh)[None, :]

        def step(carry, x_t, wih_t=wih_t, whh_t=whh_t, bias=bias, H=H):
            h_prev, c_prev = carry
            gates = x_t @ wih_t + h_prev @ whh_t + bias
            i = jax.nn.sigmoid(gates[:, :H])
            f = jax.nn.sigmoid(gates[:, H:2 * H])
            g = jnp.tanh(gates[:, 2 * H:3 * H])
            o = jax.nn.sigmoid(gates[:, 3 * H:])
            c = f * c_prev + i * g
            h = o * jnp.tanh(c)
            return (h, c), h

        init = (jnp.zeros((B, H), jnp.float32), jnp.zeros((B, H), jnp.float32))
        _, h_seq = jax.lax.scan(step, init, h_seq)
    w_fc, b_fc = raw["fc"]
    out = jnp.maximum(h_seq, 0.0) @ w_fc.T + b_fc
    return jnp.transpose(out, (1, 0, 2))


# ----------------------------------------------------------------------------
if __name__ == "__main__":
    # Module feeds 2-dim action vectors (build_input_vector) -> in_dim=2.
    B, T = 2, 8
    in_dim, hidden_dim, id_dim, layer_num = 2, 32, 8, 2

    key = jax.random.PRNGKey(0)
    key, kx = jax.random.split(key)
    x = jax.random.normal(kx, (B, T, in_dim), jnp.float32)

    raw = init_raw_params(key, in_dim, hidden_dim, id_dim, layer_num)
    kparams = prepare_params(raw, in_dim, hidden_dim, id_dim)

    out = lstm_forward(x, kparams, layer_num, id_dim)
    out = jax.block_until_ready(out)

    ref = jax.block_until_ready(lstm_forward_ref(x, raw, layer_num))
    assert out.shape == (B, T, id_dim), out.shape
    assert jnp.allclose(out, ref, atol=1e-4, rtol=1e-4), "mismatch vs reference"

    print("KERNEL_OK")
</pallas_src>

<mosaic_0001>
module attributes {stable_mosaic.version = 11 : i64} {
  func.func @_lstm_chunk_fc_kernel(%arg0: i32, %arg1: memref<8x8x128xf32, #tpu.memory_space<vmem>>, %arg2: memref<128x512xf32, #tpu.memory_space<vmem>>, %arg3: memref<1x512xf32, #tpu.memory_space<vmem>>, %arg4: memref<128x512xf32, #tpu.memory_space<vmem>>, %arg5: memref<128x128xf32, #tpu.memory_space<vmem>>, %arg6: memref<1x128xf32, #tpu.memory_space<vmem>>, %arg7: memref<8x8x128xf32, #tpu.memory_space<vmem>>, %arg8: memref<8x128xf32, #tpu.memory_space<vmem>>, %arg9: memref<8x128xf32, #tpu.memory_space<vmem>>, %arg10: memref<8x8x512xf32, #tpu.memory_space<vmem>>, %arg11: memref<8x8x128xf32, #tpu.memory_space<vmem>>) attributes {dimension_semantics = [#tpu.dimension_semantics<arbitrary>], iteration_bounds = array<i64: 1>, scalar_prefetch = 0 : i64, scratch_operands = 4 : i64, tpu.core_type = #tpu.core_type<tc>, window_params = [{transform_indices = @transform_0, window_bounds = array<i64: 8, 8, 128>}, {pipeline_mode = #tpu.pipeline_mode<synchronous>, transform_indices = @transform_1, window_bounds = array<i64: 128, 512>}, {pipeline_mode = #tpu.pipeline_mode<synchronous>, transform_indices = @transform_2, window_bounds = array<i64: 1, 512>}, {pipeline_mode = #tpu.pipeline_mode<synchronous>, transform_indices = @transform_3, window_bounds = array<i64: 128, 512>}, {pipeline_mode = #tpu.pipeline_mode<synchronous>, transform_indices = @transform_4, window_bounds = array<i64: 128, 128>}, {pipeline_mode = #tpu.pipeline_mode<synchronous>, transform_indices = @transform_5, window_bounds = array<i64: 1, 128>}, {transform_indices = @transform_6, window_bounds = array<i64: 8, 8, 128>}]} {
    %c0 = arith.constant 0 : index
    %c0_0 = arith.constant 0 : index
    %c0_1 = arith.constant 0 : index
    %0 = vector.load %arg1[%c0, %c0_0, %c0_1] : memref<8x8x128xf32, #tpu.memory_space<vmem>>, vector<8x8x128xf32>
    %1 = vector.shape_cast %0 : vector<8x8x128xf32> to vector<64x128xf32>
    %c0_2 = arith.constant 0 : index
    %c0_3 = arith.constant 0 : index
    %2 = vector.load %arg2[%c0_2, %c0_3] : memref<128x512xf32, #tpu.memory_space<vmem>>, vector<128x512xf32>
    %cst = arith.constant dense<0.000000e+00> : vector<64x512xf32>
    %3 = tpu.matmul %1, %2, %cst {dimension_numbers = #tpu.dot_dimension_numbers<[1], [0], [0], [1], [0, 0, 1, 1], [], []>} : vector<64x128xf32>, vector<128x512xf32>, vector<64x512xf32> -> vector<64x512xf32>
    %c0_4 = arith.constant 0 : index
    %c0_5 = arith.constant 0 : index
    %4 = vector.load %arg3[%c0_4, %c0_5] : memref<1x512xf32, #tpu.memory_space<vmem>>, vector<1x512xf32>
    %5 = vector.broadcast %4 : vector<1x512xf32> to vector<64x512xf32>
    %6 = arith.addf %3, %5 : vector<64x512xf32>
    %7 = vector.shape_cast %6 : vector<64x512xf32> to vector<8x8x512xf32>
    %c0_6 = arith.constant 0 : index
    %c0_7 = arith.constant 0 : index
    %c0_8 = arith.constant 0 : index
    %8 = vector.load %arg10[%c0_6, %c0_7, %c0_8] : memref<8x8x512xf32, #tpu.memory_space<vmem>>, vector<8x8x512xf32>
    tpu.vector_store %arg10[%c0_6, %c0_7, %c0_8], %7 {strides = array<i32>} : memref<8x8x512xf32, #tpu.memory_space<vmem>>, vector<8x8x512xf32>,
    %c0_i32 = arith.constant 0 : i32
    %9 = arith.cmpi eq, %arg0, %c0_i32 : i32
    %10 = arith.extui %9 : i1 to i32
    %c0_i32_9 = arith.constant 0 : i32
    %11 = arith.cmpi ne, %10, %c0_i32_9 : i32
    scf.if %11 {
      %cst_132 = arith.constant 0.000000e+00 : f32
      %335 = vector.broadcast %cst_132 : f32 to vector<8x128xf32>
      %c0_133 = arith.constant 0 : index
      %c0_134 = arith.constant 0 : index
      %336 = vector.load %arg8[%c0_133, %c0_134] : memref<8x128xf32, #tpu.memory_space<vmem>>, vector<8x128xf32>
      tpu.vector_store %arg8[%c0_133, %c0_134], %335 {strides = array<i32>} : memref<8x128xf32, #tpu.memory_space<vmem>>, vector<8x128xf32>,
      %cst_135 = arith.constant 0.000000e+00 : f32
      %337 = vector.broadcast %cst_135 : f32 to vector<8x128xf32>
      %c0_136 = arith.constant 0 : index
      %c0_137 = arith.constant 0 : index
      %338 = vector.load %arg9[%c0_136, %c0_137] : memref<8x128xf32, #tpu.memory_space<vmem>>, vector<8x128xf32>
      tpu.vector_store %arg9[%c0_136, %c0_137], %337 {strides = array<i32>} : memref<8x128xf32, #tpu.memory_space<vmem>>, vector<8x128xf32>,
    } else {
    }
    %c0_10 = arith.constant 0 : index
    %c0_11 = arith.constant 0 : index
    %12 = vector.load %arg4[%c0_10, %c0_11] : memref<128x512xf32, #tpu.memory_space<vmem>>, vector<128x128xf32>
    %c0_12 = arith.constant 0 : index
    %c128 = arith.constant 128 : index
    %13 = vector.load %arg4[%c0_12, %c128] : memref<128x512xf32, #tpu.memory_space<vmem>>, vector<128x128xf32>
    %c0_13 = arith.constant 0 : index
    %c256 = arith.constant 256 : index
    %14 = vector.load %arg4[%c0_13, %c256] : memref<128x512xf32, #tpu.memory_space<vmem>>, vector<128x128xf32>
    %c0_14 = arith.constant 0 : index
    %c384 = arith.constant 384 : index
    %15 = vector.load %arg4[%c0_14, %c384] : memref<128x512xf32, #tpu.memory_space<vmem>>, vector<128x128xf32>
    %c0_15 = arith.constant 0 : index
    %c0_16 = arith.constant 0 : index
    %16 = vector.load %arg8[%c0_15, %c0_16] : memref<8x128xf32, #tpu.memory_space<vmem>>, vector<8x128xf32>
    %c0_17 = arith.constant 0 : index
    %c0_18 = arith.constant 0 : index
    %17 = vector.load %arg9[%c0_17, %c0_18] : memref<8x128xf32, #tpu.memory_space<vmem>>, vector<8x128xf32>
    %c0_19 = arith.constant 0 : index
    %c0_20 = arith.constant 0 : index
    %c0_21 = arith.constant 0 : index
    %18 = vector.load %arg10[%c0_19, %c0_20, %c0_21] : memref<8x8x512xf32, #tpu.memory_space<vmem>>, vector<1x8x512xf32>
    %19 = vector.shape_cast %18 : vector<1x8x512xf32> to vector<8x512xf32>
    %20 = vector.extract_strided_slice %19 {offsets = [0, 0], sizes = [8, 128], strides = [1, 1]} : vector<8x512xf32> to vector<8x128xf32>
    %cst_22 = arith.constant dense<0.000000e+00> : vector<8x128xf32>
    %21 = tpu.matmul %16, %12, %cst_22 {dimension_numbers = #tpu.dot_dimension_numbers<[1], [0], [0], [1], [0, 0, 1, 1], [], []>} : vector<8x128xf32>, vector<128x128xf32>, vector<8x128xf32> -> vector<8x128xf32>
    %22 = arith.addf %20, %21 : vector<8x128xf32>
    %23 = arith.negf %22 : vector<8x128xf32>
    %24 = math.exp %23 : vector<8x128xf32>
    %cst_23 = arith.constant 1.000000e+00 : f32
    %25 = vector.broadcast %cst_23 : f32 to vector<8x128xf32>
    %26 = arith.addf %25, %24 : vector<8x128xf32>
    %27 = arith.divf %25, %26 : vector<8x128xf32>
    %28 = vector.extract_strided_slice %19 {offsets = [0, 128], sizes = [8, 128], strides = [1, 1]} : vector<8x512xf32> to vector<8x128xf32>
    %cst_24 = arith.constant dense<0.000000e+00> : vector<8x128xf32>
    %29 = tpu.matmul %16, %13, %cst_24 {dimension_numbers = #tpu.dot_dimension_numbers<[1], [0], [0], [1], [0, 0, 1, 1], [], []>} : vector<8x128xf32>, vector<128x128xf32>, vector<8x128xf32> -> vector<8x128xf32>
    %30 = arith.addf %28, %29 : vector<8x128xf32>
    %31 = arith.negf %30 : vector<8x128xf32>
    %32 = math.exp %31 : vector<8x128xf32>
    %cst_25 = arith.constant 1.000000e+00 : f32
    %33 = vector.broadcast %cst_25 : f32 to vector<8x128xf32>
    %34 = arith.addf %33, %32 : vector<8x128xf32>
    %35 = arith.divf %33, %34 : vector<8x128xf32>
    %36 = vector.extract_strided_slice %19 {offsets = [0, 256], sizes = [8, 128], strides = [1, 1]} : vector<8x512xf32> to vector<8x128xf32>
    %cst_26 = arith.constant dense<0.000000e+00> : vector<8x128xf32>
    %37 = tpu.matmul %16, %14, %cst_26 {dimension_numbers = #tpu.dot_dimension_numbers<[1], [0], [0], [1], [0, 0, 1, 1], [], []>} : vector<8x128xf32>, vector<128x128xf32>, vector<8x128xf32> -> vector<8x128xf32>
    %38 = arith.addf %36, %37 : vector<8x128xf32>
    %39 = math.tanh %38 : vector<8x128xf32>
    %40 = vector.extract_strided_slice %19 {offsets = [0, 384], sizes = [8, 128], strides = [1, 1]} : vector<8x512xf32> to vector<8x128xf32>
    %cst_27 = arith.constant dense<0.000000e+00> : vector<8x128xf32>
    %41 = tpu.matmul %16, %15, %cst_27 {dimension_numbers = #tpu.dot_dimension_numbers<[1], [0], [0], [1], [0, 0, 1, 1], [], []>} : vector<8x128xf32>, vector<128x128xf32>, vector<8x128xf32> -> vector<8x128xf32>
    %42 = arith.addf %40, %41 : vector<8x128xf32>
    %43 = arith.negf %42 : vector<8x128xf32>
    %44 = math.exp %43 : vector<8x128xf32>
    %cst_28 = arith.constant 1.000000e+00 : f32
    %45 = vector.broadcast %cst_28 : f32 to vector<8x128xf32>
    %46 = arith.addf %45, %44 : vector<8x128xf32>
    %47 = arith.divf %45, %46 : vector<8x128xf32>
    %48 = arith.mulf %35, %17 : vector<8x128xf32>
    %49 = arith.mulf %27, %39 : vector<8x128xf32>
    %50 = arith.addf %48, %49 : vector<8x128xf32>
    %51 = math.tanh %50 : vector<8x128xf32>
    %52 = arith.mulf %47, %51 : vector<8x128xf32>
    %c0_29 = arith.constant 0 : index
    %c0_30 = arith.constant 0 : index
    %c0_31 = arith.constant 0 : index
    %53 = vector.load %arg11[%c0_29, %c0_30, %c0_31] : memref<8x8x128xf32, #tpu.memory_space<vmem>>, vector<1x8x128xf32>
    %54 = vector.shape_cast %53 : vector<1x8x128xf32> to vector<8x128xf32>
    %55 = vector.shape_cast %52 : vector<8x128xf32> to vector<1x8x128xf32>
    tpu.vector_store %arg11[%c0_29, %c0_30, %c0_31], %55 {strides = array<i32>} : memref<8x8x128xf32, #tpu.memory_space<vmem>>, vector<1x8x128xf32>,
    %c1 = arith.constant 1 : index
    %c0_32 = arith.constant 0 : index
    %c0_33 = arith.constant 0 : index
    %56 = vector.load %arg10[%c1, %c0_32, %c0_33] : memref<8x8x512xf32, #tpu.memory_space<vmem>>, vector<1x8x512xf32>
    %57 = vector.shape_cast %56 : vector<1x8x512xf32> to vector<8x512xf32>
    %58 = vector.extract_strided_slice %57 {offsets = [0, 0], sizes = [8, 128], strides = [1, 1]} : vector<8x512xf32> to vector<8x128xf32>
    %cst_34 = arith.constant dense<0.000000e+00> : vector<8x128xf32>
    %59 = tpu.matmul %52, %12, %cst_34 {dimension_numbers = #tpu.dot_dimension_numbers<[1], [0], [0], [1], [0, 0, 1, 1], [], []>} : vector<8x128xf32>, vector<128x128xf32>, vector<8x128xf32> -> vector<8x128xf32>
    %60 = arith.addf %58, %59 : vector<8x128xf32>
    %61 = arith.negf %60 : vector<8x128xf32>
    %62 = math.exp %61 : vector<8x128xf32>
    %cst_35 = arith.constant 1.000000e+00 : f32
    %63 = vector.broadcast %cst_35 : f32 to vector<8x128xf32>
    %64 = arith.addf %63, %62 : vector<8x128xf32>
    %65 = arith.divf %63, %64 : vector<8x128xf32>
    %66 = vector.extract_strided_slice %57 {offsets = [0, 128], sizes = [8, 128], strides = [1, 1]} : vector<8x512xf32> to vector<8x128xf32>
    %cst_36 = arith.constant dense<0.000000e+00> : vector<8x128xf32>
    %67 = tpu.matmul %52, %13, %cst_36 {dimension_numbers = #tpu.dot_dimension_numbers<[1], [0], [0], [1], [0, 0, 1, 1], [], []>} : vector<8x128xf32>, vector<128x128xf32>, vector<8x128xf32> -> vector<8x128xf32>
    %68 = arith.addf %66, %67 : vector<8x128xf32>
    %69 = arith.negf %68 : vector<8x128xf32>
    %70 = math.exp %69 : vector<8x128xf32>
    %cst_37 = arith.constant 1.000000e+00 : f32
    %71 = vector.broadcast %cst_37 : f32 to vector<8x128xf32>
    %72 = arith.addf %71, %70 : vector<8x128xf32>
    %73 = arith.divf %71, %72 : vector<8x128xf32>
    %74 = vector.extract_strided_slice %57 {offsets = [0, 256], sizes = [8, 128], strides = [1, 1]} : vector<8x512xf32> to vector<8x128xf32>
    %cst_38 = arith.constant dense<0.000000e+00> : vector<8x128xf32>
    %75 = tpu.matmul %52, %14, %cst_38 {dimension_numbers = #tpu.dot_dimension_numbers<[1], [0], [0], [1], [0, 0, 1, 1], [], []>} : vector<8x128xf32>, vector<128x128xf32>, vector<8x128xf32> -> vector<8x128xf32>
    %76 = arith.addf %74, %75 : vector<8x128xf32>
    %77 = math.tanh %76 : vector<8x128xf32>
    %78 = vector.extract_strided_slice %57 {offsets = [0, 384], sizes = [8, 128], strides = [1, 1]} : vector<8x512xf32> to vector<8x128xf32>
    %cst_39 = arith.constant dense<0.000000e+00> : vector<8x128xf32>
    %79 = tpu.matmul %52, %15, %cst_39 {dimension_numbers = #tpu.dot_dimension_numbers<[1], [0], [0], [1], [0, 0, 1, 1], [], []>} : vector<8x128xf32>, vector<128x128xf32>, vector<8x128xf32> -> vector<8x128xf32>
    %80 = arith.addf %78, %79 : vector<8x128xf32>
    %81 = arith.negf %80 : vector<8x128xf32>
    %82 = math.exp %81 : vector<8x128xf32>
    %cst_40 = arith.constant 1.000000e+00 : f32
    %83 = vector.broadcast %cst_40 : f32 to vector<8x128xf32>
    %84 = arith.addf %83, %82 : vector<8x128xf32>
    %85 = arith.divf %83, %84 : vector<8x128xf32>
    %86 = arith.mulf %73, %50 : vector<8x128xf32>
    %87 = arith.mulf %65, %77 : vector<8x128xf32>
    %88 = arith.addf %86, %87 : vector<8x128xf32>
    %89 = math.tanh %88 : vector<8x128xf32>
    %90 = arith.mulf %85, %89 : vector<8x128xf32>
    %c1_41 = arith.constant 1 : index
    %c0_42 = arith.constant 0 : index
    %c0_43 = arith.constant 0 : index
    %91 = vector.load %arg11[%c1_41, %c0_42, %c0_43] : memref<8x8x128xf32, #tpu.memory_space<vmem>>, vector<1x8x128xf32>
    %92 = vector.shape_cast %91 : vector<1x8x128xf32> to vector<8x128xf32>
    %93 = vector.shape_cast %90 : vector<8x128xf32> to vector<1x8x128xf32>
    tpu.vector_store %arg11[%c1_41, %c0_42, %c0_43], %93 {strides = array<i32>} : memref<8x8x128xf32, #tpu.memory_space<vmem>>, vector<1x8x128xf32>,
    %c2 = arith.constant 2 : index
    %c0_44 = arith.constant 0 : index
    %c0_45 = arith.constant 0 : index
    %94 = vector.load %arg10[%c2, %c0_44, %c0_45] : memref<8x8x512xf32, #tpu.memory_space<vmem>>, vector<1x8x512xf32>
    %95 = vector.shape_cast %94 : vector<1x8x512xf32> to vector<8x512xf32>
    %96 = vector.extract_strided_slice %95 {offsets = [0, 0], sizes = [8, 128], strides = [1, 1]} : vector<8x512xf32> to vector<8x128xf32>
    %cst_46 = arith.constant dense<0.000000e+00> : vector<8x128xf32>
    %97 = tpu.matmul %90, %12, %cst_46 {dimension_numbers = #tpu.dot_dimension_numbers<[1], [0], [0], [1], [0, 0, 1, 1], [], []>} : vector<8x128xf32>, vector<128x128xf32>, vector<8x128xf32> -> vector<8x128xf32>
    %98 = arith.addf %96, %97 : vector<8x128xf32>
    %99 = arith.negf %98 : vector<8x128xf32>
    %100 = math.exp %99 : vector<8x128xf32>
    %cst_47 = arith.constant 1.000000e+00 : f32
    %101 = vector.broadcast %cst_47 : f32 to vector<8x128xf32>
    %102 = arith.addf %101, %100 : vector<8x128xf32>
    %103 = arith.divf %101, %102 : vector<8x128xf32>
    %104 = vector.extract_strided_slice %95 {offsets = [0, 128], sizes = [8, 128], strides = [1, 1]} : vector<8x512xf32> to vector<8x128xf32>
    %cst_48 = arith.constant dense<0.000000e+00> : vector<8x128xf32>
    %105 = tpu.matmul %90, %13, %cst_48 {dimension_numbers = #tpu.dot_dimension_numbers<[1], [0], [0], [1], [0, 0, 1, 1], [], []>} : vector<8x128xf32>, vector<128x128xf32>, vector<8x128xf32> -> vector<8x128xf32>
    %106 = arith.addf %104, %105 : vector<8x128xf32>
    %107 = arith.negf %106 : vector<8x128xf32>
    %108 = math.exp %107 : vector<8x128xf32>
    %cst_49 = arith.constant 1.000000e+00 : f32
    %109 = vector.broadcast %cst_49 : f32 to vector<8x128xf32>
    %110 = arith.addf %109, %108 : vector<8x128xf32>
    %111 = arith.divf %109, %110 : vector<8x128xf32>
    %112 = vector.extract_strided_slice %95 {offsets = [0, 256], sizes = [8, 128], strides = [1, 1]} : vector<8x512xf32> to vector<8x128xf32>
    %cst_50 = arith.constant dense<0.000000e+00> : vector<8x128xf32>
    %113 = tpu.matmul %90, %14, %cst_50 {dimension_numbers = #tpu.dot_dimension_numbers<[1], [0], [0], [1], [0, 0, 1, 1], [], []>} : vector<8x128xf32>, vector<128x128xf32>, vector<8x128xf32> -> vector<8x128xf32>
    %114 = arith.addf %112, %113 : vector<8x128xf32>
    %115 = math.tanh %114 : vector<8x128xf32>
    %116 = vector.extract_strided_slice %95 {offsets = [0, 384], sizes = [8, 128], strides = [1, 1]} : vector<8x512xf32> to vector<8x128xf32>
    %cst_51 = arith.constant dense<0.000000e+00> : vector<8x128xf32>
    %117 = tpu.matmul %90, %15, %cst_51 {dimension_numbers = #tpu.dot_dimension_numbers<[1], [0], [0], [1], [0, 0, 1, 1], [], []>} : vector<8x128xf32>, vector<128x128xf32>, vector<8x128xf32> -> vector<8x128xf32>
    %118 = arith.addf %116, %117 : vector<8x128xf32>
    %119 = arith.negf %118 : vector<8x128xf32>
    %120 = math.exp %119 : vector<8x128xf32>
    %cst_52 = arith.constant 1.000000e+00 : f32
    %121 = vector.broadcast %cst_52 : f32 to vector<8x128xf32>
    %122 = arith.addf %121, %120 : vector<8x128xf32>
    %123 = arith.divf %121, %122 : vector<8x128xf32>
    %124 = arith.mulf %111, %88 : vector<8x128xf32>
    %125 = arith.mulf %103, %115 : vector<8x128xf32>
    %126 = arith.addf %124, %125 : vector<8x128xf32>
    %127 = math.tanh %126 : vector<8x128xf32>
    %128 = arith.mulf %123, %127 : vector<8x128xf32>
    %c2_53 = arith.constant 2 : index
    %c0_54 = arith.constant 0 : index
    %c0_55 = arith.constant 0 : index
    %129 = vector.load %arg11[%c2_53, %c0_54, %c0_55] : memref<8x8x128xf32, #tpu.memory_space<vmem>>, vector<1x8x128xf32>
    %130 = vector.shape_cast %129 : vector<1x8x128xf32> to vector<8x128xf32>
    %131 = vector.shape_cast %128 : vector<8x128xf32> to vector<1x8x128xf32>
    tpu.vector_store %arg11[%c2_53, %c0_54, %c0_55], %131 {strides = array<i32>} : memref<8x8x128xf32, #tpu.memory_space<vmem>>, vector<1x8x128xf32>,
    %c3 = arith.constant 3 : index
    %c0_56 = arith.constant 0 : index
    %c0_57 = arith.constant 0 : index
    %132 = vector.load %arg10[%c3, %c0_56, %c0_57] : memref<8x8x512xf32, #tpu.memory_space<vmem>>, vector<1x8x512xf32>
    %133 = vector.shape_cast %132 : vector<1x8x512xf32> to vector<8x512xf32>
    %134 = vector.extract_strided_slice %133 {offsets = [0, 0], sizes = [8, 128], strides = [1, 1]} : vector<8x512xf32> to vector<8x128xf32>
    %cst_58 = arith.constant dense<0.000000e+00> : vector<8x128xf32>
    %135 = tpu.matmul %128, %12, %cst_58 {dimension_numbers = #tpu.dot_dimension_numbers<[1], [0], [0], [1], [0, 0, 1, 1], [], []>} : vector<8x128xf32>, vector<128x128xf32>, vector<8x128xf32> -> vector<8x128xf32>
    %136 = arith.addf %134, %135 : vector<8x128xf32>
    %137 = arith.negf %136 : vector<8x128xf32>
    %138 = math.exp %137 : vector<8x128xf32>
    %cst_59 = arith.constant 1.000000e+00 : f32
    %139 = vector.broadcast %cst_59 : f32 to vector<8x128xf32>
    %140 = arith.addf %139, %138 : vector<8x128xf32>
    %141 = arith.divf %139, %140 : vector<8x128xf32>
    %142 = vector.extract_strided_slice %133 {offsets = [0, 128], sizes = [8, 128], strides = [1, 1]} : vector<8x512xf32> to vector<8x128xf32>
    %cst_60 = arith.constant dense<0.000000e+00> : vector<8x128xf32>
    %143 = tpu.matmul %128, %13, %cst_60 {dimension_numbers = #tpu.dot_dimension_numbers<[1], [0], [0], [1], [0, 0, 1, 1], [], []>} : vector<8x128xf32>, vector<128x128xf32>, vector<8x128xf32> -> vector<8x128xf32>
    %144 = arith.addf %142, %143 : vector<8x128xf32>
    %145 = arith.negf %144 : vector<8x128xf32>
    %146 = math.exp %145 : vector<8x128xf32>
    %cst_61 = arith.constant 1.000000e+00 : f32
    %147 = vector.broadcast %cst_61 : f32 to vector<8x128xf32>
    %148 = arith.addf %147, %146 : vector<8x128xf32>
    %149 = arith.divf %147, %148 : vector<8x128xf32>
    %150 = vector.extract_strided_slice %133 {offsets = [0, 256], sizes = [8, 128], strides = [1, 1]} : vector<8x512xf32> to vector<8x128xf32>
    %cst_62 = arith.constant dense<0.000000e+00> : vector<8x128xf32>
    %151 = tpu.matmul %128, %14, %cst_62 {dimension_numbers = #tpu.dot_dimension_numbers<[1], [0], [0], [1], [0, 0, 1, 1], [], []>} : vector<8x128xf32>, vector<128x128xf32>, vector<8x128xf32> -> vector<8x128xf32>
    %152 = arith.addf %150, %151 : vector<8x128xf32>
    %153 = math.tanh %152 : vector<8x128xf32>
    %154 = vector.extract_strided_slice %133 {offsets = [0, 384], sizes = [8, 128], strides = [1, 1]} : vector<8x512xf32> to vector<8x128xf32>
    %cst_63 = arith.constant dense<0.000000e+00> : vector<8x128xf32>
    %155 = tpu.matmul %128, %15, %cst_63 {dimension_numbers = #tpu.dot_dimension_numbers<[1], [0], [0], [1], [0, 0, 1, 1], [], []>} : vector<8x128xf32>, vector<128x128xf32>, vector<8x128xf32> -> vector<8x128xf32>
    %156 = arith.addf %154, %155 : vector<8x128xf32>
    %157 = arith.negf %156 : vector<8x128xf32>
    %158 = math.exp %157 : vector<8x128xf32>
    %cst_64 = arith.constant 1.000000e+00 : f32
    %159 = vector.broadcast %cst_64 : f32 to vector<8x128xf32>
    %160 = arith.addf %159, %158 : vector<8x128xf32>
    %161 = arith.divf %159, %160 : vector<8x128xf32>
    %162 = arith.mulf %149, %126 : vector<8x128xf32>
    %163 = arith.mulf %141, %153 : vector<8x128xf32>
    %164 = arith.addf %162, %163 : vector<8x128xf32>
    %165 = math.tanh %164 : vector<8x128xf32>
    %166 = arith.mulf %161, %165 : vector<8x128xf32>
    %c3_65 = arith.constant 3 : index
    %c0_66 = arith.constant 0 : index
    %c0_67 = arith.constant 0 : index
    %167 = vector.load %arg11[%c3_65, %c0_66, %c0_67] : memref<8x8x128xf32, #tpu.memory_space<vmem>>, vector<1x8x128xf32>
    %168 = vector.shape_cast %167 : vector<1x8x128xf32> to vector<8x128xf32>
    %169 = vector.shape_cast %166 : vector<8x128xf32> to vector<1x8x128xf32>
    tpu.vector_store %arg11[%c3_65, %c0_66, %c0_67], %169 {strides = array<i32>} : memref<8x8x128xf32, #tpu.memory_space<vmem>>, vector<1x8x128xf32>,
    %c4 = arith.constant 4 : index
    %c0_68 = arith.constant 0 : index
    %c0_69 = arith.constant 0 : index
    %170 = vector.load %arg10[%c4, %c0_68, %c0_69] : memref<8x8x512xf32, #tpu.memory_space<vmem>>, vector<1x8x512xf32>
    %171 = vector.shape_cast %170 : vector<1x8x512xf32> to vector<8x512xf32>
    %172 = vector.extract_strided_slice %171 {offsets = [0, 0], sizes = [8, 128], strides = [1, 1]} : vector<8x512xf32> to vector<8x128xf32>
    %cst_70 = arith.constant dense<0.000000e+00> : vector<8x128xf32>
    %173 = tpu.matmul %166, %12, %cst_70 {dimension_numbers = #tpu.dot_dimension_numbers<[1], [0], [0], [1], [0, 0, 1, 1], [], []>} : vector<8x128xf32>, vector<128x128xf32>, vector<8x128xf32> -> vector<8x128xf32>
    %174 = arith.addf %172, %173 : vector<8x128xf32>
    %175 = arith.negf %174 : vector<8x128xf32>
    %176 = math.exp %175 : vector<8x128xf32>
    %cst_71 = arith.constant 1.000000e+00 : f32
    %177 = vector.broadcast %cst_71 : f32 to vector<8x128xf32>
    %178 = arith.addf %177, %176 : vector<8x128xf32>
    %179 = arith.divf %177, %178 : vector<8x128xf32>
    %180 = vector.extract_strided_slice %171 {offsets = [0, 128], sizes = [8, 128], strides = [1, 1]} : vector<8x512xf32> to vector<8x128xf32>
    %cst_72 = arith.constant dense<0.000000e+00> : vector<8x128xf32>
    %181 = tpu.matmul %166, %13, %cst_72 {dimension_numbers = #tpu.dot_dimension_numbers<[1], [0], [0], [1], [0, 0, 1, 1], [], []>} : vector<8x128xf32>, vector<128x128xf32>, vector<8x128xf32> -> vector<8x128xf32>
    %182 = arith.addf %180, %181 : vector<8x128xf32>
    %183 = arith.negf %182 : vector<8x128xf32>
    %184 = math.exp %183 : vector<8x128xf32>
    %cst_73 = arith.constant 1.000000e+00 : f32
    %185 = vector.broadcast %cst_73 : f32 to vector<8x128xf32>
    %186 = arith.addf %185, %184 : vector<8x128xf32>
    %187 = arith.divf %185, %186 : vector<8x128xf32>
    %188 = vector.extract_strided_slice %171 {offsets = [0, 256], sizes = [8, 128], strides = [1, 1]} : vector<8x512xf32> to vector<8x128xf32>
    %cst_74 = arith.constant dense<0.000000e+00> : vector<8x128xf32>
    %189 = tpu.matmul %166, %14, %cst_74 {dimension_numbers = #tpu.dot_dimension_numbers<[1], [0], [0], [1], [0, 0, 1, 1], [], []>} : vector<8x128xf32>, vector<128x128xf32>, vector<8x128xf32> -> vector<8x128xf32>
    %190 = arith.addf %188, %189 : vector<8x128xf32>
    %191 = math.tanh %190 : vector<8x128xf32>
    %192 = vector.extract_strided_slice %171 {offsets = [0, 384], sizes = [8, 128], strides = [1, 1]} : vector<8x512xf32> to vector<8x128xf32>
    %cst_75 = arith.constant dense<0.000000e+00> : vector<8x128xf32>
    %193 = tpu.matmul %166, %15, %cst_75 {dimension_numbers = #tpu.dot_dimension_numbers<[1], [0], [0], [1], [0, 0, 1, 1], [], []>} : vector<8x128xf32>, vector<128x128xf32>, vector<8x128xf32> -> vector<8x128xf32>
    %194 = arith.addf %192, %193 : vector<8x128xf32>
    %195 = arith.negf %194 : vector<8x128xf32>
    %196 = math.exp %195 : vector<8x128xf32>
    %cst_76 = arith.constant 1.000000e+00 : f32
    %197 = vector.broadcast %cst_76 : f32 to vector<8x128xf32>
    %198 = arith.addf %197, %196 : vector<8x128xf32>
    %199 = arith.divf %197, %198 : vector<8x128xf32>
    %200 = arith.mulf %187, %164 : vector<8x128xf32>
    %201 = arith.mulf %179, %191 : vector<8x128xf32>
    %202 = arith.addf %200, %201 : vector<8x128xf32>
    %203 = math.tanh %202 : vector<8x128xf32>
    %204 = arith.mulf %199, %203 : vector<8x128xf32>
    %c4_77 = arith.constant 4 : index
    %c0_78 = arith.constant 0 : index
    %c0_79 = arith.constant 0 : index
    %205 = vector.load %arg11[%c4_77, %c0_78, %c0_79] : memref<8x8x128xf32, #tpu.memory_space<vmem>>, vector<1x8x128xf32>
    %206 = vector.shape_cast %205 : vector<1x8x128xf32> to vector<8x128xf32>
    %207 = vector.shape_cast %204 : vector<8x128xf32> to vector<1x8x128xf32>
    tpu.vector_store %arg11[%c4_77, %c0_78, %c0_79], %207 {strides = array<i32>} : memref<8x8x128xf32, #tpu.memory_space<vmem>>, vector<1x8x128xf32>,
    %c5 = arith.constant 5 : index
    %c0_80 = arith.constant 0 : index
    %c0_81 = arith.constant 0 : index
    %208 = vector.load %arg10[%c5, %c0_80, %c0_81] : memref<8x8x512xf32, #tpu.memory_space<vmem>>, vector<1x8x512xf32>
    %209 = vector.shape_cast %208 : vector<1x8x512xf32> to vector<8x512xf32>
    %210 = vector.extract_strided_slice %209 {offsets = [0, 0], sizes = [8, 128], strides = [1, 1]} : vector<8x512xf32> to vector<8x128xf32>
    %cst_82 = arith.constant dense<0.000000e+00> : vector<8x128xf32>
    %211 = tpu.matmul %204, %12, %cst_82 {dimension_numbers = #tpu.dot_dimension_numbers<[1], [0], [0], [1], [0, 0, 1, 1], [], []>} : vector<8x128xf32>, vector<128x128xf32>, vector<8x128xf32> -> vector<8x128xf32>
    %212 = arith.addf %210, %211 : vector<8x128xf32>
    %213 = arith.negf %212 : vector<8x128xf32>
    %214 = math.exp %213 : vector<8x128xf32>
    %cst_83 = arith.constant 1.000000e+00 : f32
    %215 = vector.broadcast %cst_83 : f32 to vector<8x128xf32>
    %216 = arith.addf %215, %214 : vector<8x128xf32>
    %217 = arith.divf %215, %216 : vector<8x128xf32>
    %218 = vector.extract_strided_slice %209 {offsets = [0, 128], sizes = [8, 128], strides = [1, 1]} : vector<8x512xf32> to vector<8x128xf32>
    %cst_84 = arith.constant dense<0.000000e+00> : vector<8x128xf32>
    %219 = tpu.matmul %204, %13, %cst_84 {dimension_numbers = #tpu.dot_dimension_numbers<[1], [0], [0], [1], [0, 0, 1, 1], [], []>} : vector<8x128xf32>, vector<128x128xf32>, vector<8x128xf32> -> vector<8x128xf32>
    %220 = arith.addf %218, %219 : vector<8x128xf32>
    %221 = arith.negf %220 : vector<8x128xf32>
    %222 = math.exp %221 : vector<8x128xf32>
    %cst_85 = arith.constant 1.000000e+00 : f32
    %223 = vector.broadcast %cst_85 : f32 to vector<8x128xf32>
    %224 = arith.addf %223, %222 : vector<8x128xf32>
    %225 = arith.divf %223, %224 : vector<8x128xf32>
    %226 = vector.extract_strided_slice %209 {offsets = [0, 256], sizes = [8, 128], strides = [1, 1]} : vector<8x512xf32> to vector<8x128xf32>
    %cst_86 = arith.constant dense<0.000000e+00> : vector<8x128xf32>
    %227 = tpu.matmul %204, %14, %cst_86 {dimension_numbers = #tpu.dot_dimension_numbers<[1], [0], [0], [1], [0, 0, 1, 1], [], []>} : vector<8x128xf32>, vector<128x128xf32>, vector<8x128xf32> -> vector<8x128xf32>
    %228 = arith.addf %226, %227 : vector<8x128xf32>
    %229 = math.tanh %228 : vector<8x128xf32>
    %230 = vector.extract_strided_slice %209 {offsets = [0, 384], sizes = [8, 128], strides = [1, 1]} : vector<8x512xf32> to vector<8x128xf32>
    %cst_87 = arith.constant dense<0.000000e+00> : vector<8x128xf32>
    %231 = tpu.matmul %204, %15, %cst_87 {dimension_numbers = #tpu.dot_dimension_numbers<[1], [0], [0], [1], [0, 0, 1, 1], [], []>} : vector<8x128xf32>, vector<128x128xf32>, vector<8x128xf32> -> vector<8x128xf32>
    %232 = arith.addf %230, %231 : vector<8x128xf32>
    %233 = arith.negf %232 : vector<8x128xf32>
    %234 = math.exp %233 : vector<8x128xf32>
    %cst_88 = arith.constant 1.000000e+00 : f32
    %235 = vector.broadcast %cst_88 : f32 to vector<8x128xf32>
    %236 = arith.addf %235, %234 : vector<8x128xf32>
    %237 = arith.divf %235, %236 : vector<8x128xf32>
    %238 = arith.mulf %225, %202 : vector<8x128xf32>
    %239 = arith.mulf %217, %229 : vector<8x128xf32>
    %240 = arith.addf %238, %239 : vector<8x128xf32>
    %241 = math.tanh %240 : vector<8x128xf32>
    %242 = arith.mulf %237, %241 : vector<8x128xf32>
    %c5_89 = arith.constant 5 : index
    %c0_90 = arith.constant 0 : index
    %c0_91 = arith.constant 0 : index
    %243 = vector.load %arg11[%c5_89, %c0_90, %c0_91] : memref<8x8x128xf32, #tpu.memory_space<vmem>>, vector<1x8x128xf32>
    %244 = vector.shape_cast %243 : vector<1x8x128xf32> to vector<8x128xf32>
    %245 = vector.shape_cast %242 : vector<8x128xf32> to vector<1x8x128xf32>
    tpu.vector_store %arg11[%c5_89, %c0_90, %c0_91], %245 {strides = array<i32>} : memref<8x8x128xf32, #tpu.memory_space<vmem>>, vector<1x8x128xf32>,
    %c6 = arith.constant 6 : index
    %c0_92 = arith.constant 0 : index
    %c0_93 = arith.constant 0 : index
    %246 = vector.load %arg10[%c6, %c0_92, %c0_93] : memref<8x8x512xf32, #tpu.memory_space<vmem>>, vector<1x8x512xf32>
    %247 = vector.shape_cast %246 : vector<1x8x512xf32> to vector<8x512xf32>
    %248 = vector.extract_strided_slice %247 {offsets = [0, 0], sizes = [8, 128], strides = [1, 1]} : vector<8x512xf32> to vector<8x128xf32>
    %cst_94 = arith.constant dense<0.000000e+00> : vector<8x128xf32>
    %249 = tpu.matmul %242, %12, %cst_94 {dimension_numbers = #tpu.dot_dimension_numbers<[1], [0], [0], [1], [0, 0, 1, 1], [], []>} : vector<8x128xf32>, vector<128x128xf32>, vector<8x128xf32> -> vector<8x128xf32>
    %250 = arith.addf %248, %249 : vector<8x128xf32>
    %251 = arith.negf %250 : vector<8x128xf32>
    %252 = math.exp %251 : vector<8x128xf32>
    %cst_95 = arith.constant 1.000000e+00 : f32
    %253 = vector.broadcast %cst_95 : f32 to vector<8x128xf32>
    %254 = arith.addf %253, %252 : vector<8x128xf32>
    %255 = arith.divf %253, %254 : vector<8x128xf32>
    %256 = vector.extract_strided_slice %247 {offsets = [0, 128], sizes = [8, 128], strides = [1, 1]} : vector<8x512xf32> to vector<8x128xf32>
    %cst_96 = arith.constant dense<0.000000e+00> : vector<8x128xf32>
    %257 = tpu.matmul %242, %13, %cst_96 {dimension_numbers = #tpu.dot_dimension_numbers<[1], [0], [0], [1], [0, 0, 1, 1], [], []>} : vector<8x128xf32>, vector<128x128xf32>, vector<8x128xf32> -> vector<8x128xf32>
    %258 = arith.addf %256, %257 : vector<8x128xf32>
    %259 = arith.negf %258 : vector<8x128xf32>
    %260 = math.exp %259 : vector<8x128xf32>
    %cst_97 = arith.constant 1.000000e+00 : f32
    %261 = vector.broadcast %cst_97 : f32 to vector<8x128xf32>
    %262 = arith.addf %261, %260 : vector<8x128xf32>
    %263 = arith.divf %261, %262 : vector<8x128xf32>
    %264 = vector.extract_strided_slice %247 {offsets = [0, 256], sizes = [8, 128], strides = [1, 1]} : vector<8x512xf32> to vector<8x128xf32>
    %cst_98 = arith.constant dense<0.000000e+00> : vector<8x128xf32>
    %265 = tpu.matmul %242, %14, %cst_98 {dimension_numbers = #tpu.dot_dimension_numbers<[1], [0], [0], [1], [0, 0, 1, 1], [], []>} : vector<8x128xf32>, vector<128x128xf32>, vector<8x128xf32> -> vector<8x128xf32>
    %266 = arith.addf %264, %265 : vector<8x128xf32>
    %267 = math.tanh %266 : vector<8x128xf32>
    %268 = vector.extract_strided_slice %247 {offsets = [0, 384], sizes = [8, 128], strides = [1, 1]} : vector<8x512xf32> to vector<8x128xf32>
    %cst_99 = arith.constant dense<0.000000e+00> : vector<8x128xf32>
    %269 = tpu.matmul %242, %15, %cst_99 {dimension_numbers = #tpu.dot_dimension_numbers<[1], [0], [0], [1], [0, 0, 1, 1], [], []>} : vector<8x128xf32>, vector<128x128xf32>, vector<8x128xf32> -> vector<8x128xf32>
    %270 = arith.addf %268, %269 : vector<8x128xf32>
    %271 = arith.negf %270 : vector<8x128xf32>
    %272 = math.exp %271 : vector<8x128xf32>
    %cst_100 = arith.constant 1.000000e+00 : f32
    %273 = vector.broadcast %cst_100 : f32 to vector<8x128xf32>
    %274 = arith.addf %273, %272 : vector<8x128xf32>
    %275 = arith.divf %273, %274 : vector<8x128xf32>
    %276 = arith.mulf %263, %240 : vector<8x128xf32>
    %277 = arith.mulf %255, %267 : vector<8x128xf32>
    %278 = arith.addf %276, %277 : vector<8x128xf32>
    %279 = math.tanh %278 : vector<8x128xf32>
    %280 = arith.mulf %275, %279 : vector<8x128xf32>
    %c6_101 = arith.constant 6 : index
    %c0_102 = arith.constant 0 : index
    %c0_103 = arith.constant 0 : index
    %281 = vector.load %arg11[%c6_101, %c0_102, %c0_103] : memref<8x8x128xf32, #tpu.memory_space<vmem>>, vector<1x8x128xf32>
    %282 = vector.shape_cast %281 : vector<1x8x128xf32> to vector<8x128xf32>
    %283 = vector.shape_cast %280 : vector<8x128xf32> to vector<1x8x128xf32>
    tpu.vector_store %arg11[%c6_101, %c0_102, %c0_103], %283 {strides = array<i32>} : memref<8x8x128xf32, #tpu.memory_space<vmem>>, vector<1x8x128xf32>,
    %c7 = arith.constant 7 : index
    %c0_104 = arith.constant 0 : index
    %c0_105 = arith.constant 0 : index
    %284 = vector.load %arg10[%c7, %c0_104, %c0_105] : memref<8x8x512xf32, #tpu.memory_space<vmem>>, vector<1x8x512xf32>
    %285 = vector.shape_cast %284 : vector<1x8x512xf32> to vector<8x512xf32>
    %286 = vector.extract_strided_slice %285 {offsets = [0, 0], sizes = [8, 128], strides = [1, 1]} : vector<8x512xf32> to vector<8x128xf32>
    %cst_106 = arith.constant dense<0.000000e+00> : vector<8x128xf32>
    %287 = tpu.matmul %280, %12, %cst_106 {dimension_numbers = #tpu.dot_dimension_numbers<[1], [0], [0], [1], [0, 0, 1, 1], [], []>} : vector<8x128xf32>, vector<128x128xf32>, vector<8x128xf32> -> vector<8x128xf32>
    %288 = arith.addf %286, %287 : vector<8x128xf32>
    %289 = arith.negf %288 : vector<8x128xf32>
    %290 = math.exp %289 : vector<8x128xf32>
    %cst_107 = arith.constant 1.000000e+00 : f32
    %291 = vector.broadcast %cst_107 : f32 to vector<8x128xf32>
    %292 = arith.addf %291, %290 : vector<8x128xf32>
    %293 = arith.divf %291, %292 : vector<8x128xf32>
    %294 = vector.extract_strided_slice %285 {offsets = [0, 128], sizes = [8, 128], strides = [1, 1]} : vector<8x512xf32> to vector<8x128xf32>
    %cst_108 = arith.constant dense<0.000000e+00> : vector<8x128xf32>
    %295 = tpu.matmul %280, %13, %cst_108 {dimension_numbers = #tpu.dot_dimension_numbers<[1], [0], [0], [1], [0, 0, 1, 1], [], []>} : vector<8x128xf32>, vector<128x128xf32>, vector<8x128xf32> -> vector<8x128xf32>
    %296 = arith.addf %294, %295 : vector<8x128xf32>
    %297 = arith.negf %296 : vector<8x128xf32>
    %298 = math.exp %297 : vector<8x128xf32>
    %cst_109 = arith.constant 1.000000e+00 : f32
    %299 = vector.broadcast %cst_109 : f32 to vector<8x128xf32>
    %300 = arith.addf %299, %298 : vector<8x128xf32>
    %301 = arith.divf %299, %300 : vector<8x128xf32>
    %302 = vector.extract_strided_slice %285 {offsets = [0, 256], sizes = [8, 128], strides = [1, 1]} : vector<8x512xf32> to vector<8x128xf32>
    %cst_110 = arith.constant dense<0.000000e+00> : vector<8x128xf32>
    %303 = tpu.matmul %280, %14, %cst_110 {dimension_numbers = #tpu.dot_dimension_numbers<[1], [0], [0], [1], [0, 0, 1, 1], [], []>} : vector<8x128xf32>, vector<128x128xf32>, vector<8x128xf32> -> vector<8x128xf32>
    %304 = arith.addf %302, %303 : vector<8x128xf32>
    %305 = math.tanh %304 : vector<8x128xf32>
    %306 = vector.extract_strided_slice %285 {offsets = [0, 384], sizes = [8, 128], strides = [1, 1]} : vector<8x512xf32> to vector<8x128xf32>
    %cst_111 = arith.constant dense<0.000000e+00> : vector<8x128xf32>
    %307 = tpu.matmul %280, %15, %cst_111 {dimension_numbers = #tpu.dot_dimension_numbers<[1], [0], [0], [1], [0, 0, 1, 1], [], []>} : vector<8x128xf32>, vector<128x128xf32>, vector<8x128xf32> -> vector<8x128xf32>
    %308 = arith.addf %306, %307 : vector<8x128xf32>
    %309 = arith.negf %308 : vector<8x128xf32>
    %310 = math.exp %309 : vector<8x128xf32>
    %cst_112 = arith.constant 1.000000e+00 : f32
    %311 = vector.broadcast %cst_112 : f32 to vector<8x128xf32>
    %312 = arith.addf %311, %310 : vector<8x128xf32>
    %313 = arith.divf %311, %312 : vector<8x128xf32>
    %314 = arith.mulf %301, %278 : vector<8x128xf32>
    %315 = arith.mulf %293, %305 : vector<8x128xf32>
    %316 = arith.addf %314, %315 : vector<8x128xf32>
    %317 = math.tanh %316 : vector<8x128xf32>
    %318 = arith.mulf %313, %317 : vector<8x128xf32>
    %c7_113 = arith.constant 7 : index
    %c0_114 = arith.constant 0 : index
    %c0_115 = arith.constant 0 : index
    %319 = vector.load %arg11[%c7_113, %c0_114, %c0_115] : memref<8x8x128xf32, #tpu.memory_space<vmem>>, vector<1x8x128xf32>
    %320 = vector.shape_cast %319 : vector<1x8x128xf32> to vector<8x128xf32>
    %321 = vector.shape_cast %318 : vector<8x128xf32> to vector<1x8x128xf32>
    tpu.vector_store %arg11[%c7_113, %c0_114, %c0_115], %321 {strides = array<i32>} : memref<8x8x128xf32, #tpu.memory_space<vmem>>, vector<1x8x128xf32>,
    %c0_116 = arith.constant 0 : index
    %c0_117 = arith.constant 0 : index
    %322 = vector.load %arg8[%c0_116, %c0_117] : memref<8x128xf32, #tpu.memory_space<vmem>>, vector<8x128xf32>
    tpu.vector_store %arg8[%c0_116, %c0_117], %318 {strides = array<i32>} : memref<8x128xf32, #tpu.memory_space<vmem>>, vector<8x128xf32>,
    %c0_118 = arith.constant 0 : index
    %c0_119 = arith.constant 0 : index
    %323 = vector.load %arg9[%c0_118, %c0_119] : memref<8x128xf32, #tpu.memory_space<vmem>>, vector<8x128xf32>
    tpu.vector_store %arg9[%c0_118, %c0_119], %316 {strides = array<i32>} : memref<8x128xf32, #tpu.memory_space<vmem>>, vector<8x128xf32>,
    %c0_120 = arith.constant 0 : index
    %c0_121 = arith.constant 0 : index
    %c0_122 = arith.constant 0 : index
    %324 = vector.load %arg11[%c0_120, %c0_121, %c0_122] : memref<8x8x128xf32, #tpu.memory_space<vmem>>, vector<8x8x128xf32>
    %325 = vector.shape_cast %324 : vector<8x8x128xf32> to vector<64x128xf32>
    %cst_123 = arith.constant 0.000000e+00 : f32
    %326 = vector.broadcast %cst_123 : f32 to vector<64x128xf32>
    %327 = arith.maximumf %325, %326 : vector<64x128xf32>
    %c0_124 = arith.constant 0 : index
    %c0_125 = arith.constant 0 : index
    %328 = vector.load %arg5[%c0_124, %c0_125] : memref<128x128xf32, #tpu.memory_space<vmem>>, vector<128x128xf32>
    %cst_126 = arith.constant dense<0.000000e+00> : vector<64x128xf32>
    %329 = tpu.matmul %327, %328, %cst_126 {dimension_numbers = #tpu.dot_dimension_numbers<[1], [0], [0], [1], [0, 0, 1, 1], [], []>} : vector<64x128xf32>, vector<128x128xf32>, vector<64x128xf32> -> vector<64x128xf32>
    %c0_127 = arith.constant 0 : index
    %c0_128 = arith.constant 0 : index
    %330 = vector.load %arg6[%c0_127, %c0_128] : memref<1x128xf32, #tpu.memory_space<vmem>>, vector<1x128xf32>
    %331 = vector.broadcast %330 : vector<1x128xf32> to vector<64x128xf32>
    %332 = arith.addf %329, %331 : vector<64x128xf32>
    %333 = vector.shape_cast %332 : vector<64x128xf32> to vector<8x8x128xf32>
    %c0_129 = arith.constant 0 : index
    %c0_130 = arith.constant 0 : index
    %c0_131 = arith.constant 0 : index
    %334 = vector.load %arg7[%c0_129, %c0_130, %c0_131] : memref<8x8x128xf32, #tpu.memory_space<vmem>>, vector<8x8x128xf32>
    tpu.vector_store %arg7[%c0_129, %c0_130, %c0_131], %333 {strides = array<i32>} : memref<8x8x128xf32, #tpu.memory_space<vmem>>, vector<8x8x128xf32>,
    return
  }
  func.func @transform_0(%arg0: i32) -> (i32, i32, i32) {
    %c0_i32 = arith.constant 0 : i32
    %c0_i32_0 = arith.constant 0 : i32
    %c0_i32_1 = arith.constant 0 : i32
    return %arg0, %c0_i32, %c0_i32_0 : i32, i32, i32
  }
  func.func @transform_1(%arg0: i32) -> (i32, i32) {
    %c0_i32 = arith.constant 0 : i32
    %c0_i32_0 = arith.constant 0 : i32
    %c0_i32_1 = arith.constant 0 : i32
    return %c0_i32, %c0_i32_0 : i32, i32
  }
  func.func @transform_2(%arg0: i32) -> (i32, i32) {
    %c0_i32 = arith.constant 0 : i32
    %c0_i32_0 = arith.constant 0 : i32
    %c0_i32_1 = arith.constant 0 : i32
    return %c0_i32, %c0_i32_0 : i32, i32
  }
  func.func @transform_3(%arg0: i32) -> (i32, i32) {
    %c0_i32 = arith.constant 0 : i32
    %c0_i32_0 = arith.constant 0 : i32
    %c0_i32_1 = arith.constant 0 : i32
    return %c0_i32, %c0_i32_0 : i32, i32
  }
  func.func @transform_4(%arg0: i32) -> (i32, i32) {
    %c0_i32 = arith.constant 0 : i32
    %c0_i32_0 = arith.constant 0 : i32
    %c0_i32_1 = arith.constant 0 : i32
    return %c0_i32, %c0_i32_0 : i32, i32
  }
  func.func @transform_5(%arg0: i32) -> (i32, i32) {
    %c0_i32 = arith.constant 0 : i32
    %c0_i32_0 = arith.constant 0 : i32
    %c0_i32_1 = arith.constant 0 : i32
    return %c0_i32, %c0_i32_0 : i32, i32
  }
  func.func @transform_6(%arg0: i32) -> (i32, i32, i32) {
    %c0_i32 = arith.constant 0 : i32
    %c0_i32_0 = arith.constant 0 : i32
    %c0_i32_1 = arith.constant 0 : i32
    return %arg0, %c0_i32, %c0_i32_0 : i32, i32, i32
  }
}

module attributes {stable_mosaic.version = 11 : i64} {
  func.func @_lstm_chunk_kernel(%arg0: i32, %arg1: memref<8x8x128xf32, #tpu.memory_space<vmem>>, %arg2: memref<128x512xf32, #tpu.memory_space<vmem>>, %arg3: memref<1x512xf32, #tpu.memory_space<vmem>>, %arg4: memref<128x512xf32, #tpu.memory_space<vmem>>, %arg5: memref<8x8x128xf32, #tpu.memory_space<vmem>>, %arg6: memref<8x128xf32, #tpu.memory_space<vmem>>, %arg7: memref<8x128xf32, #tpu.memory_space<vmem>>, %arg8: memref<8x8x512xf32, #tpu.memory_space<vmem>>) attributes {dimension_semantics = [#tpu.dimension_semantics<arbitrary>], iteration_bounds = array<i64: 1>, scalar_prefetch = 0 : i64, scratch_operands = 3 : i64, tpu.core_type = #tpu.core_type<tc>, window_params = [{transform_indices = @transform_0, window_bounds = array<i64: 8, 8, 128>}, {pipeline_mode = #tpu.pipeline_mode<synchronous>, transform_indices = @transform_1, window_bounds = array<i64: 128, 512>}, {pipeline_mode = #tpu.pipeline_mode<synchronous>, transform_indices = @transform_2, window_bounds = array<i64: 1, 512>}, {pipeline_mode = #tpu.pipeline_mode<synchronous>, transform_indices = @transform_3, window_bounds = array<i64: 128, 512>}, {transform_indices = @transform_4, window_bounds = array<i64: 8, 8, 128>}]} {
    %c0 = arith.constant 0 : index
    %c0_0 = arith.constant 0 : index
    %c0_1 = arith.constant 0 : index
    %0 = vector.load %arg1[%c0, %c0_0, %c0_1] : memref<8x8x128xf32, #tpu.memory_space<vmem>>, vector<8x8x128xf32>
    %1 = vector.shape_cast %0 : vector<8x8x128xf32> to vector<64x128xf32>
    %c0_2 = arith.constant 0 : index
    %c0_3 = arith.constant 0 : index
    %2 = vector.load %arg2[%c0_2, %c0_3] : memref<128x512xf32, #tpu.memory_space<vmem>>, vector<128x512xf32>
    %cst = arith.constant dense<0.000000e+00> : vector<64x512xf32>
    %3 = tpu.matmul %1, %2, %cst {dimension_numbers = #tpu.dot_dimension_numbers<[1], [0], [0], [1], [0, 0, 1, 1], [], []>} : vector<64x128xf32>, vector<128x512xf32>, vector<64x512xf32> -> vector<64x512xf32>
    %c0_4 = arith.constant 0 : index
    %c0_5 = arith.constant 0 : index
    %4 = vector.load %arg3[%c0_4, %c0_5] : memref<1x512xf32, #tpu.memory_space<vmem>>, vector<1x512xf32>
    %5 = vector.broadcast %4 : vector<1x512xf32> to vector<64x512xf32>
    %6 = arith.addf %3, %5 : vector<64x512xf32>
    %7 = vector.shape_cast %6 : vector<64x512xf32> to vector<8x8x512xf32>
    %c0_6 = arith.constant 0 : index
    %c0_7 = arith.constant 0 : index
    %c0_8 = arith.constant 0 : index
    %8 = vector.load %arg8[%c0_6, %c0_7, %c0_8] : memref<8x8x512xf32, #tpu.memory_space<vmem>>, vector<8x8x512xf32>
    tpu.vector_store %arg8[%c0_6, %c0_7, %c0_8], %7 {strides = array<i32>} : memref<8x8x512xf32, #tpu.memory_space<vmem>>, vector<8x8x512xf32>,
    %c0_i32 = arith.constant 0 : i32
    %9 = arith.cmpi eq, %arg0, %c0_i32 : i32
    %10 = arith.extui %9 : i1 to i32
    %c0_i32_9 = arith.constant 0 : i32
    %11 = arith.cmpi ne, %10, %c0_i32_9 : i32
    scf.if %11 {
      %cst_120 = arith.constant 0.000000e+00 : f32
      %324 = vector.broadcast %cst_120 : f32 to vector<8x128xf32>
      %c0_121 = arith.constant 0 : index
      %c0_122 = arith.constant 0 : index
      %325 = vector.load %arg6[%c0_121, %c0_122] : memref<8x128xf32, #tpu.memory_space<vmem>>, vector<8x128xf32>
      tpu.vector_store %arg6[%c0_121, %c0_122], %324 {strides = array<i32>} : memref<8x128xf32, #tpu.memory_space<vmem>>, vector<8x128xf32>,
      %cst_123 = arith.constant 0.000000e+00 : f32
      %326 = vector.broadcast %cst_123 : f32 to vector<8x128xf32>
      %c0_124 = arith.constant 0 : index
      %c0_125 = arith.constant 0 : index
      %327 = vector.load %arg7[%c0_124, %c0_125] : memref<8x128xf32, #tpu.memory_space<vmem>>, vector<8x128xf32>
      tpu.vector_store %arg7[%c0_124, %c0_125], %326 {strides = array<i32>} : memref<8x128xf32, #tpu.memory_space<vmem>>, vector<8x128xf32>,
    } else {
    }
    %c0_10 = arith.constant 0 : index
    %c0_11 = arith.constant 0 : index
    %12 = vector.load %arg4[%c0_10, %c0_11] : memref<128x512xf32, #tpu.memory_space<vmem>>, vector<128x128xf32>
    %c0_12 = arith.constant 0 : index
    %c128 = arith.constant 128 : index
    %13 = vector.load %arg4[%c0_12, %c128] : memref<128x512xf32, #tpu.memory_space<vmem>>, vector<128x128xf32>
    %c0_13 = arith.constant 0 : index
    %c256 = arith.constant 256 : index
    %14 = vector.load %arg4[%c0_13, %c256] : memref<128x512xf32, #tpu.memory_space<vmem>>, vector<128x128xf32>
    %c0_14 = arith.constant 0 : index
    %c384 = arith.constant 384 : index
    %15 = vector.load %arg4[%c0_14, %c384] : memref<128x512xf32, #tpu.memory_space<vmem>>, vector<128x128xf32>
    %c0_15 = arith.constant 0 : index
    %c0_16 = arith.constant 0 : index
    %16 = vector.load %arg6[%c0_15, %c0_16] : memref<8x128xf32, #tpu.memory_space<vmem>>, vector<8x128xf32>
    %c0_17 = arith.constant 0 : index
    %c0_18 = arith.constant 0 : index
    %17 = vector.load %arg7[%c0_17, %c0_18] : memref<8x128xf32, #tpu.memory_space<vmem>>, vector<8x128xf32>
    %c0_19 = arith.constant 0 : index
    %c0_20 = arith.constant 0 : index
    %c0_21 = arith.constant 0 : index
    %18 = vector.load %arg8[%c0_19, %c0_20, %c0_21] : memref<8x8x512xf32, #tpu.memory_space<vmem>>, vector<1x8x512xf32>
    %19 = vector.shape_cast %18 : vector<1x8x512xf32> to vector<8x512xf32>
    %20 = vector.extract_strided_slice %19 {offsets = [0, 0], sizes = [8, 128], strides = [1, 1]} : vector<8x512xf32> to vector<8x128xf32>
    %cst_22 = arith.constant dense<0.000000e+00> : vector<8x128xf32>
    %21 = tpu.matmul %16, %12, %cst_22 {dimension_numbers = #tpu.dot_dimension_numbers<[1], [0], [0], [1], [0, 0, 1, 1], [], []>} : vector<8x128xf32>, vector<128x128xf32>, vector<8x128xf32> -> vector<8x128xf32>
    %22 = arith.addf %20, %21 : vector<8x128xf32>
    %23 = arith.negf %22 : vector<8x128xf32>
    %24 = math.exp %23 : vector<8x128xf32>
    %cst_23 = arith.constant 1.000000e+00 : f32
    %25 = vector.broadcast %cst_23 : f32 to vector<8x128xf32>
    %26 = arith.addf %25, %24 : vector<8x128xf32>
    %27 = arith.divf %25, %26 : vector<8x128xf32>
    %28 = vector.extract_strided_slice %19 {offsets = [0, 128], sizes = [8, 128], strides = [1, 1]} : vector<8x512xf32> to vector<8x128xf32>
    %cst_24 = arith.constant dense<0.000000e+00> : vector<8x128xf32>
    %29 = tpu.matmul %16, %13, %cst_24 {dimension_numbers = #tpu.dot_dimension_numbers<[1], [0], [0], [1], [0, 0, 1, 1], [], []>} : vector<8x128xf32>, vector<128x128xf32>, vector<8x128xf32> -> vector<8x128xf32>
    %30 = arith.addf %28, %29 : vector<8x128xf32>
    %31 = arith.negf %30 : vector<8x128xf32>
    %32 = math.exp %31 : vector<8x128xf32>
    %cst_25 = arith.constant 1.000000e+00 : f32
    %33 = vector.broadcast %cst_25 : f32 to vector<8x128xf32>
    %34 = arith.addf %33, %32 : vector<8x128xf32>
    %35 = arith.divf %33, %34 : vector<8x128xf32>
    %36 = vector.extract_strided_slice %19 {offsets = [0, 256], sizes = [8, 128], strides = [1, 1]} : vector<8x512xf32> to vector<8x128xf32>
    %cst_26 = arith.constant dense<0.000000e+00> : vector<8x128xf32>
    %37 = tpu.matmul %16, %14, %cst_26 {dimension_numbers = #tpu.dot_dimension_numbers<[1], [0], [0], [1], [0, 0, 1, 1], [], []>} : vector<8x128xf32>, vector<128x128xf32>, vector<8x128xf32> -> vector<8x128xf32>
    %38 = arith.addf %36, %37 : vector<8x128xf32>
    %39 = math.tanh %38 : vector<8x128xf32>
    %40 = vector.extract_strided_slice %19 {offsets = [0, 384], sizes = [8, 128], strides = [1, 1]} : vector<8x512xf32> to vector<8x128xf32>
    %cst_27 = arith.constant dense<0.000000e+00> : vector<8x128xf32>
    %41 = tpu.matmul %16, %15, %cst_27 {dimension_numbers = #tpu.dot_dimension_numbers<[1], [0], [0], [1], [0, 0, 1, 1], [], []>} : vector<8x128xf32>, vector<128x128xf32>, vector<8x128xf32> -> vector<8x128xf32>
    %42 = arith.addf %40, %41 : vector<8x128xf32>
    %43 = arith.negf %42 : vector<8x128xf32>
    %44 = math.exp %43 : vector<8x128xf32>
    %cst_28 = arith.constant 1.000000e+00 : f32
    %45 = vector.broadcast %cst_28 : f32 to vector<8x128xf32>
    %46 = arith.addf %45, %44 : vector<8x128xf32>
    %47 = arith.divf %45, %46 : vector<8x128xf32>
    %48 = arith.mulf %35, %17 : vector<8x128xf32>
    %49 = arith.mulf %27, %39 : vector<8x128xf32>
    %50 = arith.addf %48, %49 : vector<8x128xf32>
    %51 = math.tanh %50 : vector<8x128xf32>
    %52 = arith.mulf %47, %51 : vector<8x128xf32>
    %c0_29 = arith.constant 0 : index
    %c0_30 = arith.constant 0 : index
    %c0_31 = arith.constant 0 : index
    %53 = vector.load %arg5[%c0_29, %c0_30, %c0_31] : memref<8x8x128xf32, #tpu.memory_space<vmem>>, vector<1x8x128xf32>
    %54 = vector.shape_cast %53 : vector<1x8x128xf32> to vector<8x128xf32>
    %55 = vector.shape_cast %52 : vector<8x128xf32> to vector<1x8x128xf32>
    tpu.vector_store %arg5[%c0_29, %c0_30, %c0_31], %55 {strides = array<i32>} : memref<8x8x128xf32, #tpu.memory_space<vmem>>, vector<1x8x128xf32>,
    %c1 = arith.constant 1 : index
    %c0_32 = arith.constant 0 : index
    %c0_33 = arith.constant 0 : index
    %56 = vector.load %arg8[%c1, %c0_32, %c0_33] : memref<8x8x512xf32, #tpu.memory_space<vmem>>, vector<1x8x512xf32>
    %57 = vector.shape_cast %56 : vector<1x8x512xf32> to vector<8x512xf32>
    %58 = vector.extract_strided_slice %57 {offsets = [0, 0], sizes = [8, 128], strides = [1, 1]} : vector<8x512xf32> to vector<8x128xf32>
    %cst_34 = arith.constant dense<0.000000e+00> : vector<8x128xf32>
    %59 = tpu.matmul %52, %12, %cst_34 {dimension_numbers = #tpu.dot_dimension_numbers<[1], [0], [0], [1], [0, 0, 1, 1], [], []>} : vector<8x128xf32>, vector<128x128xf32>, vector<8x128xf32> -> vector<8x128xf32>
    %60 = arith.addf %58, %59 : vector<8x128xf32>
    %61 = arith.negf %60 : vector<8x128xf32>
    %62 = math.exp %61 : vector<8x128xf32>
    %cst_35 = arith.constant 1.000000e+00 : f32
    %63 = vector.broadcast %cst_35 : f32 to vector<8x128xf32>
    %64 = arith.addf %63, %62 : vector<8x128xf32>
    %65 = arith.divf %63, %64 : vector<8x128xf32>
    %66 = vector.extract_strided_slice %57 {offsets = [0, 128], sizes = [8, 128], strides = [1, 1]} : vector<8x512xf32> to vector<8x128xf32>
    %cst_36 = arith.constant dense<0.000000e+00> : vector<8x128xf32>
    %67 = tpu.matmul %52, %13, %cst_36 {dimension_numbers = #tpu.dot_dimension_numbers<[1], [0], [0], [1], [0, 0, 1, 1], [], []>} : vector<8x128xf32>, vector<128x128xf32>, vector<8x128xf32> -> vector<8x128xf32>
    %68 = arith.addf %66, %67 : vector<8x128xf32>
    %69 = arith.negf %68 : vector<8x128xf32>
    %70 = math.exp %69 : vector<8x128xf32>
    %cst_37 = arith.constant 1.000000e+00 : f32
    %71 = vector.broadcast %cst_37 : f32 to vector<8x128xf32>
    %72 = arith.addf %71, %70 : vector<8x128xf32>
    %73 = arith.divf %71, %72 : vector<8x128xf32>
    %74 = vector.extract_strided_slice %57 {offsets = [0, 256], sizes = [8, 128], strides = [1, 1]} : vector<8x512xf32> to vector<8x128xf32>
    %cst_38 = arith.constant dense<0.000000e+00> : vector<8x128xf32>
    %75 = tpu.matmul %52, %14, %cst_38 {dimension_numbers = #tpu.dot_dimension_numbers<[1], [0], [0], [1], [0, 0, 1, 1], [], []>} : vector<8x128xf32>, vector<128x128xf32>, vector<8x128xf32> -> vector<8x128xf32>
    %76 = arith.addf %74, %75 : vector<8x128xf32>
    %77 = math.tanh %76 : vector<8x128xf32>
    %78 = vector.extract_strided_slice %57 {offsets = [0, 384], sizes = [8, 128], strides = [1, 1]} : vector<8x512xf32> to vector<8x128xf32>
    %cst_39 = arith.constant dense<0.000000e+00> : vector<8x128xf32>
    %79 = tpu.matmul %52, %15, %cst_39 {dimension_numbers = #tpu.dot_dimension_numbers<[1], [0], [0], [1], [0, 0, 1, 1], [], []>} : vector<8x128xf32>, vector<128x128xf32>, vector<8x128xf32> -> vector<8x128xf32>
    %80 = arith.addf %78, %79 : vector<8x128xf32>
    %81 = arith.negf %80 : vector<8x128xf32>
    %82 = math.exp %81 : vector<8x128xf32>
    %cst_40 = arith.constant 1.000000e+00 : f32
    %83 = vector.broadcast %cst_40 : f32 to vector<8x128xf32>
    %84 = arith.addf %83, %82 : vector<8x128xf32>
    %85 = arith.divf %83, %84 : vector<8x128xf32>
    %86 = arith.mulf %73, %50 : vector<8x128xf32>
    %87 = arith.mulf %65, %77 : vector<8x128xf32>
    %88 = arith.addf %86, %87 : vector<8x128xf32>
    %89 = math.tanh %88 : vector<8x128xf32>
    %90 = arith.mulf %85, %89 : vector<8x128xf32>
    %c1_41 = arith.constant 1 : index
    %c0_42 = arith.constant 0 : index
    %c0_43 = arith.constant 0 : index
    %91 = vector.load %arg5[%c1_41, %c0_42, %c0_43] : memref<8x8x128xf32, #tpu.memory_space<vmem>>, vector<1x8x128xf32>
    %92 = vector.shape_cast %91 : vector<1x8x128xf32> to vector<8x128xf32>
    %93 = vector.shape_cast %90 : vector<8x128xf32> to vector<1x8x128xf32>
    tpu.vector_store %arg5[%c1_41, %c0_42, %c0_43], %93 {strides = array<i32>} : memref<8x8x128xf32, #tpu.memory_space<vmem>>, vector<1x8x128xf32>,
    %c2 = arith.constant 2 : index
    %c0_44 = arith.constant 0 : index
    %c0_45 = arith.constant 0 : index
    %94 = vector.load %arg8[%c2, %c0_44, %c0_45] : memref<8x8x512xf32, #tpu.memory_space<vmem>>, vector<1x8x512xf32>
    %95 = vector.shape_cast %94 : vector<1x8x512xf32> to vector<8x512xf32>
    %96 = vector.extract_strided_slice %95 {offsets = [0, 0], sizes = [8, 128], strides = [1, 1]} : vector<8x512xf32> to vector<8x128xf32>
    %cst_46 = arith.constant dense<0.000000e+00> : vector<8x128xf32>
    %97 = tpu.matmul %90, %12, %cst_46 {dimension_numbers = #tpu.dot_dimension_numbers<[1], [0], [0], [1], [0, 0, 1, 1], [], []>} : vector<8x128xf32>, vector<128x128xf32>, vector<8x128xf32> -> vector<8x128xf32>
    %98 = arith.addf %96, %97 : vector<8x128xf32>
    %99 = arith.negf %98 : vector<8x128xf32>
    %100 = math.exp %99 : vector<8x128xf32>
    %cst_47 = arith.constant 1.000000e+00 : f32
    %101 = vector.broadcast %cst_47 : f32 to vector<8x128xf32>
    %102 = arith.addf %101, %100 : vector<8x128xf32>
    %103 = arith.divf %101, %102 : vector<8x128xf32>
    %104 = vector.extract_strided_slice %95 {offsets = [0, 128], sizes = [8, 128], strides = [1, 1]} : vector<8x512xf32> to vector<8x128xf32>
    %cst_48 = arith.constant dense<0.000000e+00> : vector<8x128xf32>
    %105 = tpu.matmul %90, %13, %cst_48 {dimension_numbers = #tpu.dot_dimension_numbers<[1], [0], [0], [1], [0, 0, 1, 1], [], []>} : vector<8x128xf32>, vector<128x128xf32>, vector<8x128xf32> -> vector<8x128xf32>
    %106 = arith.addf %104, %105 : vector<8x128xf32>
    %107 = arith.negf %106 : vector<8x128xf32>
    %108 = math.exp %107 : vector<8x128xf32>
    %cst_49 = arith.constant 1.000000e+00 : f32
    %109 = vector.broadcast %cst_49 : f32 to vector<8x128xf32>
    %110 = arith.addf %109, %108 : vector<8x128xf32>
    %111 = arith.divf %109, %110 : vector<8x128xf32>
    %112 = vector.extract_strided_slice %95 {offsets = [0, 256], sizes = [8, 128], strides = [1, 1]} : vector<8x512xf32> to vector<8x128xf32>
    %cst_50 = arith.constant dense<0.000000e+00> : vector<8x128xf32>
    %113 = tpu.matmul %90, %14, %cst_50 {dimension_numbers = #tpu.dot_dimension_numbers<[1], [0], [0], [1], [0, 0, 1, 1], [], []>} : vector<8x128xf32>, vector<128x128xf32>, vector<8x128xf32> -> vector<8x128xf32>
    %114 = arith.addf %112, %113 : vector<8x128xf32>
    %115 = math.tanh %114 : vector<8x128xf32>
    %116 = vector.extract_strided_slice %95 {offsets = [0, 384], sizes = [8, 128], strides = [1, 1]} : vector<8x512xf32> to vector<8x128xf32>
    %cst_51 = arith.constant dense<0.000000e+00> : vector<8x128xf32>
    %117 = tpu.matmul %90, %15, %cst_51 {dimension_numbers = #tpu.dot_dimension_numbers<[1], [0], [0], [1], [0, 0, 1, 1], [], []>} : vector<8x128xf32>, vector<128x128xf32>, vector<8x128xf32> -> vector<8x128xf32>
    %118 = arith.addf %116, %117 : vector<8x128xf32>
    %119 = arith.negf %118 : vector<8x128xf32>
    %120 = math.exp %119 : vector<8x128xf32>
    %cst_52 = arith.constant 1.000000e+00 : f32
    %121 = vector.broadcast %cst_52 : f32 to vector<8x128xf32>
    %122 = arith.addf %121, %120 : vector<8x128xf32>
    %123 = arith.divf %121, %122 : vector<8x128xf32>
    %124 = arith.mulf %111, %88 : vector<8x128xf32>
    %125 = arith.mulf %103, %115 : vector<8x128xf32>
    %126 = arith.addf %124, %125 : vector<8x128xf32>
    %127 = math.tanh %126 : vector<8x128xf32>
    %128 = arith.mulf %123, %127 : vector<8x128xf32>
    %c2_53 = arith.constant 2 : index
    %c0_54 = arith.constant 0 : index
    %c0_55 = arith.constant 0 : index
    %129 = vector.load %arg5[%c2_53, %c0_54, %c0_55] : memref<8x8x128xf32, #tpu.memory_space<vmem>>, vector<1x8x128xf32>
    %130 = vector.shape_cast %129 : vector<1x8x128xf32> to vector<8x128xf32>
    %131 = vector.shape_cast %128 : vector<8x128xf32> to vector<1x8x128xf32>
    tpu.vector_store %arg5[%c2_53, %c0_54, %c0_55], %131 {strides = array<i32>} : memref<8x8x128xf32, #tpu.memory_space<vmem>>, vector<1x8x128xf32>,
    %c3 = arith.constant 3 : index
    %c0_56 = arith.constant 0 : index
    %c0_57 = arith.constant 0 : index
    %132 = vector.load %arg8[%c3, %c0_56, %c0_57] : memref<8x8x512xf32, #tpu.memory_space<vmem>>, vector<1x8x512xf32>
    %133 = vector.shape_cast %132 : vector<1x8x512xf32> to vector<8x512xf32>
    %134 = vector.extract_strided_slice %133 {offsets = [0, 0], sizes = [8, 128], strides = [1, 1]} : vector<8x512xf32> to vector<8x128xf32>
    %cst_58 = arith.constant dense<0.000000e+00> : vector<8x128xf32>
    %135 = tpu.matmul %128, %12, %cst_58 {dimension_numbers = #tpu.dot_dimension_numbers<[1], [0], [0], [1], [0, 0, 1, 1], [], []>} : vector<8x128xf32>, vector<128x128xf32>, vector<8x128xf32> -> vector<8x128xf32>
    %136 = arith.addf %134, %135 : vector<8x128xf32>
    %137 = arith.negf %136 : vector<8x128xf32>
    %138 = math.exp %137 : vector<8x128xf32>
    %cst_59 = arith.constant 1.000000e+00 : f32
    %139 = vector.broadcast %cst_59 : f32 to vector<8x128xf32>
    %140 = arith.addf %139, %138 : vector<8x128xf32>
    %141 = arith.divf %139, %140 : vector<8x128xf32>
    %142 = vector.extract_strided_slice %133 {offsets = [0, 128], sizes = [8, 128], strides = [1, 1]} : vector<8x512xf32> to vector<8x128xf32>
    %cst_60 = arith.constant dense<0.000000e+00> : vector<8x128xf32>
    %143 = tpu.matmul %128, %13, %cst_60 {dimension_numbers = #tpu.dot_dimension_numbers<[1], [0], [0], [1], [0, 0, 1, 1], [], []>} : vector<8x128xf32>, vector<128x128xf32>, vector<8x128xf32> -> vector<8x128xf32>
    %144 = arith.addf %142, %143 : vector<8x128xf32>
    %145 = arith.negf %144 : vector<8x128xf32>
    %146 = math.exp %145 : vector<8x128xf32>
    %cst_61 = arith.constant 1.000000e+00 : f32
    %147 = vector.broadcast %cst_61 : f32 to vector<8x128xf32>
    %148 = arith.addf %147, %146 : vector<8x128xf32>
    %149 = arith.divf %147, %148 : vector<8x128xf32>
    %150 = vector.extract_strided_slice %133 {offsets = [0, 256], sizes = [8, 128], strides = [1, 1]} : vector<8x512xf32> to vector<8x128xf32>
    %cst_62 = arith.constant dense<0.000000e+00> : vector<8x128xf32>
    %151 = tpu.matmul %128, %14, %cst_62 {dimension_numbers = #tpu.dot_dimension_numbers<[1], [0], [0], [1], [0, 0, 1, 1], [], []>} : vector<8x128xf32>, vector<128x128xf32>, vector<8x128xf32> -> vector<8x128xf32>
    %152 = arith.addf %150, %151 : vector<8x128xf32>
    %153 = math.tanh %152 : vector<8x128xf32>
    %154 = vector.extract_strided_slice %133 {offsets = [0, 384], sizes = [8, 128], strides = [1, 1]} : vector<8x512xf32> to vector<8x128xf32>
    %cst_63 = arith.constant dense<0.000000e+00> : vector<8x128xf32>
    %155 = tpu.matmul %128, %15, %cst_63 {dimension_numbers = #tpu.dot_dimension_numbers<[1], [0], [0], [1], [0, 0, 1, 1], [], []>} : vector<8x128xf32>, vector<128x128xf32>, vector<8x128xf32> -> vector<8x128xf32>
    %156 = arith.addf %154, %155 : vector<8x128xf32>
    %157 = arith.negf %156 : vector<8x128xf32>
    %158 = math.exp %157 : vector<8x128xf32>
    %cst_64 = arith.constant 1.000000e+00 : f32
    %159 = vector.broadcast %cst_64 : f32 to vector<8x128xf32>
    %160 = arith.addf %159, %158 : vector<8x128xf32>
    %161 = arith.divf %159, %160 : vector<8x128xf32>
    %162 = arith.mulf %149, %126 : vector<8x128xf32>
    %163 = arith.mulf %141, %153 : vector<8x128xf32>
    %164 = arith.addf %162, %163 : vector<8x128xf32>
    %165 = math.tanh %164 : vector<8x128xf32>
    %166 = arith.mulf %161, %165 : vector<8x128xf32>
    %c3_65 = arith.constant 3 : index
    %c0_66 = arith.constant 0 : index
    %c0_67 = arith.constant 0 : index
    %167 = vector.load %arg5[%c3_65, %c0_66, %c0_67] : memref<8x8x128xf32, #tpu.memory_space<vmem>>, vector<1x8x128xf32>
    %168 = vector.shape_cast %167 : vector<1x8x128xf32> to vector<8x128xf32>
    %169 = vector.shape_cast %166 : vector<8x128xf32> to vector<1x8x128xf32>
    tpu.vector_store %arg5[%c3_65, %c0_66, %c0_67], %169 {strides = array<i32>} : memref<8x8x128xf32, #tpu.memory_space<vmem>>, vector<1x8x128xf32>,
    %c4 = arith.constant 4 : index
    %c0_68 = arith.constant 0 : index
    %c0_69 = arith.constant 0 : index
    %170 = vector.load %arg8[%c4, %c0_68, %c0_69] : memref<8x8x512xf32, #tpu.memory_space<vmem>>, vector<1x8x512xf32>
    %171 = vector.shape_cast %170 : vector<1x8x512xf32> to vector<8x512xf32>
    %172 = vector.extract_strided_slice %171 {offsets = [0, 0], sizes = [8, 128], strides = [1, 1]} : vector<8x512xf32> to vector<8x128xf32>
    %cst_70 = arith.constant dense<0.000000e+00> : vector<8x128xf32>
    %173 = tpu.matmul %166, %12, %cst_70 {dimension_numbers = #tpu.dot_dimension_numbers<[1], [0], [0], [1], [0, 0, 1, 1], [], []>} : vector<8x128xf32>, vector<128x128xf32>, vector<8x128xf32> -> vector<8x128xf32>
    %174 = arith.addf %172, %173 : vector<8x128xf32>
    %175 = arith.negf %174 : vector<8x128xf32>
    %176 = math.exp %175 : vector<8x128xf32>
    %cst_71 = arith.constant 1.000000e+00 : f32
    %177 = vector.broadcast %cst_71 : f32 to vector<8x128xf32>
    %178 = arith.addf %177, %176 : vector<8x128xf32>
    %179 = arith.divf %177, %178 : vector<8x128xf32>
    %180 = vector.extract_strided_slice %171 {offsets = [0, 128], sizes = [8, 128], strides = [1, 1]} : vector<8x512xf32> to vector<8x128xf32>
    %cst_72 = arith.constant dense<0.000000e+00> : vector<8x128xf32>
    %181 = tpu.matmul %166, %13, %cst_72 {dimension_numbers = #tpu.dot_dimension_numbers<[1], [0], [0], [1], [0, 0, 1, 1], [], []>} : vector<8x128xf32>, vector<128x128xf32>, vector<8x128xf32> -> vector<8x128xf32>
    %182 = arith.addf %180, %181 : vector<8x128xf32>
    %183 = arith.negf %182 : vector<8x128xf32>
    %184 = math.exp %183 : vector<8x128xf32>
    %cst_73 = arith.constant 1.000000e+00 : f32
    %185 = vector.broadcast %cst_73 : f32 to vector<8x128xf32>
    %186 = arith.addf %185, %184 : vector<8x128xf32>
    %187 = arith.divf %185, %186 : vector<8x128xf32>
    %188 = vector.extract_strided_slice %171 {offsets = [0, 256], sizes = [8, 128], strides = [1, 1]} : vector<8x512xf32> to vector<8x128xf32>
    %cst_74 = arith.constant dense<0.000000e+00> : vector<8x128xf32>
    %189 = tpu.matmul %166, %14, %cst_74 {dimension_numbers = #tpu.dot_dimension_numbers<[1], [0], [0], [1], [0, 0, 1, 1], [], []>} : vector<8x128xf32>, vector<128x128xf32>, vector<8x128xf32> -> vector<8x128xf32>
    %190 = arith.addf %188, %189 : vector<8x128xf32>
    %191 = math.tanh %190 : vector<8x128xf32>
    %192 = vector.extract_strided_slice %171 {offsets = [0, 384], sizes = [8, 128], strides = [1, 1]} : vector<8x512xf32> to vector<8x128xf32>
    %cst_75 = arith.constant dense<0.000000e+00> : vector<8x128xf32>
    %193 = tpu.matmul %166, %15, %cst_75 {dimension_numbers = #tpu.dot_dimension_numbers<[1], [0], [0], [1], [0, 0, 1, 1], [], []>} : vector<8x128xf32>, vector<128x128xf32>, vector<8x128xf32> -> vector<8x128xf32>
    %194 = arith.addf %192, %193 : vector<8x128xf32>
    %195 = arith.negf %194 : vector<8x128xf32>
    %196 = math.exp %195 : vector<8x128xf32>
    %cst_76 = arith.constant 1.000000e+00 : f32
    %197 = vector.broadcast %cst_76 : f32 to vector<8x128xf32>
    %198 = arith.addf %197, %196 : vector<8x128xf32>
    %199 = arith.divf %197, %198 : vector<8x128xf32>
    %200 = arith.mulf %187, %164 : vector<8x128xf32>
    %201 = arith.mulf %179, %191 : vector<8x128xf32>
    %202 = arith.addf %200, %201 : vector<8x128xf32>
    %203 = math.tanh %202 : vector<8x128xf32>
    %204 = arith.mulf %199, %203 : vector<8x128xf32>
    %c4_77 = arith.constant 4 : index
    %c0_78 = arith.constant 0 : index
    %c0_79 = arith.constant 0 : index
    %205 = vector.load %arg5[%c4_77, %c0_78, %c0_79] : memref<8x8x128xf32, #tpu.memory_space<vmem>>, vector<1x8x128xf32>
    %206 = vector.shape_cast %205 : vector<1x8x128xf32> to vector<8x128xf32>
    %207 = vector.shape_cast %204 : vector<8x128xf32> to vector<1x8x128xf32>
    tpu.vector_store %arg5[%c4_77, %c0_78, %c0_79], %207 {strides = array<i32>} : memref<8x8x128xf32, #tpu.memory_space<vmem>>, vector<1x8x128xf32>,
    %c5 = arith.constant 5 : index
    %c0_80 = arith.constant 0 : index
    %c0_81 = arith.constant 0 : index
    %208 = vector.load %arg8[%c5, %c0_80, %c0_81] : memref<8x8x512xf32, #tpu.memory_space<vmem>>, vector<1x8x512xf32>
    %209 = vector.shape_cast %208 : vector<1x8x512xf32> to vector<8x512xf32>
    %210 = vector.extract_strided_slice %209 {offsets = [0, 0], sizes = [8, 128], strides = [1, 1]} : vector<8x512xf32> to vector<8x128xf32>
    %cst_82 = arith.constant dense<0.000000e+00> : vector<8x128xf32>
    %211 = tpu.matmul %204, %12, %cst_82 {dimension_numbers = #tpu.dot_dimension_numbers<[1], [0], [0], [1], [0, 0, 1, 1], [], []>} : vector<8x128xf32>, vector<128x128xf32>, vector<8x128xf32> -> vector<8x128xf32>
    %212 = arith.addf %210, %211 : vector<8x128xf32>
    %213 = arith.negf %212 : vector<8x128xf32>
    %214 = math.exp %213 : vector<8x128xf32>
    %cst_83 = arith.constant 1.000000e+00 : f32
    %215 = vector.broadcast %cst_83 : f32 to vector<8x128xf32>
    %216 = arith.addf %215, %214 : vector<8x128xf32>
    %217 = arith.divf %215, %216 : vector<8x128xf32>
    %218 = vector.extract_strided_slice %209 {offsets = [0, 128], sizes = [8, 128], strides = [1, 1]} : vector<8x512xf32> to vector<8x128xf32>
    %cst_84 = arith.constant dense<0.000000e+00> : vector<8x128xf32>
    %219 = tpu.matmul %204, %13, %cst_84 {dimension_numbers = #tpu.dot_dimension_numbers<[1], [0], [0], [1], [0, 0, 1, 1], [], []>} : vector<8x128xf32>, vector<128x128xf32>, vector<8x128xf32> -> vector<8x128xf32>
    %220 = arith.addf %218, %219 : vector<8x128xf32>
    %221 = arith.negf %220 : vector<8x128xf32>
    %222 = math.exp %221 : vector<8x128xf32>
    %cst_85 = arith.constant 1.000000e+00 : f32
    %223 = vector.broadcast %cst_85 : f32 to vector<8x128xf32>
    %224 = arith.addf %223, %222 : vector<8x128xf32>
    %225 = arith.divf %223, %224 : vector<8x128xf32>
    %226 = vector.extract_strided_slice %209 {offsets = [0, 256], sizes = [8, 128], strides = [1, 1]} : vector<8x512xf32> to vector<8x128xf32>
    %cst_86 = arith.constant dense<0.000000e+00> : vector<8x128xf32>
    %227 = tpu.matmul %204, %14, %cst_86 {dimension_numbers = #tpu.dot_dimension_numbers<[1], [0], [0], [1], [0, 0, 1, 1], [], []>} : vector<8x128xf32>, vector<128x128xf32>, vector<8x128xf32> -> vector<8x128xf32>
    %228 = arith.addf %226, %227 : vector<8x128xf32>
    %229 = math.tanh %228 : vector<8x128xf32>
    %230 = vector.extract_strided_slice %209 {offsets = [0, 384], sizes = [8, 128], strides = [1, 1]} : vector<8x512xf32> to vector<8x128xf32>
    %cst_87 = arith.constant dense<0.000000e+00> : vector<8x128xf32>
    %231 = tpu.matmul %204, %15, %cst_87 {dimension_numbers = #tpu.dot_dimension_numbers<[1], [0], [0], [1], [0, 0, 1, 1], [], []>} : vector<8x128xf32>, vector<128x128xf32>, vector<8x128xf32> -> vector<8x128xf32>
    %232 = arith.addf %230, %231 : vector<8x128xf32>
    %233 = arith.negf %232 : vector<8x128xf32>
    %234 = math.exp %233 : vector<8x128xf32>
    %cst_88 = arith.constant 1.000000e+00 : f32
    %235 = vector.broadcast %cst_88 : f32 to vector<8x128xf32>
    %236 = arith.addf %235, %234 : vector<8x128xf32>
    %237 = arith.divf %235, %236 : vector<8x128xf32>
    %238 = arith.mulf %225, %202 : vector<8x128xf32>
    %239 = arith.mulf %217, %229 : vector<8x128xf32>
    %240 = arith.addf %238, %239 : vector<8x128xf32>
    %241 = math.tanh %240 : vector<8x128xf32>
    %242 = arith.mulf %237, %241 : vector<8x128xf32>
    %c5_89 = arith.constant 5 : index
    %c0_90 = arith.constant 0 : index
    %c0_91 = arith.constant 0 : index
    %243 = vector.load %arg5[%c5_89, %c0_90, %c0_91] : memref<8x8x128xf32, #tpu.memory_space<vmem>>, vector<1x8x128xf32>
    %244 = vector.shape_cast %243 : vector<1x8x128xf32> to vector<8x128xf32>
    %245 = vector.shape_cast %242 : vector<8x128xf32> to vector<1x8x128xf32>
    tpu.vector_store %arg5[%c5_89, %c0_90, %c0_91], %245 {strides = array<i32>} : memref<8x8x128xf32, #tpu.memory_space<vmem>>, vector<1x8x128xf32>,
    %c6 = arith.constant 6 : index
    %c0_92 = arith.constant 0 : index
    %c0_93 = arith.constant 0 : index
    %246 = vector.load %arg8[%c6, %c0_92, %c0_93] : memref<8x8x512xf32, #tpu.memory_space<vmem>>, vector<1x8x512xf32>
    %247 = vector.shape_cast %246 : vector<1x8x512xf32> to vector<8x512xf32>
    %248 = vector.extract_strided_slice %247 {offsets = [0, 0], sizes = [8, 128], strides = [1, 1]} : vector<8x512xf32> to vector<8x128xf32>
    %cst_94 = arith.constant dense<0.000000e+00> : vector<8x128xf32>
    %249 = tpu.matmul %242, %12, %cst_94 {dimension_numbers = #tpu.dot_dimension_numbers<[1], [0], [0], [1], [0, 0, 1, 1], [], []>} : vector<8x128xf32>, vector<128x128xf32>, vector<8x128xf32> -> vector<8x128xf32>
    %250 = arith.addf %248, %249 : vector<8x128xf32>
    %251 = arith.negf %250 : vector<8x128xf32>
    %252 = math.exp %251 : vector<8x128xf32>
    %cst_95 = arith.constant 1.000000e+00 : f32
    %253 = vector.broadcast %cst_95 : f32 to vector<8x128xf32>
    %254 = arith.addf %253, %252 : vector<8x128xf32>
    %255 = arith.divf %253, %254 : vector<8x128xf32>
    %256 = vector.extract_strided_slice %247 {offsets = [0, 128], sizes = [8, 128], strides = [1, 1]} : vector<8x512xf32> to vector<8x128xf32>
    %cst_96 = arith.constant dense<0.000000e+00> : vector<8x128xf32>
    %257 = tpu.matmul %242, %13, %cst_96 {dimension_numbers = #tpu.dot_dimension_numbers<[1], [0], [0], [1], [0, 0, 1, 1], [], []>} : vector<8x128xf32>, vector<128x128xf32>, vector<8x128xf32> -> vector<8x128xf32>
    %258 = arith.addf %256, %257 : vector<8x128xf32>
    %259 = arith.negf %258 : vector<8x128xf32>
    %260 = math.exp %259 : vector<8x128xf32>
    %cst_97 = arith.constant 1.000000e+00 : f32
    %261 = vector.broadcast %cst_97 : f32 to vector<8x128xf32>
    %262 = arith.addf %261, %260 : vector<8x128xf32>
    %263 = arith.divf %261, %262 : vector<8x128xf32>
    %264 = vector.extract_strided_slice %247 {offsets = [0, 256], sizes = [8, 128], strides = [1, 1]} : vector<8x512xf32> to vector<8x128xf32>
    %cst_98 = arith.constant dense<0.000000e+00> : vector<8x128xf32>
    %265 = tpu.matmul %242, %14, %cst_98 {dimension_numbers = #tpu.dot_dimension_numbers<[1], [0], [0], [1], [0, 0, 1, 1], [], []>} : vector<8x128xf32>, vector<128x128xf32>, vector<8x128xf32> -> vector<8x128xf32>
    %266 = arith.addf %264, %265 : vector<8x128xf32>
    %267 = math.tanh %266 : vector<8x128xf32>
    %268 = vector.extract_strided_slice %247 {offsets = [0, 384], sizes = [8, 128], strides = [1, 1]} : vector<8x512xf32> to vector<8x128xf32>
    %cst_99 = arith.constant dense<0.000000e+00> : vector<8x128xf32>
    %269 = tpu.matmul %242, %15, %cst_99 {dimension_numbers = #tpu.dot_dimension_numbers<[1], [0], [0], [1], [0, 0, 1, 1], [], []>} : vector<8x128xf32>, vector<128x128xf32>, vector<8x128xf32> -> vector<8x128xf32>
    %270 = arith.addf %268, %269 : vector<8x128xf32>
    %271 = arith.negf %270 : vector<8x128xf32>
    %272 = math.exp %271 : vector<8x128xf32>
    %cst_100 = arith.constant 1.000000e+00 : f32
    %273 = vector.broadcast %cst_100 : f32 to vector<8x128xf32>
    %274 = arith.addf %273, %272 : vector<8x128xf32>
    %275 = arith.divf %273, %274 : vector<8x128xf32>
    %276 = arith.mulf %263, %240 : vector<8x128xf32>
    %277 = arith.mulf %255, %267 : vector<8x128xf32>
    %278 = arith.addf %276, %277 : vector<8x128xf32>
    %279 = math.tanh %278 : vector<8x128xf32>
    %280 = arith.mulf %275, %279 : vector<8x128xf32>
    %c6_101 = arith.constant 6 : index
    %c0_102 = arith.constant 0 : index
    %c0_103 = arith.constant 0 : index
    %281 = vector.load %arg5[%c6_101, %c0_102, %c0_103] : memref<8x8x128xf32, #tpu.memory_space<vmem>>, vector<1x8x128xf32>
    %282 = vector.shape_cast %281 : vector<1x8x128xf32> to vector<8x128xf32>
    %283 = vector.shape_cast %280 : vector<8x128xf32> to vector<1x8x128xf32>
    tpu.vector_store %arg5[%c6_101, %c0_102, %c0_103], %283 {strides = array<i32>} : memref<8x8x128xf32, #tpu.memory_space<vmem>>, vector<1x8x128xf32>,
    %c7 = arith.constant 7 : index
    %c0_104 = arith.constant 0 : index
    %c0_105 = arith.constant 0 : index
    %284 = vector.load %arg8[%c7, %c0_104, %c0_105] : memref<8x8x512xf32, #tpu.memory_space<vmem>>, vector<1x8x512xf32>
    %285 = vector.shape_cast %284 : vector<1x8x512xf32> to vector<8x512xf32>
    %286 = vector.extract_strided_slice %285 {offsets = [0, 0], sizes = [8, 128], strides = [1, 1]} : vector<8x512xf32> to vector<8x128xf32>
    %cst_106 = arith.constant dense<0.000000e+00> : vector<8x128xf32>
    %287 = tpu.matmul %280, %12, %cst_106 {dimension_numbers = #tpu.dot_dimension_numbers<[1], [0], [0], [1], [0, 0, 1, 1], [], []>} : vector<8x128xf32>, vector<128x128xf32>, vector<8x128xf32> -> vector<8x128xf32>
    %288 = arith.addf %286, %287 : vector<8x128xf32>
    %289 = arith.negf %288 : vector<8x128xf32>
    %290 = math.exp %289 : vector<8x128xf32>
    %cst_107 = arith.constant 1.000000e+00 : f32
    %291 = vector.broadcast %cst_107 : f32 to vector<8x128xf32>
    %292 = arith.addf %291, %290 : vector<8x128xf32>
    %293 = arith.divf %291, %292 : vector<8x128xf32>
    %294 = vector.extract_strided_slice %285 {offsets = [0, 128], sizes = [8, 128], strides = [1, 1]} : vector<8x512xf32> to vector<8x128xf32>
    %cst_108 = arith.constant dense<0.000000e+00> : vector<8x128xf32>
    %295 = tpu.matmul %280, %13, %cst_108 {dimension_numbers = #tpu.dot_dimension_numbers<[1], [0], [0], [1], [0, 0, 1, 1], [], []>} : vector<8x128xf32>, vector<128x128xf32>, vector<8x128xf32> -> vector<8x128xf32>
    %296 = arith.addf %294, %295 : vector<8x128xf32>
    %297 = arith.negf %296 : vector<8x128xf32>
    %298 = math.exp %297 : vector<8x128xf32>
    %cst_109 = arith.constant 1.000000e+00 : f32
    %299 = vector.broadcast %cst_109 : f32 to vector<8x128xf32>
    %300 = arith.addf %299, %298 : vector<8x128xf32>
    %301 = arith.divf %299, %300 : vector<8x128xf32>
    %302 = vector.extract_strided_slice %285 {offsets = [0, 256], sizes = [8, 128], strides = [1, 1]} : vector<8x512xf32> to vector<8x128xf32>
    %cst_110 = arith.constant dense<0.000000e+00> : vector<8x128xf32>
    %303 = tpu.matmul %280, %14, %cst_110 {dimension_numbers = #tpu.dot_dimension_numbers<[1], [0], [0], [1], [0, 0, 1, 1], [], []>} : vector<8x128xf32>, vector<128x128xf32>, vector<8x128xf32> -> vector<8x128xf32>
    %304 = arith.addf %302, %303 : vector<8x128xf32>
    %305 = math.tanh %304 : vector<8x128xf32>
    %306 = vector.extract_strided_slice %285 {offsets = [0, 384], sizes = [8, 128], strides = [1, 1]} : vector<8x512xf32> to vector<8x128xf32>
    %cst_111 = arith.constant dense<0.000000e+00> : vector<8x128xf32>
    %307 = tpu.matmul %280, %15, %cst_111 {dimension_numbers = #tpu.dot_dimension_numbers<[1], [0], [0], [1], [0, 0, 1, 1], [], []>} : vector<8x128xf32>, vector<128x128xf32>, vector<8x128xf32> -> vector<8x128xf32>
    %308 = arith.addf %306, %307 : vector<8x128xf32>
    %309 = arith.negf %308 : vector<8x128xf32>
    %310 = math.exp %309 : vector<8x128xf32>
    %cst_112 = arith.constant 1.000000e+00 : f32
    %311 = vector.broadcast %cst_112 : f32 to vector<8x128xf32>
    %312 = arith.addf %311, %310 : vector<8x128xf32>
    %313 = arith.divf %311, %312 : vector<8x128xf32>
    %314 = arith.mulf %301, %278 : vector<8x128xf32>
    %315 = arith.mulf %293, %305 : vector<8x128xf32>
    %316 = arith.addf %314, %315 : vector<8x128xf32>
    %317 = math.tanh %316 : vector<8x128xf32>
    %318 = arith.mulf %313, %317 : vector<8x128xf32>
    %c7_113 = arith.constant 7 : index
    %c0_114 = arith.constant 0 : index
    %c0_115 = arith.constant 0 : index
    %319 = vector.load %arg5[%c7_113, %c0_114, %c0_115] : memref<8x8x128xf32, #tpu.memory_space<vmem>>, vector<1x8x128xf32>
    %320 = vector.shape_cast %319 : vector<1x8x128xf32> to vector<8x128xf32>
    %321 = vector.shape_cast %318 : vector<8x128xf32> to vector<1x8x128xf32>
    tpu.vector_store %arg5[%c7_113, %c0_114, %c0_115], %321 {strides = array<i32>} : memref<8x8x128xf32, #tpu.memory_space<vmem>>, vector<1x8x128xf32>,
    %c0_116 = arith.constant 0 : index
    %c0_117 = arith.constant 0 : index
    %322 = vector.load %arg6[%c0_116, %c0_117] : memref<8x128xf32, #tpu.memory_space<vmem>>, vector<8x128xf32>
    tpu.vector_store %arg6[%c0_116, %c0_117], %318 {strides = array<i32>} : memref<8x128xf32, #tpu.memory_space<vmem>>, vector<8x128xf32>,
    %c0_118 = arith.constant 0 : index
    %c0_119 = arith.constant 0 : index
    %323 = vector.load %arg7[%c0_118, %c0_119] : memref<8x128xf32, #tpu.memory_space<vmem>>, vector<8x128xf32>
    tpu.vector_store %arg7[%c0_118, %c0_119], %316 {strides = array<i32>} : memref<8x128xf32, #tpu.memory_space<vmem>>, vector<8x128xf32>,
    return
  }
  func.func @transform_0(%arg0: i32) -> (i32, i32, i32) {
    %c0_i32 = arith.constant 0 : i32
    %c0_i32_0 = arith.constant 0 : i32
    %c0_i32_1 = arith.constant 0 : i32
    return %arg0, %c0_i32, %c0_i32_0 : i32, i32, i32
  }
  func.func @transform_1(%arg0: i32) -> (i32, i32) {
    %c0_i32 = arith.constant 0 : i32
    %c0_i32_0 = arith.constant 0 : i32
    %c0_i32_1 = arith.constant 0 : i32
    return %c0_i32, %c0_i32_0 : i32, i32
  }
  func.func @transform_2(%arg0: i32) -> (i32, i32) {
    %c0_i32 = arith.constant 0 : i32
    %c0_i32_0 = arith.constant 0 : i32
    %c0_i32_1 = arith.constant 0 : i32
    return %c0_i32, %c0_i32_0 : i32, i32
  }
  func.func @transform_3(%arg0: i32) -> (i32, i32) {
    %c0_i32 = arith.constant 0 : i32
    %c0_i32_0 = arith.constant 0 : i32
    %c0_i32_1 = arith.constant 0 : i32
    return %c0_i32, %c0_i32_0 : i32, i32
  }
  func.func @transform_4(%arg0: i32) -> (i32, i32, i32) {
    %c0_i32 = arith.constant 0 : i32
    %c0_i32_0 = arith.constant 0 : i32
    %c0_i32_1 = arith.constant 0 : i32
    return %arg0, %c0_i32, %c0_i32_0 : i32, i32, i32
  }
}

</mosaic_0001>

<bundles_post_ra>
// kernel: lstm_forward.2
= control target key start
LH: loop header
LB: loop body
LE: loop exit
PB: predicated region body
PF: predicated region fallthrough
CT: control target
= control target key end

     0   :  { %9 = vsyncpa [#allocation6], 0  ;;  %s6616_s0 = inlined_call_operand.vmem [shape: f32[8,8,128], index: 0, kind: input, shape index: {}]   ;;  %s6617_s1 = inlined_call_operand.hbm [shape: f32[128,512], index: 1, kind: input, shape index: {}]   ;;  %s6618_s2 = inlined_call_operand.vmem [shape: f32[1,512], index: 2, kind: input, shape index: {}]   ;;  %s6619_s3 = inlined_call_operand.hbm [shape: f32[128,512], index: 3, kind: input, shape index: {}]   ;;  %s6620_s4 = inlined_call_operand.vmem [shape: f32[8,8,128], index: 4, kind: output, shape index: {}]  }
   0x1   :  { %10 = vsyncpa [#allocation8], 0  ;;  %s5705_s15 = smov [#allocation5]   ;;  %s5657_s19 = scalar_lea.hbm %s6617_s1, 8192 }
   0x2   :  { %s18_s16 = sshll.u32 %s5705_s15, 4  ;;  %p5658_p0 = scmp.ne.s32.totalorder %s6617_s1, %s5657_s19  ;;  %s19_s16 = int_to_ptr.vmem [resolvable:$true] %s18_s16 }
   0x3   :  { %p5661_p1 = scmp.lt.u32.totalorder %s5657_s19, %s6617_s1 }
   0x5   :  { %p5663_p2 = pnand %p5661_p1, %p5658_p0 }
   0x7   :  { %5666 = shalt.err (!%p5663_p2)
}
   0x8   :  { %s5667_s24 = scalar_lea.vmem %s19_s16, 8192  ;;  %p5672_p4 = scmp.lt.s32.totalorder %s19_s16, %s19_s16 }
   0x9   :  { %p5668_p3 = scmp.ne.s32.totalorder %s19_s16, %s5667_s24  ;;  %p5673_p5 = scmp.lt.s32.totalorder %s5667_s24, %s5667_s24 }
   0xb   :  { %p5674_p6 = por %p5673_p5, %p5672_p4 }
   0xd   :  { %p5675_p7 = pnand %p5674_p6, %p5668_p3 }
   0xf   :  { %5678 = shalt.err (!%p5675_p7)
}
  0x10   :  { %s5706_s25 = smov 512   ;;  %s5707_s26 = smov 32  }
  0x11   :  { %24 = dma.hbm_to_vmem [thread:$0]  %s6617_s1, 8192, %s19_s16, [#allocation6], %s5706_s25, %s5706_s25, %s5707_s26  }
  0x12   :  { %s5708_s29 = smov [#allocation7]   ;;  %s5679_s7 = scalar_lea.hbm %s6619_s3, 8192 }
  0x13   :  { %s32_s30 = sshll.u32 %s5708_s29, 4  ;;  %p5680_p8 = scmp.ne.s32.totalorder %s6619_s3, %s5679_s7  ;;  %s33_s30 = int_to_ptr.vmem [resolvable:$true] %s32_s30 }
  0x14   :  { %p5683_p9 = scmp.lt.u32.totalorder %s5679_s7, %s6619_s3 }
  0x16   :  { %p5685_p10 = pnand %p5683_p9, %p5680_p8 }
  0x18   :  { %5688 = shalt.err (!%p5685_p10)
}
  0x19   :  { %s5689_s12 = scalar_lea.vmem %s33_s30, 8192  ;;  %p5694_p12 = scmp.lt.s32.totalorder %s33_s30, %s33_s30 }
  0x1a   :  { %p5690_p11 = scmp.ne.s32.totalorder %s33_s30, %s5689_s12  ;;  %p5695_p13 = scmp.lt.s32.totalorder %s5689_s12, %s5689_s12 }
  0x1c   :  { %p5696_p0 = por %p5695_p13, %p5694_p12 }
  0x1e   :  { %p5697_p1 = pnand %p5696_p0, %p5690_p11 }
  0x20   :  { %5700 = shalt.err (!%p5697_p1)
}
  0x21   :  { %38 = dma.hbm_to_vmem [thread:$0]  %s6619_s3, 8192, %s33_s30, [#allocation8], %s5706_s25, %s5706_s25, %s5707_s26  }
  0x22   :  { %5701 = dma.done.wait [#allocation6], 8192  }
  0x23   :  { %5702 = vsyncadd [#allocation6], 4294959104 }
  0x24   :  { %5703 = dma.done.wait [#allocation8], 8192  }
  0x25   :  { %5704 = vsyncadd [#allocation8], 4294959104  ;;  %v6621_v0 = vmov 0.0   ;;  %v54_v1 = vld [vmem:[#allocation5 + $0x8] sm:$0xff]  ;;  %v56_v3 = vld [vmem:[#allocation5 + $0x18] sm:$0xff]  ;;  %vm5711_vm0 = vmmov 0  }
  0x26   :  { %203 = vmatprep.mubr.f32.mxu0 %v6621_v0  ;;  %316 = vmatprep.mubr.f32.mxu1 %v6621_v0  ;;  %v58_v2 = vld [vmem:[#allocation5 + $0x28] sm:$0xff]  ;;  %v60_v5 = vld [vmem:[#allocation5 + $0x38] sm:$0xff]  ;;  %v53_v6 = vld [vmem:[#allocation5] sm:$0xff] }
  0x27   :  { %v4690_v4 = vpack.c.bf16 %v58_v2, %v54_v1  ;;  %v57_v7 = vld [vmem:[#allocation5 + $0x20] sm:$0xff]  ;;  %v4722_v8 = vpack.c.bf16 %v60_v5, %v56_v3  ;;  %v55_v10 = vld [vmem:[#allocation5 + $0x10] sm:$0xff]  ;;  %v62_v12 = vld [vmem:[#allocation5 + $0x48] sm:$0xff] }
  0x28   :  { %v4692_v9 = vpack.c.bf16 %v57_v7, %v53_v6  ;;  %v59_v11 = vld [vmem:[#allocation5 + $0x30] sm:$0xff]  ;;  %v66_v14 = vld [vmem:[#allocation5 + $0x68] sm:$0xff]  ;;  %v64_v15 = vld [vmem:[#allocation5 + $0x58] sm:$0xff] }
  0x29   :  { %4691 = vmatprep.subr.bf16.mxu0 %v4690_v4  ;;  %v4724_v13 = vpack.c.bf16 %v59_v11, %v55_v10  ;;  %v68_v16 = vld [vmem:[#allocation5 + $0x78] sm:$0xff]  ;;  %4723 = vmatprep.subr.bf16.mxu1 %v4722_v8  ;;  %v4694_v17 = vpack.c.bf16 %v66_v14, %v62_v12  ;;  %v61_v19 = vld [vmem:[#allocation5 + $0x40] sm:$0xff]  ;;  %v63_v21 = vld [vmem:[#allocation5 + $0x50] sm:$0xff] }
  0x2a   :  { %4693 = vmatpush1.bf16.msra.mxu0 %v4692_v9  ;;  %v4726_v18 = vpack.c.bf16 %v68_v16, %v64_v15  ;;  %v65_v20 = vld [vmem:[#allocation5 + $0x60] sm:$0xff]  ;;  %v67_v23 = vld [vmem:[#allocation5 + $0x70] sm:$0xff]  ;;  %v70_v24 = vld [vmem:[#allocation5 + $0x88] sm:$0xff] }
  0x2b   :  { %4725 = vmatpush1.bf16.msra.mxu1 %v4724_v13  ;;  %v4696_v22 = vpack.c.bf16 %v65_v20, %v61_v19  ;;  %v74_v25 = vld [vmem:[#allocation5 + $0xa8] sm:$0xff]  ;;  %4695 = vmatprep.subr.bf16.mxu0 %v4694_v17  ;;  %v4728_v26 = vpack.c.bf16 %v67_v23, %v63_v21  ;;  %v72_v28 = vld [vmem:[#allocation5 + $0x98] sm:$0xff]  ;;  %v69_v30 = vld [vmem:[#allocation5 + $0x80] sm:$0xff] }
  0x2c   :  { %4727 = vmatprep.subr.bf16.mxu1 %v4726_v18  ;;  %v4698_v27 = vpack.c.bf16 %v74_v25, %v70_v24  ;;  %v76_v29 = vld [vmem:[#allocation5 + $0xb8] sm:$0xff]  ;;  %v73_v32 = vld [vmem:[#allocation5 + $0xa0] sm:$0xff]  ;;  %v71_v33 = vld [vmem:[#allocation5 + $0x90] sm:$0xff] }
  0x2d   :  { %v4730_v31 = vpack.c.bf16 %v76_v29, %v72_v28  ;;  %v75_v34 = vld [vmem:[#allocation5 + $0xb0] sm:$0xff]  ;;  %v4700_v35 = vpack.c.bf16 %v73_v32, %v69_v30  ;;  %v78_v36 = vld [vmem:[#allocation5 + $0xc8] sm:$0xff]  ;;  %v80_v38 = vld [vmem:[#allocation5 + $0xd8] sm:$0xff] }
  0x2e   :  { %4697 = vmatpush1.bf16.msra.mxu0 %v4696_v22  ;;  %v82_v37 = vld [vmem:[#allocation5 + $0xe8] sm:$0xff]  ;;  %v4732_v39 = vpack.c.bf16 %v75_v34, %v71_v33  ;;  %v84_v41 = vld [vmem:[#allocation5 + $0xf8] sm:$0xff]  ;;  %v77_v42 = vld [vmem:[#allocation5 + $0xc0] sm:$0xff] }
  0x2f   :  { %4729 = vmatpush1.bf16.msra.mxu1 %v4728_v26  ;;  %4699 = vmatprep.subr.bf16.mxu0 %v4698_v27  ;;  %v4702_v40 = vpack.c.bf16 %v82_v37, %v78_v36  ;;  %v81_v43 = vld [vmem:[#allocation5 + $0xe0] sm:$0xff]  ;;  %v4734_v44 = vpack.c.bf16 %v84_v41, %v80_v38  ;;  %v79_v45 = vld [vmem:[#allocation5 + $0xd0] sm:$0xff]  ;;  %v86_v47 = vld [vmem:[#allocation5 + $0x108] sm:$0xff] }
  0x30   :  { %4731 = vmatprep.subr.bf16.mxu1 %v4730_v31  ;;  %v83_v46 = vld [vmem:[#allocation5 + $0xf0] sm:$0xff]  ;;  %v90_v48 = vld [vmem:[#allocation5 + $0x128] sm:$0xff]  ;;  %v88_v49 = vld [vmem:[#allocation5 + $0x118] sm:$0xff]  ;;  %v4704_v51 = vpack.c.bf16 %v81_v43, %v77_v42 }
  0x31   :  { %v92_v50 = vld [vmem:[#allocation5 + $0x138] sm:$0xff]  ;;  %v4736_v52 = vpack.c.bf16 %v83_v46, %v79_v45  ;;  %v4706_v53 = vpack.c.bf16 %v90_v48, %v86_v47  ;;  %v85_v54 = vld [vmem:[#allocation5 + $0x100] sm:$0xff]  ;;  %v87_v56 = vld [vmem:[#allocation5 + $0x110] sm:$0xff] }
  0x32   :  { %4701 = vmatpush1.bf16.msra.mxu0 %v4700_v35  ;;  %v89_v55 = vld [vmem:[#allocation5 + $0x120] sm:$0xff]  ;;  %v4738_v57 = vpack.c.bf16 %v92_v50, %v88_v49  ;;  %v91_v58 = vld [vmem:[#allocation5 + $0x130] sm:$0xff]  ;;  %v94_v59 = vld [vmem:[#allocation5 + $0x148] sm:$0xff] }
  0x33   :  { %4733 = vmatpush1.bf16.msra.mxu1 %v4732_v39  ;;  %4703 = vmatprep.subr.bf16.mxu0 %v4702_v40  ;;  %v98_v60 = vld [vmem:[#allocation5 + $0x168] sm:$0xff]  ;;  %v96_v61 = vld [vmem:[#allocation5 + $0x158] sm:$0xff]  ;;  %v4708_v63 = vpack.c.bf16 %v89_v55, %v85_v54  ;;  %v4740_v1 = vpack.c.bf16 %v91_v58, %v87_v56  ;;  %v93_v3 = vld [vmem:[#allocation5 + $0x140] sm:$0xff]  ;;  %v6623_v40 = vmov 0.0|0.0  }
  0x34   :  { %4735 = vmatprep.subr.bf16.mxu1 %v4734_v44  ;;  %v100_v62 = vld [vmem:[#allocation5 + $0x178] sm:$0xff]  ;;  %v4710_v2 = vpack.c.bf16 %v98_v60, %v94_v59  ;;  %v97_v4 = vld [vmem:[#allocation5 + $0x160] sm:$0xff]  ;;  %v95_v5 = vld [vmem:[#allocation5 + $0x150] sm:$0xff] }
  0x35   :  { %v4742_v6 = vpack.c.bf16 %v100_v62, %v96_v61  ;;  %v99_v7 = vld [vmem:[#allocation5 + $0x170] sm:$0xff]  ;;  %v102_v8 = vld [vmem:[#allocation5 + $0x188] sm:$0xff]  ;;  %v104_v10 = vld [vmem:[#allocation5 + $0x198] sm:$0xff]  ;;  %v4712_v12 = vpack.c.bf16 %v97_v4, %v93_v3 }
  0x36   :  { %4705 = vmatpush1.bf16.msra.mxu0 %v4704_v51  ;;  %v106_v9 = vld [vmem:[#allocation5 + $0x1a8] sm:$0xff]  ;;  %v108_v11 = vld [vmem:[#allocation5 + $0x1b8] sm:$0xff]  ;;  %v4744_v13 = vpack.c.bf16 %v99_v7, %v95_v5  ;;  %v101_v15 = vld [vmem:[#allocation5 + $0x180] sm:$0xff] }
  0x37   :  { %4737 = vmatpush1.bf16.msra.mxu1 %v4736_v52  ;;  %4707 = vmatprep.subr.bf16.mxu0 %v4706_v53  ;;  %v4714_v14 = vpack.c.bf16 %v106_v9, %v102_v8  ;;  %v105_v16 = vld [vmem:[#allocation5 + $0x1a0] sm:$0xff]  ;;  %v103_v17 = vld [vmem:[#allocation5 + $0x190] sm:$0xff]  ;;  %v4746_v18 = vpack.c.bf16 %v108_v11, %v104_v10  ;;  %v110_v20 = vld [vmem:[#allocation5 + $0x1c8] sm:$0xff] }
  0x38   :  { %4739 = vmatprep.subr.bf16.mxu1 %v4738_v57  ;;  %v107_v19 = vld [vmem:[#allocation5 + $0x1b0] sm:$0xff]  ;;  %v114_v21 = vld [vmem:[#allocation5 + $0x1e8] sm:$0xff]  ;;  %v112_v22 = vld [vmem:[#allocation5 + $0x1d8] sm:$0xff]  ;;  %v4716_v24 = vpack.c.bf16 %v105_v16, %v101_v15 }
  0x39   :  { %v116_v23 = vld [vmem:[#allocation5 + $0x1f8] sm:$0xff]  ;;  %v4748_v25 = vpack.c.bf16 %v107_v19, %v103_v17  ;;  %v4718_v26 = vpack.c.bf16 %v114_v21, %v110_v20  ;;  %v109_v27 = vld [vmem:[#allocation5 + $0x1c0] sm:$0xff]  ;;  %v111_v30 = vld [vmem:[#allocation5 + $0x1d0] sm:$0xff] }
  0x3a   :  { %4709 = vmatpush1.bf16.msra.mxu0 %v4708_v63  ;;  %v113_v28 = vld [vmem:[#allocation5 + $0x1e0] sm:$0xff]  ;;  %v4750_v29 = vpack.c.bf16 %v116_v23, %v112_v22  ;;  %v115_v31 = vld [vmem:[#allocation5 + $0x1f0] sm:$0xff]  ;;  %v419_v36 = vld [vmem:[#allocation7 + $0x8] sm:$0xff] }
  0x3b   :  { %4741 = vmatpush1.bf16.msra.mxu1 %v4740_v1  ;;  %4711 = vmatprep.subr.bf16.mxu0 %v4710_v2  ;;  %v4720_v32 = vpack.c.bf16 %v113_v28, %v109_v27  ;;  %v4752_v33 = vpack.c.bf16 %v115_v31, %v111_v30  ;;  %v403_v34 = vld [vmem:[#allocation7] sm:$0xff]  ;;  %v420_v37 = vld [vmem:[#allocation7 + $0x28] sm:$0xff]  ;;  %v47_v53 = vld [vmem:[%s6616_s0 + $0x10] sm:$0xff] }
  0x3c   :  { %4743 = vmatprep.subr.bf16.mxu1 %v4742_v6  ;;  %v404_v35 = vld [vmem:[#allocation7 + $0x20] sm:$0xff]  ;;  %v5769_v41 = vpack.c.bf16 %v420_v37, %v419_v36  ;;  %v421_v44 = vld [vmem:[#allocation7 + $0x48] sm:$0xff]  ;;  %v48_v60 = vld [vmem:[%s6616_s0 + $0x18] sm:$0xff] }
  0x3d   :  { %v45_v38 = vld [vmem:[%s6616_s0] sm:$0xff]  ;;  %v5766_v39 = vpack.c.bf16 %v404_v35, %v403_v34  ;;  %v422_v45 = vld [vmem:[#allocation7 + $0x68] sm:$0xff]  ;;  %v435_v28 = vld [vmem:[#allocation7 + $0x10] sm:$0xff] }
  0x3e   :  { %4713 = vmatpush1.bf16.msra.mxu0 %v4712_v12  ;;  %v405_v42 = vld [vmem:[#allocation7 + $0x40] sm:$0xff]  ;;  %v46_v46 = vld [vmem:[%s6616_s0 + $0x8] sm:$0xff]  ;;  %v5780_v48 = vpack.c.bf16 %v422_v45, %v421_v44  ;;  %v451_v30 = vld [vmem:[#allocation7 + $0x18] sm:$0xff] }
  0x3f   :  { %4745 = vmatpush1.bf16.msra.mxu1 %v4744_v13  ;;  %4715 = vmatprep.subr.bf16.mxu0 %v4714_v14  ;;  %v406_v43 = vld [vmem:[#allocation7 + $0x60] sm:$0xff]  ;;  %v423_v51 = vld [vmem:[#allocation7 + $0x88] sm:$0xff]  ;;  %v452_v31 = vld [vmem:[#allocation7 + $0x38] sm:$0xff] }
  0x40   :  { %4747 = vmatprep.subr.bf16.mxu1 %v4746_v18  ;;  %v5776_v47 = vpack.c.bf16 %v406_v43, %v405_v42  ;;  %v407_v49 = vld [vmem:[#allocation7 + $0x80] sm:$0xff]  ;;  %v424_v52 = vld [vmem:[#allocation7 + $0xa8] sm:$0xff]  ;;  %v51_v18 = vld [vmem:[%s6616_s0 + $0x30] sm:$0xff] }
  0x41   :  { %v408_v50 = vld [vmem:[#allocation7 + $0xa0] sm:$0xff]  ;;  %v5793_v55 = vpack.c.bf16 %v424_v52, %v423_v51  ;;  %v425_v58 = vld [vmem:[#allocation7 + $0xc8] sm:$0xff]  ;;  %v437_v34 = vld [vmem:[#allocation7 + $0x50] sm:$0xff] }
  0x42   :  { %4717 = vmatpush1.bf16.msra.mxu0 %v4716_v24  ;;  %v5789_v54 = vpack.c.bf16 %v408_v50, %v407_v49  ;;  %v409_v56 = vld [vmem:[#allocation7 + $0xc0] sm:$0xff]  ;;  %v426_v59 = vld [vmem:[#allocation7 + $0xe8] sm:$0xff]  ;;  %v438_v35 = vld [vmem:[#allocation7 + $0x70] sm:$0xff] }
  0x43   :  { %4749 = vmatpush1.bf16.msra.mxu1 %v4748_v25  ;;  %4719 = vmatprep.subr.bf16.mxu0 %v4718_v26  ;;  %v410_v57 = vld [vmem:[#allocation7 + $0xe0] sm:$0xff]  ;;  %v5806_v62 = vpack.c.bf16 %v426_v59, %v425_v58  ;;  %v427_v2 = vld [vmem:[#allocation7 + $0x108] sm:$0xff]  ;;  %v52_v25 = vld [vmem:[%s6616_s0 + $0x38] sm:$0xff] }
  0x44   :  { %4751 = vmatprep.subr.bf16.mxu1 %v4750_v29  ;;  %v5802_v61 = vpack.c.bf16 %v410_v57, %v409_v56  ;;  %v411_v63 = vld [vmem:[#allocation7 + $0x100] sm:$0xff]  ;;  %v428_v3 = vld [vmem:[#allocation7 + $0x128] sm:$0xff]  ;;  %v436_v29 = vld [vmem:[#allocation7 + $0x30] sm:$0xff] }
  0x45   :  { %v412_v1 = vld [vmem:[#allocation7 + $0x120] sm:$0xff]  ;;  %v5819_v6 = vpack.c.bf16 %v428_v3, %v427_v2  ;;  %v429_v9 = vld [vmem:[#allocation7 + $0x148] sm:$0xff]  ;;  %v453_v36 = vld [vmem:[#allocation7 + $0x58] sm:$0xff] }
  0x46   :  { %4721 = vmatpush1.bf16.msra.mxu0 %v4720_v32  ;;  %v49_v4 = vld [vmem:[%s6616_s0 + $0x20] sm:$0xff]  ;;  %v5815_v5 = vpack.c.bf16 %v412_v1, %v411_v63  ;;  %v430_v10 = vld [vmem:[#allocation7 + $0x168] sm:$0xff]  ;;  %v5864_v32 = vpack.c.bf16 %v436_v29, %v435_v28  ;;  %v454_v37 = vld [vmem:[#allocation7 + $0x78] sm:$0xff] }
  0x47   :  { %4753 = vmatpush1.bf16.msra.mxu1 %v4752_v33  ;;  %4754 = vmatprep.subr.bf16.mxu0 %v6623_v40  ;;  %v413_v7 = vld [vmem:[#allocation7 + $0x140] sm:$0xff]  ;;  %v50_v11 = vld [vmem:[%s6616_s0 + $0x28] sm:$0xff]  ;;  %v5832_v13 = vpack.c.bf16 %v430_v10, %v429_v9  ;;  %v5869_v33 = vpack.c.bf16 %v452_v31, %v451_v30  ;;  %v5882_v42 = vpack.c.bf16 %v454_v37, %v453_v36  ;;  %v439_v43 = vld [vmem:[#allocation7 + $0x90] sm:$0xff]  ;;  %v119_v30 = vlaneseq }
  0x48   :  { %4778 = vmatprep.subr.bf16.mxu1 %v6623_v40  ;;  %v414_v8 = vld [vmem:[#allocation7 + $0x160] sm:$0xff]  ;;  %v431_v16 = vld [vmem:[#allocation7 + $0x188] sm:$0xff]  ;;  %v440_v44 = vld [vmem:[#allocation7 + $0xb0] sm:$0xff] }
  0x49   :  { %204 = vmatmul.mubr.f32.vlgmr.msra.gmra.mrb[0].mxu0 %v45_v38  ;;  %v5828_v12 = vpack.c.bf16 %v414_v8, %v413_v7  ;;  %v415_v14 = vld [vmem:[#allocation7 + $0x180] sm:$0xff]  ;;  %v432_v17 = vld [vmem:[#allocation7 + $0x1a8] sm:$0xff]  ;;  %v455_v45 = vld [vmem:[#allocation7 + $0x98] sm:$0xff]  ;;  %v5890_v49 = vpack.c.bf16 %v440_v44, %v439_v43  ;;  %v120_v31 = vshrl.u32 %v119_v30, 7 }
  0x4a   :  { %317 = vmatmul.mubr.f32.vlgmr.msra.gmra.mrb[0].mxu1 %v45_v38  ;;  %4756 = vmatpush3.bf16.msra.mxu0 %v5766_v39  ;;  %v416_v15 = vld [vmem:[#allocation7 + $0x1a0] sm:$0xff]  ;;  %v5845_v20 = vpack.c.bf16 %v432_v17, %v431_v16  ;;  %v433_v23 = vld [vmem:[#allocation7 + $0x1c8] sm:$0xff]  ;;  %v5878_v38 = vpack.c.bf16 %v438_v35, %v437_v34  ;;  %v441_v51 = vld [vmem:[#allocation7 + $0xd0] sm:$0xff] }
  0x4b   :  { %4780 = vmatpush3.bf16.msra.mxu1 %v5769_v41  ;;  %209 = vmatprep.mubr.f32.mxu0 %v6621_v0  ;;  %v5841_v19 = vpack.c.bf16 %v416_v15, %v415_v14  ;;  %v417_v21 = vld [vmem:[#allocation7 + $0x1c0] sm:$0xff]  ;;  %v434_v24 = vld [vmem:[#allocation7 + $0x1e8] sm:$0xff]  ;;  %v442_v52 = vld [vmem:[#allocation7 + $0xf0] sm:$0xff]  ;;  %v121_v34 = vsub.s32 0, %v120_v31  ;;  %v129_v37 = vsub.s32 2, %v120_v31  ;;  %v125_v43 = vsub.s32 1, %v120_v31 }
  0x4c   :  { %322 = vmatprep.mubr.f32.mxu1 %v6621_v0  ;;  %4757 = vmatprep.subr.bf16.mxu0 %v6623_v40  ;;  %v418_v22 = vld [vmem:[#allocation7 + $0x1e0] sm:$0xff]  ;;  %v5858_v27 = vpack.c.bf16 %v434_v24, %v433_v23  ;;  %v458_v56 = vld [vmem:[#allocation7 + $0xf8] sm:$0xff]  ;;  %v5898_v57 = vpack.c.bf16 %v442_v52, %v441_v51  ;;  %v443_v59 = vld [vmem:[#allocation7 + $0x110] sm:$0xff] }
  0x4d   :  { %210 = vmatmul.mubr.f32.gmra.mrb[2].mxu0 %v46_v46  ;;  %4781 = vmatprep.subr.bf16.mxu1 %v6623_v40  ;;  %v5854_v26 = vpack.c.bf16 %v418_v22, %v417_v21  ;;  %v459_v63 = vld [vmem:[#allocation7 + $0x118] sm:$0xff]  ;;  %v446_v7 = vld [vmem:[#allocation7 + $0x170] sm:$0xff]  ;;  %v117_v35 = vld [vmem:[%s6618_s2] sm:$0xf] }
  0x4e   :  { %323 = vmatmul.mubr.f32.gmra.mrb[2].mxu1 %v46_v46  ;;  %4759 = vmatpush3.bf16.msra.mxu0 %v5776_v47  ;;  %v456_v46 = vld [vmem:[#allocation7 + $0xb8] sm:$0xff]  ;;  %v447_v14 = vld [vmem:[#allocation7 + $0x190] sm:$0xff]  ;;  %v122_v52 = vrot.slane %v117_v35, %v121_v34 }
  0x4f   :  { %4783 = vmatpush3.bf16.msra.mxu1 %v5780_v48  ;;  %215 = vmatprep.mubr.f32.mxu0 %v6621_v0  ;;  %v5894_v50 = vpack.c.bf16 %v456_v46, %v455_v45  ;;  %v460_v1 = vld [vmem:[#allocation7 + $0x138] sm:$0xff]  ;;  %v448_v15 = vld [vmem:[#allocation7 + $0x1b0] sm:$0xff]  ;;  %v133_v46 = vsub.s32 3, %v120_v31 }
  0x50   :  { %328 = vmatprep.mubr.f32.mxu1 %v6621_v0  ;;  %4760 = vmatprep.subr.bf16.mxu0 %v6623_v40  ;;  %v5910_v3 = vpack.c.bf16 %v460_v1, %v459_v63  ;;  %v461_v8 = vld [vmem:[#allocation7 + $0x158] sm:$0xff]  ;;  %v449_v22 = vld [vmem:[#allocation7 + $0x1d0] sm:$0xff] }
  0x51   :  { %216 = vmatmul.mubr.f32.gmra.mrb[4].mxu0 %v47_v53  ;;  %4784 = vmatprep.subr.bf16.mxu1 %v6623_v40  ;;  %v462_v9 = vld [vmem:[#allocation7 + $0x178] sm:$0xff]  ;;  %v450_v23 = vld [vmem:[#allocation7 + $0x1f0] sm:$0xff] }
  0x52   :  { %329 = vmatmul.mubr.f32.gmra.mrb[4].mxu1 %v47_v53  ;;  %4762 = vmatpush3.bf16.msra.mxu0 %v5789_v54  ;;  %v457_v53 = vld [vmem:[#allocation7 + $0xd8] sm:$0xff]  ;;  %v5930_v28 = vpack.c.bf16 %v450_v23, %v449_v22 }
  0x53   :  { %4786 = vmatpush3.bf16.msra.mxu1 %v5793_v55  ;;  %221 = vmatprep.mubr.f32.mxu0 %v6621_v0  ;;  %v5902_v58 = vpack.c.bf16 %v458_v56, %v457_v53  ;;  %v463_v16 = vld [vmem:[#allocation7 + $0x198] sm:$0xff]  ;;  %v5990_v53 = vrot.slane %v117_v35, %v129_v37  ;;  %v126_v56 = vrot.slane %v117_v35, %v125_v43 }
  0x54   :  { %334 = vmatprep.mubr.f32.mxu1 %v6621_v0  ;;  %4763 = vmatprep.subr.bf16.mxu0 %v6623_v40  ;;  %v464_v17 = vld [vmem:[#allocation7 + $0x1b8] sm:$0xff] }
  0x55   :  { %222 = vmatmul.mubr.f32.gmra.mrb[6].mxu0 %v48_v60  ;;  %4787 = vmatprep.subr.bf16.mxu1 %v6623_v40  ;;  %v5926_v21 = vpack.c.bf16 %v464_v17, %v463_v16  ;;  %v465_v24 = vld [vmem:[#allocation7 + $0x1d8] sm:$0xff] }
  0x56   :  { %335 = vmatmul.mubr.f32.gmra.mrb[6].mxu1 %v48_v60  ;;  %4765 = vmatpush3.bf16.msra.mxu0 %v5802_v61  ;;  %v444_v60 = vld [vmem:[#allocation7 + $0x130] sm:$0xff] }
  0x57   :  { %4789 = vmatpush3.bf16.msra.mxu1 %v5806_v62  ;;  %227 = vmatprep.mubr.f32.mxu0 %v6621_v0  ;;  %v5906_v2 = vpack.c.bf16 %v444_v60, %v443_v59  ;;  %v5992_v60 = vrot.slane %v117_v35, %v133_v46 }
  0x58   :  { %340 = vmatprep.mubr.f32.mxu1 %v6621_v0  ;;  %4766 = vmatprep.subr.bf16.mxu0 %v6623_v40 }
  0x59   :  { %228 = vmatmul.mubr.f32.gmra.mrb[8].mxu0 %v49_v4  ;;  %4790 = vmatprep.subr.bf16.mxu1 %v6623_v40 }
  0x5a   :  { %341 = vmatmul.mubr.f32.gmra.mrb[8].mxu1 %v49_v4  ;;  %4768 = vmatpush3.bf16.msra.mxu0 %v5815_v5  ;;  %v445_v4 = vld [vmem:[#allocation7 + $0x150] sm:$0xff] }
  0x5b   :  { %4792 = vmatpush3.bf16.msra.mxu1 %v5819_v6  ;;  %233 = vmatprep.mubr.f32.mxu0 %v6621_v0  ;;  %v5914_v10 = vpack.c.bf16 %v446_v7, %v445_v4 }
  0x5c   :  { %346 = vmatprep.mubr.f32.mxu1 %v6621_v0  ;;  %4769 = vmatprep.subr.bf16.mxu0 %v6623_v40 }
  0x5d   :  { %234 = vmatmul.mubr.f32.gmra.mrb[10].mxu0 %v50_v11  ;;  %4793 = vmatprep.subr.bf16.mxu1 %v6623_v40 }
  0x5e   :  { %347 = vmatmul.mubr.f32.gmra.mrb[10].mxu1 %v50_v11  ;;  %4771 = vmatpush3.bf16.msra.mxu0 %v5828_v12  ;;  %v5918_v11 = vpack.c.bf16 %v462_v9, %v461_v8 }
  0x5f   :  { %4795 = vmatpush3.bf16.msra.mxu1 %v5832_v13  ;;  %239 = vmatprep.mubr.f32.mxu0 %v6621_v0 }
  0x60   :  { %352 = vmatprep.mubr.f32.mxu1 %v6621_v0  ;;  %4772 = vmatprep.subr.bf16.mxu0 %v6623_v40 }
  0x61   :  { %240 = vmatmul.mubr.f32.gmra.mrb[12].mxu0 %v51_v18  ;;  %4796 = vmatprep.subr.bf16.mxu1 %v6623_v40 }
  0x62   :  { %353 = vmatmul.mubr.f32.gmra.mrb[12].mxu1 %v51_v18  ;;  %4774 = vmatpush3.bf16.msra.mxu0 %v5841_v19  ;;  %v5922_v18 = vpack.c.bf16 %v448_v15, %v447_v14 }
  0x63   :  { %4798 = vmatpush3.bf16.msra.mxu1 %v5845_v20  ;;  %245 = vmatprep.mubr.f32.mxu0 %v6621_v0 }
  0x64   :  { %358 = vmatprep.mubr.f32.mxu1 %v6621_v0  ;;  %4775 = vmatprep.subr.bf16.mxu0 %v6623_v40 }
  0x65   :  { %246 = vmatmul.mubr.f32.gmra.mrb[14].mxu0 %v52_v25  ;;  %4799 = vmatprep.subr.bf16.mxu1 %v6623_v40 }
  0x66   :  { %359 = vmatmul.mubr.f32.gmra.mrb[14].mxu1 %v52_v25  ;;  %4777 = vmatpush3.bf16.msra.mxu0 %v5854_v26  ;;  %v466_v25 = vld [vmem:[#allocation7 + $0x1f8] sm:$0xff] }
  0x67   :  { %4801 = vmatpush3.bf16.msra.mxu1 %v5858_v27  ;;  %3602 = vmatprep.mubr.msk.f32.mxu0 %vm5711_vm0, %v6621_v0  ;;  %v5934_v29 = vpack.c.bf16 %v466_v25, %v465_v24 }
  0x68   :  { %3637 = vmatprep.mubr.msk.f32.mxu1 %vm5711_vm0, %v6621_v0  ;;  %4802 = vmatprep.subr.bf16.mxu0 %v6623_v40 }
  0x69   :  { %3603 = vmatmul.mubr.f32.vlgmr.msra.gmra.mrb[16].mxu0 %v6621_v0  ;;  %4826 = vmatprep.subr.bf16.mxu1 %v6623_v40 }
  0x6a   :  { %3638 = vmatmul.mubr.f32.vlgmr.msra.gmra.mrb[16].mxu1 %v6621_v0  ;;  %4804 = vmatpush3.bf16.msra.mxu0 %v5864_v32 }
  0x6b   :  { %4828 = vmatpush3.bf16.msra.mxu1 %v5869_v33  ;;  %4805 = vmatprep.subr.bf16.mxu0 %v6623_v40 }
  0x6c   :  { %4829 = vmatprep.subr.bf16.mxu1 %v6623_v40  ;;  %3672 = vmatprep.mubr.msk.f32.mxu0 %vm5711_vm0, %v6621_v0 }
  0x6d   :  { %3707 = vmatprep.mubr.msk.f32.mxu1 %vm5711_vm0, %v6621_v0 }
  0x6e   :  { %4807 = vmatpush3.bf16.msra.mxu0 %v5878_v38 }
  0x6f   :  { %4831 = vmatpush3.bf16.msra.mxu1 %v5882_v42  ;;  %4808 = vmatprep.subr.bf16.mxu0 %v6623_v40 }
  0x70   :  { %4832 = vmatprep.subr.bf16.mxu1 %v6623_v40 }
  0x72   :  { %4810 = vmatpush3.bf16.msra.mxu0 %v5890_v49 }
  0x73   :  { %4834 = vmatpush3.bf16.msra.mxu1 %v5894_v50  ;;  %4811 = vmatprep.subr.bf16.mxu0 %v6623_v40 }
  0x74   :  { %4835 = vmatprep.subr.bf16.mxu1 %v6623_v40 }
  0x76   :  { %4813 = vmatpush3.bf16.msra.mxu0 %v5898_v57 }
  0x77   :  { %4837 = vmatpush3.bf16.msra.mxu1 %v5902_v58  ;;  %4814 = vmatprep.subr.bf16.mxu0 %v6623_v40 }
  0x78   :  { %4838 = vmatprep.subr.bf16.mxu1 %v6623_v40 }
  0x7a   :  { %4816 = vmatpush3.bf16.msra.mxu0 %v5906_v2 }
  0x7b   :  { %4840 = vmatpush3.bf16.msra.mxu1 %v5910_v3  ;;  %4817 = vmatprep.subr.bf16.mxu0 %v6623_v40 }
  0x7c   :  { %4841 = vmatprep.subr.bf16.mxu1 %v6623_v40 }
  0x7e   :  { %4819 = vmatpush3.bf16.msra.mxu0 %v5914_v10 }
  0x7f   :  { %4843 = vmatpush3.bf16.msra.mxu1 %v5918_v11  ;;  %4820 = vmatprep.subr.bf16.mxu0 %v6623_v40 }
  0x80   :  { %4844 = vmatprep.subr.bf16.mxu1 %v6623_v40 }
  0x82   :  { %4822 = vmatpush3.bf16.msra.mxu0 %v5922_v18 }
  0x83   :  { %4846 = vmatpush3.bf16.msra.mxu1 %v5926_v21  ;;  %4823 = vmatprep.subr.bf16.mxu0 %v6623_v40 }
  0x84   :  { %4847 = vmatprep.subr.bf16.mxu1 %v6623_v40 }
  0x86   :  { %4825 = vmatpush3.bf16.msra.mxu0 %v5930_v28 }
  0x87   :  { %4849 = vmatpush3.bf16.msra.mxu1 %v5934_v29  ;;  %4850 = vmatprep.subr.bf16.mxu0 %v6623_v40 }
  0x88   :  { %4874 = vmatprep.subr.bf16.mxu1 %v6623_v40 }
  0x89   :  { %3673 = vmatmul.mubr.f32.vlgmr.msra.gmra.mrb[18].mxu0 %v6621_v0 }
  0x8a   :  { %3708 = vmatmul.mubr.f32.vlgmr.msra.gmra.mrb[18].mxu1 %v6621_v0  ;;  %4852 = vmatpush3.bf16.msra.mxu0 %v5766_v39 }
  0x8b   :  { %4876 = vmatpush3.bf16.msra.mxu1 %v5769_v41  ;;  %4853 = vmatprep.subr.bf16.mxu0 %v6623_v40 }
  0x8c   :  { %4877 = vmatprep.subr.bf16.mxu1 %v6623_v40  ;;  %3742 = vmatprep.mubr.msk.f32.mxu0 %vm5711_vm0, %v6621_v0 }
  0x8d   :  { %3777 = vmatprep.mubr.msk.f32.mxu1 %vm5711_vm0, %v6621_v0 }
  0x8e   :  { %4855 = vmatpush3.bf16.msra.mxu0 %v5776_v47 }
  0x8f   :  { %4879 = vmatpush3.bf16.msra.mxu1 %v5780_v48  ;;  %4856 = vmatprep.subr.bf16.mxu0 %v6623_v40 }
  0x90   :  { %4880 = vmatprep.subr.bf16.mxu1 %v6623_v40 }
  0x92   :  { %4858 = vmatpush3.bf16.msra.mxu0 %v5789_v54 }
  0x93   :  { %4882 = vmatpush3.bf16.msra.mxu1 %v5793_v55  ;;  %4859 = vmatprep.subr.bf16.mxu0 %v6623_v40 }
  0x94   :  { %4883 = vmatprep.subr.bf16.mxu1 %v6623_v40 }
  0x96   :  { %4861 = vmatpush3.bf16.msra.mxu0 %v5802_v61 }
  0x97   :  { %4885 = vmatpush3.bf16.msra.mxu1 %v5806_v62  ;;  %4862 = vmatprep.subr.bf16.mxu0 %v6623_v40 }
  0x98   :  { %4886 = vmatprep.subr.bf16.mxu1 %v6623_v40 }
  0x9a   :  { %4864 = vmatpush3.bf16.msra.mxu0 %v5815_v5 }
  0x9b   :  { %4888 = vmatpush3.bf16.msra.mxu1 %v5819_v6  ;;  %4865 = vmatprep.subr.bf16.mxu0 %v6623_v40 }
  0x9c   :  { %4889 = vmatprep.subr.bf16.mxu1 %v6623_v40 }
  0x9e   :  { %4867 = vmatpush3.bf16.msra.mxu0 %v5828_v12 }
  0x9f   :  { %4891 = vmatpush3.bf16.msra.mxu1 %v5832_v13  ;;  %4868 = vmatprep.subr.bf16.mxu0 %v6623_v40 }
  0xa0   :  { %4892 = vmatprep.subr.bf16.mxu1 %v6623_v40 }
  0xa2   :  { %4870 = vmatpush3.bf16.msra.mxu0 %v5841_v19 }
  0xa3   :  { %4894 = vmatpush3.bf16.msra.mxu1 %v5845_v20  ;;  %4871 = vmatprep.subr.bf16.mxu0 %v6623_v40 }
  0xa4   :  { %4895 = vmatprep.subr.bf16.mxu1 %v6623_v40 }
  0xa6   :  { %4873 = vmatpush3.bf16.msra.mxu0 %v5854_v26 }
  0xa7   :  { %4897 = vmatpush3.bf16.msra.mxu1 %v5858_v27  ;;  %4898 = vmatprep.subr.bf16.mxu0 %v6623_v40 }
  0xa8   :  { %4922 = vmatprep.subr.bf16.mxu1 %v6623_v40 }
 0x11c   :  { %v5982_v36 = vpop.f32.mrb[0].mxu0 }
 0x11d   :  { %v5984_v44 = vpop.f32.mrb[0].mxu1  ;;  %v5986_v45 = vpop.f32.mrb[1].mxu0 }
 0x11e   :  { %v5988_v51 = vpop.f32.mrb[1].mxu1 }
 0x120   :  { %v211_v59 = vpop.f32.mrb[2].mxu0 }
 0x121   :  { %v5994_v63 = vadd.f32 %v211_v59, %v122_v52  ;;  %v324_v1 = vpop.f32.mrb[2].mxu1  ;;  %v213_v4 = vpop.f32.mrb[3].mxu0 }
 0x122   :  { %v5997_v7 = vadd.f32 %v324_v1, %v5990_v53  ;;  %v5999_v8 = vadd.f32 %v213_v4, %v126_v56  ;;  %v326_v9 = vpop.f32.mrb[3].mxu1 }
 0x123   :  { %v6002_v14 = vadd.f32 %v326_v9, %v5992_v60 }
 0x124   :  { %v217_v15 = vpop.f32.mrb[4].mxu0 }
 0x125   :  { %v6004_v16 = vadd.f32 %v217_v15, %v122_v52  ;;  %v330_v17 = vpop.f32.mrb[4].mxu1  ;;  %v219_v22 = vpop.f32.mrb[5].mxu0 }
 0x126   :  { %v6007_v23 = vadd.f32 %v330_v17, %v5990_v53  ;;  %v6009_v24 = vadd.f32 %v219_v22, %v126_v56  ;;  %v332_v25 = vpop.f32.mrb[5].mxu1 }
 0x127   :  { %v6012_v30 = vadd.f32 %v332_v25, %v5992_v60 }
 0x128   :  { %v223_v31 = vpop.f32.mrb[6].mxu0 }
 0x129   :  { %v6014_v34 = vadd.f32 %v223_v31, %v122_v52  ;;  %v336_v35 = vpop.f32.mrb[6].mxu1  ;;  %v225_v37 = vpop.f32.mrb[7].mxu0 }
 0x12a   :  { %v6017_v43 = vadd.f32 %v336_v35, %v5990_v53  ;;  %v6019_v46 = vadd.f32 %v225_v37, %v126_v56  ;;  %v338_v59 = vpop.f32.mrb[7].mxu1 }
 0x12b   :  { %6625 = vst [vmem:[#allocation11_spill] sm:$0xff] %v6014_v34  ;;  %v6022_v1 = vadd.f32 %v338_v59, %v5992_v60 }
 0x12c   :  { %6626 = vst [vmem:[#allocation12_spill] sm:$0xff] %v6017_v43  ;;  %6627 = vst [vmem:[#allocation13_spill] sm:$0xff] %v6019_v46  ;;  %v229_v4 = vpop.f32.mrb[8].mxu0 }
 0x12d   :  { %6628 = vst [vmem:[#allocation14_spill] sm:$0xff] %v6022_v1  ;;  %v6024_v9 = vadd.f32 %v229_v4, %v122_v52  ;;  %v342_v15 = vpop.f32.mrb[8].mxu1  ;;  %v231_v17 = vpop.f32.mrb[9].mxu0 }
 0x12e   :  { %v6027_v22 = vadd.f32 %v342_v15, %v5990_v53  ;;  %v6029_v25 = vadd.f32 %v231_v17, %v126_v56  ;;  %v344_v31 = vpop.f32.mrb[9].mxu1 }
 0x12f   :  { %6629 = vst [vmem:[#allocation15_spill] sm:$0xff] %v6024_v9  ;;  %v6032_v35 = vadd.f32 %v344_v31, %v5992_v60 }
 0x130   :  { %6630 = vst [vmem:[#allocation16_spill] sm:$0xff] %v6027_v22  ;;  %6631 = vst [vmem:[#allocation17_spill] sm:$0xff] %v6029_v25  ;;  %v235_v37 = vpop.f32.mrb[10].mxu0 }
 0x131   :  { %6632 = vst [vmem:[#allocation18_spill] sm:$0xff] %v6032_v35  ;;  %v6034_v0 = vadd.f32 %v235_v37, %v122_v52  ;;  %v348_v40 = vpop.f32.mrb[10].mxu1  ;;  %v237_v59 = vpop.f32.mrb[11].mxu0 }
 0x132   :  { %v6037_v1 = vadd.f32 %v348_v40, %v5990_v53  ;;  %v6039_v4 = vadd.f32 %v237_v59, %v126_v56  ;;  %v350_v9 = vpop.f32.mrb[11].mxu1 }
 0x133   :  { %6633 = vst [vmem:[#allocation19_spill] sm:$0xff] %v6034_v0  ;;  %v6042_v15 = vadd.f32 %v350_v9, %v5992_v60 }
 0x134   :  { %6634 = vst [vmem:[#allocation20_spill] sm:$0xff] %v6037_v1  ;;  %6635 = vst [vmem:[#allocation21_spill] sm:$0xff] %v6039_v4  ;;  %v241_v17 = vpop.f32.mrb[12].mxu0 }
 0x135   :  { %6636 = vst [vmem:[#allocation22_spill] sm:$0xff] %v6042_v15  ;;  %v6044_v22 = vadd.f32 %v241_v17, %v122_v52  ;;  %v354_v25 = vpop.f32.mrb[12].mxu1  ;;  %v243_v31 = vpop.f32.mrb[13].mxu0 }
 0x136   :  { %v6047_v35 = vadd.f32 %v354_v25, %v5990_v53  ;;  %v6049_v37 = vadd.f32 %v243_v31, %v126_v56  ;;  %v356_v0 = vpop.f32.mrb[13].mxu1  ;;  %v206_v25 = vadd.f32 %v5982_v36, %v122_v52  ;;  %v319_v36 = vadd.f32 %v5984_v44, %v5990_v53 }
 0x137   :  { %6637 = vst [vmem:[#allocation23_spill] sm:$0xff] %v6044_v22  ;;  %v6052_v40 = vadd.f32 %v356_v0, %v5992_v60 }
 0x138   :  { %6638 = vst [vmem:[#allocation24_spill] sm:$0xff] %v6047_v35  ;;  %6639 = vst [vmem:[#allocation25_spill] sm:$0xff] %v6049_v37  ;;  %v247_v59 = vpop.f32.mrb[14].mxu0  ;;  %v208_v35 = vadd.f32 %v5986_v45, %v126_v56  ;;  %v321_v45 = vadd.f32 %v5988_v51, %v5992_v60 }
 0x139   :  { %6640 = vst [vmem:[#allocation26_spill] sm:$0xff] %v6052_v40  ;;  %v6054_v1 = vadd.f32 %v247_v59, %v122_v52  ;;  %v360_v4 = vpop.f32.mrb[14].mxu1  ;;  %v249_v9 = vpop.f32.mrb[15].mxu0 }
 0x13a   :  { %v6057_v15 = vadd.f32 %v360_v4, %v5990_v53  ;;  %v6059_v17 = vadd.f32 %v249_v9, %v126_v56  ;;  %v362_v22 = vpop.f32.mrb[15].mxu1 }
 0x13b   :  { %6641 = vst [vmem:[#allocation27_spill] sm:$0xff] %v6054_v1  ;;  %v6063_v31 = vadd.f32 %v362_v22, %v5992_v60 }
 0x13c   :  { %6642 = vst [vmem:[#allocation28_spill] sm:$0xff] %v6057_v15  ;;  %6643 = vst [vmem:[#allocation29_spill] sm:$0xff] %v6059_v17  ;;  %v539_v0 = vpop.f32.mrb[16].mxu0 }
 0x13d   :  { %v543_v40 = vadd.f32 %v539_v0, %v206_v25  ;;  %v616_v37 = vpop.f32.mrb[16].mxu1  ;;  %v3604_v59 = vpop.f32.mrb[17].mxu0 }
 0x13e   :  { %v620_v1 = vadd.f32 %v616_v37, %v208_v35  ;;  %v3639_v43 = vpop.f32.mrb[17].mxu1  ;;  %v6644_v59 = vmov 0.0|0.0  }
 0x13f   :  { %v2995_v34 = vmul.f32 -1.442695, %v543_v40 }
 0x140   :  { %v2996_v46 = vmul.f32 -1.442695, %v620_v1 }
 0x142   :  { %5529 = vpow2.f32 %v2996_v46 }
 0x143   :  { %5531 = vpow2.f32 %v2995_v34 }
 0x14c   :  { %v5530_v4 = vpop.eup %5529 }
 0x14d   :  { %v5532_v9 = vpop.eup %5531  ;;  %v624_v15 = vadd.f32 1.0, %v5530_v4  ;;  %v6645_v4 = vmov 0.0  }
 0x14e   :  { %v547_v17 = vadd.f32 1.0, %v5532_v9 }
 0x14f   :  { %5533 = vrcp.f32 %v624_v15 }
 0x150   :  { %5535 = vrcp.f32 %v547_v17 }
 0x159   :  { %v5534_v46 = vpop.eup %5533 }
 0x15a   :  { %v5536_v37 = vpop.eup %5535  ;;  %v776_v25 = vmul.f32 0.0, %v5534_v46 }
 0x15c   :  { %v693_v52 = vpop.f32.mrb[18].mxu0 }
 0x15d   :  { %v697_v56 = vadd.f32 %v693_v52, %v319_v36  ;;  %v765_v22 = vpop.f32.mrb[18].mxu1  ;;  %v3674_v35 = vpop.f32.mrb[19].mxu0 }
 0x15e   :  { %v769_v43 = vadd.f32 %v765_v22, %v321_v45  ;;  %v3709_v1 = vpop.f32.mrb[19].mxu1 }
 0x15f   :  { %5537 = vtanh.f32 %v697_v56 }
 0x160   :  { %v2997_v34 = vmul.f32 -1.442695, %v769_v43 }
 0x162   :  { %5539 = vpow2.f32 %v2997_v34 }
 0x169   :  { %v5538_v40 = vpop.eup %5537 }
 0x16a   :  { %v777_v0 = vmul.f32 %v5538_v40, %v5536_v37 }
 0x16c   :  { %v5540_v44 = vpop.eup %5539  ;;  %v6070_v53 = vadd.f32 %v777_v0, %v776_v25 }
 0x16d   :  { %v773_v51 = vadd.f32 1.0, %v5540_v44 }
 0x16e   :  { %5541 = vtanh.f32 %v6070_v53 }
 0x16f   :  { %5543 = vrcp.f32 %v773_v51 }
 0x178   :  { %v5542_v60 = vpop.eup %5541 }
 0x179   :  { %v5544_v15 = vpop.eup %5543 }
 0x17a   :  { %v780_v17 = vmul.f32 %v5544_v15, %v5542_v60 }
 0x17c   :  { %781 = vst [vmem:[%s6620_s4] sm:$0xff] %v780_v17  ;;  %3743 = vmatmul.mubr.f32.vlgmr.msra.gmra.mrb[20].mxu0 %v780_v17  ;;  %3778 = vmatmul.mubr.f32.vlgmr.msra.gmra.mrb[20].mxu1 %v780_v17 }
 0x17d   :  { %4900 = vmatpush3.bf16.msra.mxu0 %v5864_v32  ;;  %4924 = vmatpush3.bf16.msra.mxu1 %v5869_v33 }
 0x17e   :  { %4901 = vmatprep.subr.bf16.mxu0 %v6644_v59  ;;  %4925 = vmatprep.subr.bf16.mxu1 %v6644_v59 }
 0x17f   :  { %3812 = vmatprep.mubr.msk.f32.mxu0 %vm5711_vm0, %v6645_v4  ;;  %3847 = vmatprep.mubr.msk.f32.mxu1 %vm5711_vm0, %v6645_v4 }
 0x181   :  { %4903 = vmatpush3.bf16.msra.mxu0 %v5878_v38  ;;  %4927 = vmatpush3.bf16.msra.mxu1 %v5882_v42 }
 0x182   :  { %4904 = vmatprep.subr.bf16.mxu0 %v6644_v59  ;;  %4928 = vmatprep.subr.bf16.mxu1 %v6644_v59 }
 0x185   :  { %4906 = vmatpush3.bf16.msra.mxu0 %v5890_v49  ;;  %4930 = vmatpush3.bf16.msra.mxu1 %v5894_v50 }
 0x186   :  { %4907 = vmatprep.subr.bf16.mxu0 %v6644_v59  ;;  %4931 = vmatprep.subr.bf16.mxu1 %v6644_v59 }
 0x189   :  { %4909 = vmatpush3.bf16.msra.mxu0 %v5898_v57  ;;  %4933 = vmatpush3.bf16.msra.mxu1 %v5902_v58 }
 0x18a   :  { %4910 = vmatprep.subr.bf16.mxu0 %v6644_v59  ;;  %4934 = vmatprep.subr.bf16.mxu1 %v6644_v59 }
 0x18d   :  { %4912 = vmatpush3.bf16.msra.mxu0 %v5906_v2  ;;  %4936 = vmatpush3.bf16.msra.mxu1 %v5910_v3 }
 0x18e   :  { %4913 = vmatprep.subr.bf16.mxu0 %v6644_v59  ;;  %4937 = vmatprep.subr.bf16.mxu1 %v6644_v59 }
 0x191   :  { %4915 = vmatpush3.bf16.msra.mxu0 %v5914_v10  ;;  %4939 = vmatpush3.bf16.msra.mxu1 %v5918_v11 }
 0x192   :  { %4916 = vmatprep.subr.bf16.mxu0 %v6644_v59  ;;  %4940 = vmatprep.subr.bf16.mxu1 %v6644_v59 }
 0x195   :  { %4918 = vmatpush3.bf16.msra.mxu0 %v5922_v18  ;;  %4942 = vmatpush3.bf16.msra.mxu1 %v5926_v21 }
 0x196   :  { %4919 = vmatprep.subr.bf16.mxu0 %v6644_v59  ;;  %4943 = vmatprep.subr.bf16.mxu1 %v6644_v59 }
 0x199   :  { %4921 = vmatpush3.bf16.msra.mxu0 %v5930_v28  ;;  %4945 = vmatpush3.bf16.msra.mxu1 %v5934_v29 }
 0x19a   :  { %4946 = vmatprep.subr.bf16.mxu0 %v6644_v59  ;;  %4970 = vmatprep.subr.bf16.mxu1 %v6644_v59 }
 0x19c   :  { %3813 = vmatmul.mubr.f32.vlgmr.msra.gmra.mrb[22].mxu0 %v780_v17  ;;  %3848 = vmatmul.mubr.f32.vlgmr.msra.gmra.mrb[22].mxu1 %v780_v17 }
 0x19d   :  { %4948 = vmatpush3.bf16.msra.mxu0 %v5766_v39  ;;  %4972 = vmatpush3.bf16.msra.mxu1 %v5769_v41 }
 0x19e   :  { %4949 = vmatprep.subr.bf16.mxu0 %v6644_v59  ;;  %4973 = vmatprep.subr.bf16.mxu1 %v6644_v59 }
 0x19f   :  { %3882 = vmatprep.mubr.msk.f32.mxu0 %vm5711_vm0, %v6645_v4  ;;  %3917 = vmatprep.mubr.msk.f32.mxu1 %vm5711_vm0, %v6645_v4 }
 0x1a1   :  { %4951 = vmatpush3.bf16.msra.mxu0 %v5776_v47  ;;  %4975 = vmatpush3.bf16.msra.mxu1 %v5780_v48 }
 0x1a2   :  { %4952 = vmatprep.subr.bf16.mxu0 %v6644_v59  ;;  %4976 = vmatprep.subr.bf16.mxu1 %v6644_v59 }
 0x1a5   :  { %4954 = vmatpush3.bf16.msra.mxu0 %v5789_v54  ;;  %4978 = vmatpush3.bf16.msra.mxu1 %v5793_v55 }
 0x1a6   :  { %4955 = vmatprep.subr.bf16.mxu0 %v6644_v59  ;;  %4979 = vmatprep.subr.bf16.mxu1 %v6644_v59 }
 0x1a9   :  { %4957 = vmatpush3.bf16.msra.mxu0 %v5802_v61  ;;  %4981 = vmatpush3.bf16.msra.mxu1 %v5806_v62 }
 0x1aa   :  { %4958 = vmatprep.subr.bf16.mxu0 %v6644_v59  ;;  %4982 = vmatprep.subr.bf16.mxu1 %v6644_v59 }
 0x1ad   :  { %4960 = vmatpush3.bf16.msra.mxu0 %v5815_v5  ;;  %4984 = vmatpush3.bf16.msra.mxu1 %v5819_v6 }
 0x1ae   :  { %4961 = vmatprep.subr.bf16.mxu0 %v6644_v59  ;;  %4985 = vmatprep.subr.bf16.mxu1 %v6644_v59 }
 0x1b1   :  { %4963 = vmatpush3.bf16.msra.mxu0 %v5828_v12  ;;  %4987 = vmatpush3.bf16.msra.mxu1 %v5832_v13 }
 0x1b2   :  { %4964 = vmatprep.subr.bf16.mxu0 %v6644_v59  ;;  %4988 = vmatprep.subr.bf16.mxu1 %v6644_v59 }
 0x1b5   :  { %4966 = vmatpush3.bf16.msra.mxu0 %v5841_v19  ;;  %4990 = vmatpush3.bf16.msra.mxu1 %v5845_v20 }
 0x1b6   :  { %4967 = vmatprep.subr.bf16.mxu0 %v6644_v59  ;;  %4991 = vmatprep.subr.bf16.mxu1 %v6644_v59 }
 0x1b9   :  { %4969 = vmatpush3.bf16.msra.mxu0 %v5854_v26  ;;  %4993 = vmatpush3.bf16.msra.mxu1 %v5858_v27 }
 0x1ba   :  { %4994 = vmatprep.subr.bf16.mxu0 %v6644_v59  ;;  %5018 = vmatprep.subr.bf16.mxu1 %v6644_v59 }
 0x24f   :  { %v853_v9 = vpop.f32.mrb[20].mxu0  ;;  %v930_v36 = vpop.f32.mrb[20].mxu1 }
 0x250   :  { %v857_v45 = vadd.f32 %v853_v9, %v5994_v63  ;;  %v934_v52 = vadd.f32 %v930_v36, %v5999_v8  ;;  %v3744_v56 = vpop.f32.mrb[21].mxu0  ;;  %v3779_v22 = vpop.f32.mrb[21].mxu1 }
 0x252   :  { %v2999_v35 = vmul.f32 -1.442695, %v934_v52  ;;  %v2998_v43 = vmul.f32 -1.442695, %v857_v45 }
 0x254   :  { %5545 = vpow2.f32 %v2999_v35 }
 0x255   :  { %5547 = vpow2.f32 %v2998_v43 }
 0x25e   :  { %v5546_v1 = vpop.eup %5545 }
 0x25f   :  { %v5548_v34 = vpop.eup %5547  ;;  %v938_v46 = vadd.f32 1.0, %v5546_v1 }
 0x260   :  { %v861_v37 = vadd.f32 1.0, %v5548_v34 }
 0x261   :  { %5549 = vrcp.f32 %v938_v46 }
 0x262   :  { %5551 = vrcp.f32 %v861_v37 }
 0x26b   :  { %v5550_v60 = vpop.eup %5549 }
 0x26c   :  { %v5552_v15 = vpop.eup %5551  ;;  %v1090_v9 = vmul.f32 %v5550_v60, %v6070_v53 }
 0x26f   :  { %v1007_v40 = vpop.f32.mrb[22].mxu0  ;;  %v1079_v25 = vpop.f32.mrb[22].mxu1 }
 0x270   :  { %v1011_v0 = vadd.f32 %v1007_v40, %v5997_v7  ;;  %v1083_v44 = vadd.f32 %v1079_v25, %v6002_v14  ;;  %v3814_v63 = vpop.f32.mrb[23].mxu0  ;;  %v3849_v51 = vpop.f32.mrb[23].mxu1 }
 0x272   :  { %5553 = vtanh.f32 %v1011_v0  ;;  %v3000_v8 = vmul.f32 -1.442695, %v1083_v44 }
 0x274   :  { %5555 = vpow2.f32 %v3000_v8 }
 0x27c   :  { %v5554_v17 = vpop.eup %5553 }
 0x27d   :  { %v1091_v36 = vmul.f32 %v5554_v17, %v5552_v15 }
 0x27e   :  { %v5556_v45 = vpop.eup %5555 }
 0x27f   :  { %v6153_v52 = vadd.f32 %v1091_v36, %v1090_v9  ;;  %v1087_v56 = vadd.f32 1.0, %v5556_v45 }
 0x281   :  { %5557 = vtanh.f32 %v6153_v52 }
 0x282   :  { %5559 = vrcp.f32 %v1087_v56 }
 0x28b   :  { %v5558_v7 = vpop.eup %5557 }
 0x28c   :  { %v5560_v14 = vpop.eup %5559 }
 0x28d   :  { %v1094_v22 = vmul.f32 %v5560_v14, %v5558_v7 }
 0x28f   :  { %3001 = vst [vmem:[%s6620_s4 + $0x8] sm:$0xff] %v1094_v22  ;;  %3883 = vmatmul.mubr.f32.vlgmr.msra.gmra.mrb[24].mxu0 %v1094_v22  ;;  %3918 = vmatmul.mubr.f32.vlgmr.msra.gmra.mrb[24].mxu1 %v1094_v22 }
 0x290   :  { %4996 = vmatpush3.bf16.msra.mxu0 %v5864_v32  ;;  %5020 = vmatpush3.bf16.msra.mxu1 %v5869_v33 }
 0x291   :  { %4997 = vmatprep.subr.bf16.mxu0 %v6644_v59  ;;  %5021 = vmatprep.subr.bf16.mxu1 %v6644_v59 }
 0x292   :  { %3952 = vmatprep.mubr.msk.f32.mxu0 %vm5711_vm0, %v6645_v4  ;;  %3987 = vmatprep.mubr.msk.f32.mxu1 %vm5711_vm0, %v6645_v4 }
 0x294   :  { %4999 = vmatpush3.bf16.msra.mxu0 %v5878_v38  ;;  %5023 = vmatpush3.bf16.msra.mxu1 %v5882_v42 }
 0x295   :  { %5000 = vmatprep.subr.bf16.mxu0 %v6644_v59  ;;  %5024 = vmatprep.subr.bf16.mxu1 %v6644_v59 }
 0x298   :  { %5002 = vmatpush3.bf16.msra.mxu0 %v5890_v49  ;;  %5026 = vmatpush3.bf16.msra.mxu1 %v5894_v50 }
 0x299   :  { %5003 = vmatprep.subr.bf16.mxu0 %v6644_v59  ;;  %5027 = vmatprep.subr.bf16.mxu1 %v6644_v59 }
 0x29c   :  { %5005 = vmatpush3.bf16.msra.mxu0 %v5898_v57  ;;  %5029 = vmatpush3.bf16.msra.mxu1 %v5902_v58 }
 0x29d   :  { %5006 = vmatprep.subr.bf16.mxu0 %v6644_v59  ;;  %5030 = vmatprep.subr.bf16.mxu1 %v6644_v59 }
 0x2a0   :  { %5008 = vmatpush3.bf16.msra.mxu0 %v5906_v2  ;;  %5032 = vmatpush3.bf16.msra.mxu1 %v5910_v3 }
 0x2a1   :  { %5009 = vmatprep.subr.bf16.mxu0 %v6644_v59  ;;  %5033 = vmatprep.subr.bf16.mxu1 %v6644_v59 }
 0x2a4   :  { %5011 = vmatpush3.bf16.msra.mxu0 %v5914_v10  ;;  %5035 = vmatpush3.bf16.msra.mxu1 %v5918_v11 }
 0x2a5   :  { %5012 = vmatprep.subr.bf16.mxu0 %v6644_v59  ;;  %5036 = vmatprep.subr.bf16.mxu1 %v6644_v59 }
 0x2a8   :  { %5014 = vmatpush3.bf16.msra.mxu0 %v5922_v18  ;;  %5038 = vmatpush3.bf16.msra.mxu1 %v5926_v21 }
 0x2a9   :  { %5015 = vmatprep.subr.bf16.mxu0 %v6644_v59  ;;  %5039 = vmatprep.subr.bf16.mxu1 %v6644_v59 }
 0x2ac   :  { %5017 = vmatpush3.bf16.msra.mxu0 %v5930_v28  ;;  %5041 = vmatpush3.bf16.msra.mxu1 %v5934_v29 }
 0x2ad   :  { %5042 = vmatprep.subr.bf16.mxu0 %v6644_v59  ;;  %5066 = vmatprep.subr.bf16.mxu1 %v6644_v59 }
 0x2af   :  { %3953 = vmatmul.mubr.f32.vlgmr.msra.gmra.mrb[26].mxu0 %v1094_v22  ;;  %3988 = vmatmul.mubr.f32.vlgmr.msra.gmra.mrb[26].mxu1 %v1094_v22 }
 0x2b0   :  { %5044 = vmatpush3.bf16.msra.mxu0 %v5766_v39  ;;  %5068 = vmatpush3.bf16.msra.mxu1 %v5769_v41 }
 0x2b1   :  { %5045 = vmatprep.subr.bf16.mxu0 %v6644_v59  ;;  %5069 = vmatprep.subr.bf16.mxu1 %v6644_v59 }
 0x2b2   :  { %4022 = vmatprep.mubr.msk.f32.mxu0 %vm5711_vm0, %v6645_v4  ;;  %4057 = vmatprep.mubr.msk.f32.mxu1 %vm5711_vm0, %v6645_v4 }
 0x2b4   :  { %5047 = vmatpush3.bf16.msra.mxu0 %v5776_v47  ;;  %5071 = vmatpush3.bf16.msra.mxu1 %v5780_v48 }
 0x2b5   :  { %5048 = vmatprep.subr.bf16.mxu0 %v6644_v59  ;;  %5072 = vmatprep.subr.bf16.mxu1 %v6644_v59 }
 0x2b8   :  { %5050 = vmatpush3.bf16.msra.mxu0 %v5789_v54  ;;  %5074 = vmatpush3.bf16.msra.mxu1 %v5793_v55 }
 0x2b9   :  { %5051 = vmatprep.subr.bf16.mxu0 %v6644_v59  ;;  %5075 = vmatprep.subr.bf16.mxu1 %v6644_v59 }
 0x2bc   :  { %5053 = vmatpush3.bf16.msra.mxu0 %v5802_v61  ;;  %5077 = vmatpush3.bf16.msra.mxu1 %v5806_v62 }
 0x2bd   :  { %5054 = vmatprep.subr.bf16.mxu0 %v6644_v59  ;;  %5078 = vmatprep.subr.bf16.mxu1 %v6644_v59 }
 0x2c0   :  { %5056 = vmatpush3.bf16.msra.mxu0 %v5815_v5  ;;  %5080 = vmatpush3.bf16.msra.mxu1 %v5819_v6 }
 0x2c1   :  { %5057 = vmatprep.subr.bf16.mxu0 %v6644_v59  ;;  %5081 = vmatprep.subr.bf16.mxu1 %v6644_v59 }
 0x2c4   :  { %5059 = vmatpush3.bf16.msra.mxu0 %v5828_v12  ;;  %5083 = vmatpush3.bf16.msra.mxu1 %v5832_v13 }
 0x2c5   :  { %5060 = vmatprep.subr.bf16.mxu0 %v6644_v59  ;;  %5084 = vmatprep.subr.bf16.mxu1 %v6644_v59 }
 0x2c8   :  { %5062 = vmatpush3.bf16.msra.mxu0 %v5841_v19  ;;  %5086 = vmatpush3.bf16.msra.mxu1 %v5845_v20 }
 0x2c9   :  { %5063 = vmatprep.subr.bf16.mxu0 %v6644_v59  ;;  %5087 = vmatprep.subr.bf16.mxu1 %v6644_v59 }
 0x2cc   :  { %5065 = vmatpush3.bf16.msra.mxu0 %v5854_v26  ;;  %5089 = vmatpush3.bf16.msra.mxu1 %v5858_v27 }
 0x2cd   :  { %5090 = vmatprep.subr.bf16.mxu0 %v6644_v59  ;;  %5114 = vmatprep.subr.bf16.mxu1 %v6644_v59 }
 0x362   :  { %v1168_v53 = vpop.f32.mrb[24].mxu0  ;;  %v1245_v35 = vpop.f32.mrb[24].mxu1 }
 0x363   :  { %v1172_v43 = vadd.f32 %v1168_v53, %v6004_v16  ;;  %v1249_v1 = vadd.f32 %v1245_v35, %v6009_v24  ;;  %v3884_v34 = vpop.f32.mrb[25].mxu0  ;;  %v3919_v46 = vpop.f32.mrb[25].mxu1 }
 0x364   :  { %v6647_v46 = vld [vmem:[#allocation13_spill] sm:$0xff] }
 0x365   :  { %v3003_v37 = vmul.f32 -1.442695, %v1249_v1  ;;  %v3002_v40 = vmul.f32 -1.442695, %v1172_v43  ;;  %v6646_v1 = vld [vmem:[#allocation11_spill] sm:$0xff] }
 0x367   :  { %5561 = vpow2.f32 %v3003_v37 }
 0x368   :  { %5563 = vpow2.f32 %v3002_v40 }
 0x371   :  { %v5562_v25 = vpop.eup %5561 }
 0x372   :  { %v5564_v0 = vpop.eup %5563  ;;  %v1253_v44 = vadd.f32 1.0, %v5562_v25 }
 0x373   :  { %v1176_v63 = vadd.f32 1.0, %v5564_v0 }
 0x374   :  { %5565 = vrcp.f32 %v1253_v44 }
 0x375   :  { %5567 = vrcp.f32 %v1176_v63 }
 0x37e   :  { %v5566_v9 = vpop.eup %5565 }
 0x37f   :  { %v5568_v36 = vpop.eup %5567  ;;  %v1405_v56 = vmul.f32 %v5566_v9, %v6153_v52  ;;  %v6649_v9 = vld [vmem:[#allocation14_spill] sm:$0xff] }
 0x382   :  { %v1322_v51 = vpop.f32.mrb[26].mxu0  ;;  %v1394_v8 = vpop.f32.mrb[26].mxu1 }
 0x383   :  { %v1326_v60 = vadd.f32 %v1322_v51, %v6007_v23  ;;  %v1398_v15 = vadd.f32 %v1394_v8, %v6012_v30  ;;  %v3954_v16 = vpop.f32.mrb[27].mxu0  ;;  %v3989_v17 = vpop.f32.mrb[27].mxu1 }
 0x384   :  { %v6648_v17 = vld [vmem:[#allocation12_spill] sm:$0xff] }
 0x385   :  { %5569 = vtanh.f32 %v1326_v60  ;;  %v3004_v24 = vmul.f32 -1.442695, %v1398_v15 }
 0x387   :  { %5571 = vpow2.f32 %v3004_v24 }
 0x38f   :  { %v5570_v45 = vpop.eup %5569 }
 0x390   :  { %v1406_v7 = vmul.f32 %v5570_v45, %v5568_v36 }
 0x391   :  { %v5572_v14 = vpop.eup %5571 }
 0x392   :  { %v6236_v22 = vadd.f32 %v1406_v7, %v1405_v56  ;;  %v1402_v53 = vadd.f32 1.0, %v5572_v14 }
 0x394   :  { %5573 = vtanh.f32 %v6236_v22 }
 0x395   :  { %5575 = vrcp.f32 %v1402_v53 }
 0x39e   :  { %v5574_v23 = vpop.eup %5573 }
 0x39f   :  { %v5576_v30 = vpop.eup %5575 }
 0x3a0   :  { %v1409_v35 = vmul.f32 %v5576_v30, %v5574_v23 }
 0x3a2   :  { %3005 = vst [vmem:[%s6620_s4 + $0x10] sm:$0xff] %v1409_v35  ;;  %4023 = vmatmul.mubr.f32.vlgmr.msra.gmra.mrb[28].mxu0 %v1409_v35  ;;  %4058 = vmatmul.mubr.f32.vlgmr.msra.gmra.mrb[28].mxu1 %v1409_v35 }
 0x3a3   :  { %5092 = vmatpush3.bf16.msra.mxu0 %v5864_v32  ;;  %5116 = vmatpush3.bf16.msra.mxu1 %v5869_v33 }
 0x3a4   :  { %5093 = vmatprep.subr.bf16.mxu0 %v6644_v59  ;;  %5117 = vmatprep.subr.bf16.mxu1 %v6644_v59 }
 0x3a5   :  { %4092 = vmatprep.mubr.msk.f32.mxu0 %vm5711_vm0, %v6645_v4  ;;  %4127 = vmatprep.mubr.msk.f32.mxu1 %vm5711_vm0, %v6645_v4 }
 0x3a7   :  { %5095 = vmatpush3.bf16.msra.mxu0 %v5878_v38  ;;  %5119 = vmatpush3.bf16.msra.mxu1 %v5882_v42 }
 0x3a8   :  { %5096 = vmatprep.subr.bf16.mxu0 %v6644_v59  ;;  %5120 = vmatprep.subr.bf16.mxu1 %v6644_v59 }
 0x3ab   :  { %5098 = vmatpush3.bf16.msra.mxu0 %v5890_v49  ;;  %5122 = vmatpush3.bf16.msra.mxu1 %v5894_v50 }
 0x3ac   :  { %5099 = vmatprep.subr.bf16.mxu0 %v6644_v59  ;;  %5123 = vmatprep.subr.bf16.mxu1 %v6644_v59 }
 0x3af   :  { %5101 = vmatpush3.bf16.msra.mxu0 %v5898_v57  ;;  %5125 = vmatpush3.bf16.msra.mxu1 %v5902_v58 }
 0x3b0   :  { %5102 = vmatprep.subr.bf16.mxu0 %v6644_v59  ;;  %5126 = vmatprep.subr.bf16.mxu1 %v6644_v59 }
 0x3b3   :  { %5104 = vmatpush3.bf16.msra.mxu0 %v5906_v2  ;;  %5128 = vmatpush3.bf16.msra.mxu1 %v5910_v3 }
 0x3b4   :  { %5105 = vmatprep.subr.bf16.mxu0 %v6644_v59  ;;  %5129 = vmatprep.subr.bf16.mxu1 %v6644_v59 }
 0x3b7   :  { %5107 = vmatpush3.bf16.msra.mxu0 %v5914_v10  ;;  %5131 = vmatpush3.bf16.msra.mxu1 %v5918_v11 }
 0x3b8   :  { %5108 = vmatprep.subr.bf16.mxu0 %v6644_v59  ;;  %5132 = vmatprep.subr.bf16.mxu1 %v6644_v59 }
 0x3bb   :  { %5110 = vmatpush3.bf16.msra.mxu0 %v5922_v18  ;;  %5134 = vmatpush3.bf16.msra.mxu1 %v5926_v21 }
 0x3bc   :  { %5111 = vmatprep.subr.bf16.mxu0 %v6644_v59  ;;  %5135 = vmatprep.subr.bf16.mxu1 %v6644_v59 }
 0x3bf   :  { %5113 = vmatpush3.bf16.msra.mxu0 %v5930_v28  ;;  %5137 = vmatpush3.bf16.msra.mxu1 %v5934_v29 }
 0x3c0   :  { %5138 = vmatprep.subr.bf16.mxu0 %v6644_v59  ;;  %5162 = vmatprep.subr.bf16.mxu1 %v6644_v59 }
 0x3c2   :  { %4093 = vmatmul.mubr.f32.vlgmr.msra.gmra.mrb[30].mxu0 %v1409_v35  ;;  %4128 = vmatmul.mubr.f32.vlgmr.msra.gmra.mrb[30].mxu1 %v1409_v35 }
 0x3c3   :  { %5140 = vmatpush3.bf16.msra.mxu0 %v5766_v39  ;;  %5164 = vmatpush3.bf16.msra.mxu1 %v5769_v41 }
 0x3c4   :  { %5141 = vmatprep.subr.bf16.mxu0 %v6644_v59  ;;  %5165 = vmatprep.subr.bf16.mxu1 %v6644_v59 }
 0x3c5   :  { %4162 = vmatprep.mubr.msk.f32.mxu0 %vm5711_vm0, %v6645_v4  ;;  %4197 = vmatprep.mubr.msk.f32.mxu1 %vm5711_vm0, %v6645_v4 }
 0x3c7   :  { %5143 = vmatpush3.bf16.msra.mxu0 %v5776_v47  ;;  %5167 = vmatpush3.bf16.msra.mxu1 %v5780_v48 }
 0x3c8   :  { %5144 = vmatprep.subr.bf16.mxu0 %v6644_v59  ;;  %5168 = vmatprep.subr.bf16.mxu1 %v6644_v59 }
 0x3cb   :  { %5146 = vmatpush3.bf16.msra.mxu0 %v5789_v54  ;;  %5170 = vmatpush3.bf16.msra.mxu1 %v5793_v55 }
 0x3cc   :  { %5147 = vmatprep.subr.bf16.mxu0 %v6644_v59  ;;  %5171 = vmatprep.subr.bf16.mxu1 %v6644_v59 }
 0x3cf   :  { %5149 = vmatpush3.bf16.msra.mxu0 %v5802_v61  ;;  %5173 = vmatpush3.bf16.msra.mxu1 %v5806_v62 }
 0x3d0   :  { %5150 = vmatprep.subr.bf16.mxu0 %v6644_v59  ;;  %5174 = vmatprep.subr.bf16.mxu1 %v6644_v59 }
 0x3d3   :  { %5152 = vmatpush3.bf16.msra.mxu0 %v5815_v5  ;;  %5176 = vmatpush3.bf16.msra.mxu1 %v5819_v6 }
 0x3d4   :  { %5153 = vmatprep.subr.bf16.mxu0 %v6644_v59  ;;  %5177 = vmatprep.subr.bf16.mxu1 %v6644_v59 }
 0x3d7   :  { %5155 = vmatpush3.bf16.msra.mxu0 %v5828_v12  ;;  %5179 = vmatpush3.bf16.msra.mxu1 %v5832_v13 }
 0x3d8   :  { %5156 = vmatprep.subr.bf16.mxu0 %v6644_v59  ;;  %5180 = vmatprep.subr.bf16.mxu1 %v6644_v59 }
 0x3db   :  { %5158 = vmatpush3.bf16.msra.mxu0 %v5841_v19  ;;  %5182 = vmatpush3.bf16.msra.mxu1 %v5845_v20 }
 0x3dc   :  { %5159 = vmatprep.subr.bf16.mxu0 %v6644_v59  ;;  %5183 = vmatprep.subr.bf16.mxu1 %v6644_v59 }
 0x3df   :  { %5161 = vmatpush3.bf16.msra.mxu0 %v5854_v26  ;;  %5185 = vmatpush3.bf16.msra.mxu1 %v5858_v27 }
 0x3e0   :  { %5186 = vmatprep.subr.bf16.mxu0 %v6644_v59  ;;  %5210 = vmatprep.subr.bf16.mxu1 %v6644_v59 }
 0x475   :  { %v1483_v52 = vpop.f32.mrb[28].mxu0  ;;  %v1560_v43 = vpop.f32.mrb[28].mxu1 }
 0x476   :  { %v1487_v34 = vadd.f32 %v1483_v52, %v6646_v1  ;;  %v1564_v37 = vadd.f32 %v1560_v43, %v6647_v46  ;;  %v4024_v40 = vpop.f32.mrb[29].mxu0  ;;  %v4059_v25 = vpop.f32.mrb[29].mxu1 }
 0x477   :  { %v6650_v25 = vld [vmem:[#allocation15_spill] sm:$0xff] }
 0x478   :  { %v3007_v0 = vmul.f32 -1.442695, %v1564_v37  ;;  %v3006_v44 = vmul.f32 -1.442695, %v1487_v34 }
 0x47a   :  { %5577 = vpow2.f32 %v3007_v0 }
 0x47b   :  { %5579 = vpow2.f32 %v3006_v44  ;;  %v6651_v44 = vld [vmem:[#allocation17_spill] sm:$0xff] }
 0x484   :  { %v5578_v63 = vpop.eup %5577 }
 0x485   :  { %v5580_v51 = vpop.eup %5579  ;;  %v1568_v8 = vadd.f32 1.0, %v5578_v63 }
 0x486   :  { %v1491_v60 = vadd.f32 1.0, %v5580_v51 }
 0x487   :  { %5581 = vrcp.f32 %v1568_v8 }
 0x488   :  { %5583 = vrcp.f32 %v1491_v60 }
 0x491   :  { %v5582_v14 = vpop.eup %5581 }
 0x492   :  { %v5584_v53 = vpop.eup %5583  ;;  %v1720_v30 = vmul.f32 %v5582_v14, %v6236_v22  ;;  %v6653_v14 = vld [vmem:[#allocation18_spill] sm:$0xff] }
 0x495   :  { %v1637_v15 = vpop.f32.mrb[30].mxu0  ;;  %v1709_v16 = vpop.f32.mrb[30].mxu1 }
 0x496   :  { %v1641_v24 = vadd.f32 %v1637_v15, %v6648_v17  ;;  %v1713_v36 = vadd.f32 %v1709_v16, %v6649_v9  ;;  %v4094_v45 = vpop.f32.mrb[31].mxu0  ;;  %v4129_v56 = vpop.f32.mrb[31].mxu1 }
 0x497   :  { %v6652_v56 = vld [vmem:[#allocation16_spill] sm:$0xff] }
 0x498   :  { %5585 = vtanh.f32 %v1641_v24  ;;  %v3008_v7 = vmul.f32 -1.442695, %v1713_v36 }
 0x49a   :  { %5587 = vpow2.f32 %v3008_v7 }
 0x4a2   :  { %v5586_v23 = vpop.eup %5585 }
 0x4a3   :  { %v1721_v35 = vmul.f32 %v5586_v23, %v5584_v53 }
 0x4a4   :  { %v5588_v52 = vpop.eup %5587 }
 0x4a5   :  { %v6319_v43 = vadd.f32 %v1721_v35, %v1720_v30  ;;  %v1717_v1 = vadd.f32 1.0, %v5588_v52 }
 0x4a7   :  { %5589 = vtanh.f32 %v6319_v43 }
 0x4a8   :  { %5591 = vrcp.f32 %v1717_v1 }
 0x4b1   :  { %v5590_v34 = vpop.eup %5589 }
 0x4b2   :  { %v5592_v46 = vpop.eup %5591 }
 0x4b3   :  { %v1724_v37 = vmul.f32 %v5592_v46, %v5590_v34 }
 0x4b5   :  { %3009 = vst [vmem:[%s6620_s4 + $0x18] sm:$0xff] %v1724_v37  ;;  %4163 = vmatmul.mubr.f32.vlgmr.msra.gmra.mrb[32].mxu0 %v1724_v37  ;;  %4198 = vmatmul.mubr.f32.vlgmr.msra.gmra.mrb[32].mxu1 %v1724_v37 }
 0x4b6   :  { %5188 = vmatpush3.bf16.msra.mxu0 %v5864_v32  ;;  %5212 = vmatpush3.bf16.msra.mxu1 %v5869_v33 }
 0x4b7   :  { %5189 = vmatprep.subr.bf16.mxu0 %v6644_v59  ;;  %5213 = vmatprep.subr.bf16.mxu1 %v6644_v59 }
 0x4b8   :  { %4232 = vmatprep.mubr.msk.f32.mxu0 %vm5711_vm0, %v6645_v4  ;;  %4267 = vmatprep.mubr.msk.f32.mxu1 %vm5711_vm0, %v6645_v4 }
 0x4ba   :  { %5191 = vmatpush3.bf16.msra.mxu0 %v5878_v38  ;;  %5215 = vmatpush3.bf16.msra.mxu1 %v5882_v42 }
 0x4bb   :  { %5192 = vmatprep.subr.bf16.mxu0 %v6644_v59  ;;  %5216 = vmatprep.subr.bf16.mxu1 %v6644_v59 }
 0x4be   :  { %5194 = vmatpush3.bf16.msra.mxu0 %v5890_v49  ;;  %5218 = vmatpush3.bf16.msra.mxu1 %v5894_v50 }
 0x4bf   :  { %5195 = vmatprep.subr.bf16.mxu0 %v6644_v59  ;;  %5219 = vmatprep.subr.bf16.mxu1 %v6644_v59 }
 0x4c2   :  { %5197 = vmatpush3.bf16.msra.mxu0 %v5898_v57  ;;  %5221 = vmatpush3.bf16.msra.mxu1 %v5902_v58 }
 0x4c3   :  { %5198 = vmatprep.subr.bf16.mxu0 %v6644_v59  ;;  %5222 = vmatprep.subr.bf16.mxu1 %v6644_v59 }
 0x4c6   :  { %5200 = vmatpush3.bf16.msra.mxu0 %v5906_v2  ;;  %5224 = vmatpush3.bf16.msra.mxu1 %v5910_v3 }
 0x4c7   :  { %5201 = vmatprep.subr.bf16.mxu0 %v6644_v59  ;;  %5225 = vmatprep.subr.bf16.mxu1 %v6644_v59 }
 0x4ca   :  { %5203 = vmatpush3.bf16.msra.mxu0 %v5914_v10  ;;  %5227 = vmatpush3.bf16.msra.mxu1 %v5918_v11 }
 0x4cb   :  { %5204 = vmatprep.subr.bf16.mxu0 %v6644_v59  ;;  %5228 = vmatprep.subr.bf16.mxu1 %v6644_v59 }
 0x4ce   :  { %5206 = vmatpush3.bf16.msra.mxu0 %v5922_v18  ;;  %5230 = vmatpush3.bf16.msra.mxu1 %v5926_v21 }
 0x4cf   :  { %5207 = vmatprep.subr.bf16.mxu0 %v6644_v59  ;;  %5231 = vmatprep.subr.bf16.mxu1 %v6644_v59 }
 0x4d2   :  { %5209 = vmatpush3.bf16.msra.mxu0 %v5930_v28  ;;  %5233 = vmatpush3.bf16.msra.mxu1 %v5934_v29 }
 0x4d3   :  { %5234 = vmatprep.subr.bf16.mxu0 %v6644_v59  ;;  %5258 = vmatprep.subr.bf16.mxu1 %v6644_v59 }
 0x4d5   :  { %4233 = vmatmul.mubr.f32.vlgmr.msra.gmra.mrb[34].mxu0 %v1724_v37  ;;  %4268 = vmatmul.mubr.f32.vlgmr.msra.gmra.mrb[34].mxu1 %v1724_v37 }
 0x4d6   :  { %5236 = vmatpush3.bf16.msra.mxu0 %v5766_v39  ;;  %5260 = vmatpush3.bf16.msra.mxu1 %v5769_v41 }
 0x4d7   :  { %5237 = vmatprep.subr.bf16.mxu0 %v6644_v59  ;;  %5261 = vmatprep.subr.bf16.mxu1 %v6644_v59 }
 0x4d8   :  { %4302 = vmatprep.mubr.msk.f32.mxu0 %vm5711_vm0, %v6645_v4  ;;  %4337 = vmatprep.mubr.msk.f32.mxu1 %vm5711_vm0, %v6645_v4 }
 0x4da   :  { %5239 = vmatpush3.bf16.msra.mxu0 %v5776_v47  ;;  %5263 = vmatpush3.bf16.msra.mxu1 %v5780_v48 }
 0x4db   :  { %5240 = vmatprep.subr.bf16.mxu0 %v6644_v59  ;;  %5264 = vmatprep.subr.bf16.mxu1 %v6644_v59 }
 0x4de   :  { %5242 = vmatpush3.bf16.msra.mxu0 %v5789_v54  ;;  %5266 = vmatpush3.bf16.msra.mxu1 %v5793_v55 }
 0x4df   :  { %5243 = vmatprep.subr.bf16.mxu0 %v6644_v59  ;;  %5267 = vmatprep.subr.bf16.mxu1 %v6644_v59 }
 0x4e2   :  { %5245 = vmatpush3.bf16.msra.mxu0 %v5802_v61  ;;  %5269 = vmatpush3.bf16.msra.mxu1 %v5806_v62 }
 0x4e3   :  { %5246 = vmatprep.subr.bf16.mxu0 %v6644_v59  ;;  %5270 = vmatprep.subr.bf16.mxu1 %v6644_v59 }
 0x4e6   :  { %5248 = vmatpush3.bf16.msra.mxu0 %v5815_v5  ;;  %5272 = vmatpush3.bf16.msra.mxu1 %v5819_v6 }
 0x4e7   :  { %5249 = vmatprep.subr.bf16.mxu0 %v6644_v59  ;;  %5273 = vmatprep.subr.bf16.mxu1 %v6644_v59 }
 0x4ea   :  { %5251 = vmatpush3.bf16.msra.mxu0 %v5828_v12  ;;  %5275 = vmatpush3.bf16.msra.mxu1 %v5832_v13 }
 0x4eb   :  { %5252 = vmatprep.subr.bf16.mxu0 %v6644_v59  ;;  %5276 = vmatprep.subr.bf16.mxu1 %v6644_v59 }
 0x4ee   :  { %5254 = vmatpush3.bf16.msra.mxu0 %v5841_v19  ;;  %5278 = vmatpush3.bf16.msra.mxu1 %v5845_v20 }
 0x4ef   :  { %5255 = vmatprep.subr.bf16.mxu0 %v6644_v59  ;;  %5279 = vmatprep.subr.bf16.mxu1 %v6644_v59 }
 0x4f2   :  { %5257 = vmatpush3.bf16.msra.mxu0 %v5854_v26  ;;  %5281 = vmatpush3.bf16.msra.mxu1 %v5858_v27 }
 0x4f3   :  { %5282 = vmatprep.subr.bf16.mxu0 %v6644_v59  ;;  %5306 = vmatprep.subr.bf16.mxu1 %v6644_v59 }
 0x588   :  { %v1798_v22 = vpop.f32.mrb[32].mxu0  ;;  %v1875_v40 = vpop.f32.mrb[32].mxu1 }
 0x589   :  { %v1802_v0 = vadd.f32 %v1798_v22, %v6650_v25  ;;  %v1879_v63 = vadd.f32 %v1875_v40, %v6651_v44  ;;  %v4164_v51 = vpop.f32.mrb[33].mxu0  ;;  %v4199_v8 = vpop.f32.mrb[33].mxu1 }
 0x58a   :  { %v6654_v8 = vld [vmem:[#allocation19_spill] sm:$0xff] }
 0x58b   :  { %v3011_v60 = vmul.f32 -1.442695, %v1879_v63  ;;  %v3010_v15 = vmul.f32 -1.442695, %v1802_v0 }
 0x58d   :  { %5593 = vpow2.f32 %v3011_v60 }
 0x58e   :  { %5595 = vpow2.f32 %v3010_v15  ;;  %v6655_v15 = vld [vmem:[#allocation21_spill] sm:$0xff] }
 0x597   :  { %v5594_v16 = vpop.eup %5593 }
 0x598   :  { %v5596_v17 = vpop.eup %5595  ;;  %v1883_v24 = vadd.f32 1.0, %v5594_v16 }
 0x599   :  { %v1806_v9 = vadd.f32 1.0, %v5596_v17 }
 0x59a   :  { %5597 = vrcp.f32 %v1883_v24 }
 0x59b   :  { %5599 = vrcp.f32 %v1806_v9 }
 0x5a4   :  { %v5598_v52 = vpop.eup %5597 }
 0x5a5   :  { %v5600_v1 = vpop.eup %5599  ;;  %v2035_v46 = vmul.f32 %v5598_v52, %v6319_v43  ;;  %v6657_v52 = vld [vmem:[#allocation22_spill] sm:$0xff] }
 0x5a8   :  { %v1952_v36 = vpop.f32.mrb[34].mxu0  ;;  %v2024_v45 = vpop.f32.mrb[34].mxu1 }
 0x5a9   :  { %v1956_v7 = vadd.f32 %v1952_v36, %v6652_v56  ;;  %v2028_v53 = vadd.f32 %v2024_v45, %v6653_v14  ;;  %v4234_v23 = vpop.f32.mrb[35].mxu0  ;;  %v4269_v30 = vpop.f32.mrb[35].mxu1 }
 0x5aa   :  { %v6656_v30 = vld [vmem:[#allocation20_spill] sm:$0xff] }
 0x5ab   :  { %5601 = vtanh.f32 %v1956_v7  ;;  %v3012_v35 = vmul.f32 -1.442695, %v2028_v53 }
 0x5ad   :  { %5603 = vpow2.f32 %v3012_v35 }
 0x5b5   :  { %v5602_v34 = vpop.eup %5601 }
 0x5b6   :  { %v2036_v37 = vmul.f32 %v5602_v34, %v5600_v1 }
 0x5b7   :  { %v5604_v22 = vpop.eup %5603 }
 0x5b8   :  { %v6402_v40 = vadd.f32 %v2036_v37, %v2035_v46  ;;  %v2032_v25 = vadd.f32 1.0, %v5604_v22 }
 0x5ba   :  { %5605 = vtanh.f32 %v6402_v40 }
 0x5bb   :  { %5607 = vrcp.f32 %v2032_v25 }
 0x5c4   :  { %v5606_v0 = vpop.eup %5605 }
 0x5c5   :  { %v5608_v44 = vpop.eup %5607 }
 0x5c6   :  { %v2039_v63 = vmul.f32 %v5608_v44, %v5606_v0 }
 0x5c8   :  { %3013 = vst [vmem:[%s6620_s4 + $0x20] sm:$0xff] %v2039_v63  ;;  %4303 = vmatmul.mubr.f32.vlgmr.msra.gmra.mrb[36].mxu0 %v2039_v63  ;;  %4338 = vmatmul.mubr.f32.vlgmr.msra.gmra.mrb[36].mxu1 %v2039_v63 }
 0x5c9   :  { %5284 = vmatpush3.bf16.msra.mxu0 %v5864_v32  ;;  %5308 = vmatpush3.bf16.msra.mxu1 %v5869_v33 }
 0x5ca   :  { %5285 = vmatprep.subr.bf16.mxu0 %v6644_v59  ;;  %5309 = vmatprep.subr.bf16.mxu1 %v6644_v59 }
 0x5cb   :  { %4372 = vmatprep.mubr.msk.f32.mxu0 %vm5711_vm0, %v6645_v4  ;;  %4407 = vmatprep.mubr.msk.f32.mxu1 %vm5711_vm0, %v6645_v4 }
 0x5cd   :  { %5287 = vmatpush3.bf16.msra.mxu0 %v5878_v38  ;;  %5311 = vmatpush3.bf16.msra.mxu1 %v5882_v42 }
 0x5ce   :  { %5288 = vmatprep.subr.bf16.mxu0 %v6644_v59  ;;  %5312 = vmatprep.subr.bf16.mxu1 %v6644_v59 }
 0x5d1   :  { %5290 = vmatpush3.bf16.msra.mxu0 %v5890_v49  ;;  %5314 = vmatpush3.bf16.msra.mxu1 %v5894_v50 }
 0x5d2   :  { %5291 = vmatprep.subr.bf16.mxu0 %v6644_v59  ;;  %5315 = vmatprep.subr.bf16.mxu1 %v6644_v59 }
 0x5d5   :  { %5293 = vmatpush3.bf16.msra.mxu0 %v5898_v57  ;;  %5317 = vmatpush3.bf16.msra.mxu1 %v5902_v58 }
 0x5d6   :  { %5294 = vmatprep.subr.bf16.mxu0 %v6644_v59  ;;  %5318 = vmatprep.subr.bf16.mxu1 %v6644_v59 }
 0x5d9   :  { %5296 = vmatpush3.bf16.msra.mxu0 %v5906_v2  ;;  %5320 = vmatpush3.bf16.msra.mxu1 %v5910_v3 }
 0x5da   :  { %5297 = vmatprep.subr.bf16.mxu0 %v6644_v59  ;;  %5321 = vmatprep.subr.bf16.mxu1 %v6644_v59 }
 0x5dd   :  { %5299 = vmatpush3.bf16.msra.mxu0 %v5914_v10  ;;  %5323 = vmatpush3.bf16.msra.mxu1 %v5918_v11 }
 0x5de   :  { %5300 = vmatprep.subr.bf16.mxu0 %v6644_v59  ;;  %5324 = vmatprep.subr.bf16.mxu1 %v6644_v59 }
 0x5e1   :  { %5302 = vmatpush3.bf16.msra.mxu0 %v5922_v18  ;;  %5326 = vmatpush3.bf16.msra.mxu1 %v5926_v21 }
 0x5e2   :  { %5303 = vmatprep.subr.bf16.mxu0 %v6644_v59  ;;  %5327 = vmatprep.subr.bf16.mxu1 %v6644_v59 }
 0x5e5   :  { %5305 = vmatpush3.bf16.msra.mxu0 %v5930_v28  ;;  %5329 = vmatpush3.bf16.msra.mxu1 %v5934_v29 }
 0x5e6   :  { %5330 = vmatprep.subr.bf16.mxu0 %v6644_v59  ;;  %5354 = vmatprep.subr.bf16.mxu1 %v6644_v59 }
 0x5e8   :  { %4373 = vmatmul.mubr.f32.vlgmr.msra.gmra.mrb[38].mxu0 %v2039_v63  ;;  %4408 = vmatmul.mubr.f32.vlgmr.msra.gmra.mrb[38].mxu1 %v2039_v63 }
 0x5e9   :  { %5332 = vmatpush3.bf16.msra.mxu0 %v5766_v39  ;;  %5356 = vmatpush3.bf16.msra.mxu1 %v5769_v41 }
 0x5ea   :  { %5333 = vmatprep.subr.bf16.mxu0 %v6644_v59  ;;  %5357 = vmatprep.subr.bf16.mxu1 %v6644_v59 }
 0x5eb   :  { %4442 = vmatprep.mubr.msk.f32.mxu0 %vm5711_vm0, %v6645_v4  ;;  %4477 = vmatprep.mubr.msk.f32.mxu1 %vm5711_vm0, %v6645_v4 }
 0x5ed   :  { %5335 = vmatpush3.bf16.msra.mxu0 %v5776_v47  ;;  %5359 = vmatpush3.bf16.msra.mxu1 %v5780_v48 }
 0x5ee   :  { %5336 = vmatprep.subr.bf16.mxu0 %v6644_v59  ;;  %5360 = vmatprep.subr.bf16.mxu1 %v6644_v59 }
 0x5f1   :  { %5338 = vmatpush3.bf16.msra.mxu0 %v5789_v54  ;;  %5362 = vmatpush3.bf16.msra.mxu1 %v5793_v55 }
 0x5f2   :  { %5339 = vmatprep.subr.bf16.mxu0 %v6644_v59  ;;  %5363 = vmatprep.subr.bf16.mxu1 %v6644_v59 }
 0x5f5   :  { %5341 = vmatpush3.bf16.msra.mxu0 %v5802_v61  ;;  %5365 = vmatpush3.bf16.msra.mxu1 %v5806_v62 }
 0x5f6   :  { %5342 = vmatprep.subr.bf16.mxu0 %v6644_v59  ;;  %5366 = vmatprep.subr.bf16.mxu1 %v6644_v59 }
 0x5f9   :  { %5344 = vmatpush3.bf16.msra.mxu0 %v5815_v5  ;;  %5368 = vmatpush3.bf16.msra.mxu1 %v5819_v6 }
 0x5fa   :  { %5345 = vmatprep.subr.bf16.mxu0 %v6644_v59  ;;  %5369 = vmatprep.subr.bf16.mxu1 %v6644_v59 }
 0x5fd   :  { %5347 = vmatpush3.bf16.msra.mxu0 %v5828_v12  ;;  %5371 = vmatpush3.bf16.msra.mxu1 %v5832_v13 }
 0x5fe   :  { %5348 = vmatprep.subr.bf16.mxu0 %v6644_v59  ;;  %5372 = vmatprep.subr.bf16.mxu1 %v6644_v59 }
 0x601   :  { %5350 = vmatpush3.bf16.msra.mxu0 %v5841_v19  ;;  %5374 = vmatpush3.bf16.msra.mxu1 %v5845_v20 }
 0x602   :  { %5351 = vmatprep.subr.bf16.mxu0 %v6644_v59  ;;  %5375 = vmatprep.subr.bf16.mxu1 %v6644_v59 }
 0x605   :  { %5353 = vmatpush3.bf16.msra.mxu0 %v5854_v26  ;;  %5377 = vmatpush3.bf16.msra.mxu1 %v5858_v27 }
 0x606   :  { %5378 = vmatprep.subr.bf16.mxu0 %v6644_v59  ;;  %5402 = vmatprep.subr.bf16.mxu1 %v6644_v59 }
 0x69b   :  { %v2113_v43 = vpop.f32.mrb[36].mxu0  ;;  %v2190_v51 = vpop.f32.mrb[36].mxu1 }
 0x69c   :  { %v2117_v60 = vadd.f32 %v2113_v43, %v6654_v8  ;;  %v2194_v16 = vadd.f32 %v2190_v51, %v6655_v15  ;;  %v4304_v17 = vpop.f32.mrb[37].mxu0  ;;  %v4339_v24 = vpop.f32.mrb[37].mxu1 }
 0x69d   :  { %v6661_v24 = vld [vmem:[#allocation26_spill] sm:$0xff] }
 0x69e   :  { %v3015_v9 = vmul.f32 -1.442695, %v2194_v16  ;;  %v3014_v36 = vmul.f32 -1.442695, %v2117_v60 }
 0x6a0   :  { %5609 = vpow2.f32 %v3015_v9 }
 0x6a1   :  { %5611 = vpow2.f32 %v3014_v36 }
 0x6aa   :  { %v5610_v45 = vpop.eup %5609 }
 0x6ab   :  { %v5612_v56 = vpop.eup %5611  ;;  %v2198_v7 = vadd.f32 1.0, %v5610_v45 }
 0x6ac   :  { %v2121_v14 = vadd.f32 1.0, %v5612_v56 }
 0x6ad   :  { %5613 = vrcp.f32 %v2198_v7 }
 0x6ae   :  { %5615 = vrcp.f32 %v2121_v14 }
 0x6b7   :  { %v5614_v22 = vpop.eup %5613 }
 0x6b8   :  { %v5616_v25 = vpop.eup %5615  ;;  %v2350_v44 = vmul.f32 %v5614_v22, %v6402_v40  ;;  %v6660_v40 = vld [vmem:[#allocation24_spill] sm:$0xff] }
 0x6bb   :  { %v2267_v53 = vpop.f32.mrb[38].mxu0  ;;  %v2339_v23 = vpop.f32.mrb[38].mxu1 }
 0x6bc   :  { %v2271_v35 = vadd.f32 %v2267_v53, %v6656_v30  ;;  %v2343_v1 = vadd.f32 %v2339_v23, %v6657_v52  ;;  %v4374_v34 = vpop.f32.mrb[39].mxu0  ;;  %v4409_v46 = vpop.f32.mrb[39].mxu1 }
 0x6be   :  { %5617 = vtanh.f32 %v2271_v35  ;;  %v3016_v37 = vmul.f32 -1.442695, %v2343_v1 }
 0x6c0   :  { %5619 = vpow2.f32 %v3016_v37 }
 0x6c8   :  { %v5618_v0 = vpop.eup %5617 }
 0x6c9   :  { %v2351_v63 = vmul.f32 %v5618_v0, %v5616_v25 }
 0x6ca   :  { %v5620_v43 = vpop.eup %5619 }
 0x6cb   :  { %v6485_v51 = vadd.f32 %v2351_v63, %v2350_v44  ;;  %v2347_v8 = vadd.f32 1.0, %v5620_v43 }
 0x6cd   :  { %5621 = vtanh.f32 %v6485_v51 }
 0x6ce   :  { %5623 = vrcp.f32 %v2347_v8 }
 0x6d7   :  { %v5622_v60 = vpop.eup %5621 }
 0x6d8   :  { %v5624_v15 = vpop.eup %5623 }
 0x6d9   :  { %v2354_v16 = vmul.f32 %v5624_v15, %v5622_v60 }
 0x6db   :  { %3017 = vst [vmem:[%s6620_s4 + $0x28] sm:$0xff] %v2354_v16  ;;  %4443 = vmatmul.mubr.f32.vlgmr.msra.gmra.mrb[40].mxu0 %v2354_v16  ;;  %4478 = vmatmul.mubr.f32.vlgmr.msra.gmra.mrb[40].mxu1 %v2354_v16 }
 0x6dc   :  { %5380 = vmatpush3.bf16.msra.mxu0 %v5864_v32  ;;  %5404 = vmatpush3.bf16.msra.mxu1 %v5869_v33 }
 0x6dd   :  { %5381 = vmatprep.subr.bf16.mxu0 %v6644_v59  ;;  %5405 = vmatprep.subr.bf16.mxu1 %v6644_v59 }
 0x6de   :  { %4512 = vmatprep.mubr.msk.f32.mxu0 %vm5711_vm0, %v6645_v4  ;;  %4547 = vmatprep.mubr.msk.f32.mxu1 %vm5711_vm0, %v6645_v4 }
 0x6e0   :  { %5383 = vmatpush3.bf16.msra.mxu0 %v5878_v38  ;;  %5407 = vmatpush3.bf16.msra.mxu1 %v5882_v42 }
 0x6e1   :  { %5384 = vmatprep.subr.bf16.mxu0 %v6644_v59  ;;  %5408 = vmatprep.subr.bf16.mxu1 %v6644_v59 }
 0x6e4   :  { %5386 = vmatpush3.bf16.msra.mxu0 %v5890_v49  ;;  %5410 = vmatpush3.bf16.msra.mxu1 %v5894_v50 }
 0x6e5   :  { %5387 = vmatprep.subr.bf16.mxu0 %v6644_v59  ;;  %5411 = vmatprep.subr.bf16.mxu1 %v6644_v59 }
 0x6e8   :  { %5389 = vmatpush3.bf16.msra.mxu0 %v5898_v57  ;;  %5413 = vmatpush3.bf16.msra.mxu1 %v5902_v58 }
 0x6e9   :  { %5390 = vmatprep.subr.bf16.mxu0 %v6644_v59  ;;  %5414 = vmatprep.subr.bf16.mxu1 %v6644_v59 }
 0x6ec   :  { %5392 = vmatpush3.bf16.msra.mxu0 %v5906_v2  ;;  %5416 = vmatpush3.bf16.msra.mxu1 %v5910_v3 }
 0x6ed   :  { %5393 = vmatprep.subr.bf16.mxu0 %v6644_v59  ;;  %5417 = vmatprep.subr.bf16.mxu1 %v6644_v59 }
 0x6f0   :  { %5395 = vmatpush3.bf16.msra.mxu0 %v5914_v10  ;;  %5419 = vmatpush3.bf16.msra.mxu1 %v5918_v11 }
 0x6f1   :  { %5396 = vmatprep.subr.bf16.mxu0 %v6644_v59  ;;  %5420 = vmatprep.subr.bf16.mxu1 %v6644_v59 }
 0x6f4   :  { %5398 = vmatpush3.bf16.msra.mxu0 %v5922_v18  ;;  %5422 = vmatpush3.bf16.msra.mxu1 %v5926_v21 }
 0x6f5   :  { %5399 = vmatprep.subr.bf16.mxu0 %v6644_v59  ;;  %5423 = vmatprep.subr.bf16.mxu1 %v6644_v59 }
 0x6f8   :  { %5401 = vmatpush3.bf16.msra.mxu0 %v5930_v28  ;;  %5425 = vmatpush3.bf16.msra.mxu1 %v5934_v29 }
 0x6f9   :  { %5426 = vmatprep.subr.bf16.mxu0 %v6644_v59  ;;  %5450 = vmatprep.subr.bf16.mxu1 %v6644_v59 }
 0x6fb   :  { %4513 = vmatmul.mubr.f32.vlgmr.msra.gmra.mrb[42].mxu0 %v2354_v16  ;;  %4548 = vmatmul.mubr.f32.vlgmr.msra.gmra.mrb[42].mxu1 %v2354_v16 }
 0x6fc   :  { %5428 = vmatpush3.bf16.msra.mxu0 %v5766_v39  ;;  %5452 = vmatpush3.bf16.msra.mxu1 %v5769_v41 }
 0x6fd   :  { %5429 = vmatprep.subr.bf16.mxu0 %v6644_v59  ;;  %5453 = vmatprep.subr.bf16.mxu1 %v6644_v59 }
 0x6fe   :  { %4582 = vmatprep.mubr.msk.f32.mxu0 %vm5711_vm0, %v6645_v4  ;;  %4617 = vmatprep.mubr.msk.f32.mxu1 %vm5711_vm0, %v6645_v4 }
 0x700   :  { %5431 = vmatpush3.bf16.msra.mxu0 %v5776_v47  ;;  %5455 = vmatpush3.bf16.msra.mxu1 %v5780_v48  ;;  %v6658_v47 = vld [vmem:[#allocation23_spill] sm:$0xff] }
 0x701   :  { %5432 = vmatprep.subr.bf16.mxu0 %v6644_v59  ;;  %5456 = vmatprep.subr.bf16.mxu1 %v6644_v59 }
 0x704   :  { %5434 = vmatpush3.bf16.msra.mxu0 %v5789_v54  ;;  %5458 = vmatpush3.bf16.msra.mxu1 %v5793_v55  ;;  %v6659_v54 = vld [vmem:[#allocation25_spill] sm:$0xff] }
 0x705   :  { %5435 = vmatprep.subr.bf16.mxu0 %v6644_v59  ;;  %5459 = vmatprep.subr.bf16.mxu1 %v6644_v59 }
 0x708   :  { %5437 = vmatpush3.bf16.msra.mxu0 %v5802_v61  ;;  %5461 = vmatpush3.bf16.msra.mxu1 %v5806_v62 }
 0x709   :  { %5438 = vmatprep.subr.bf16.mxu0 %v6644_v59  ;;  %5462 = vmatprep.subr.bf16.mxu1 %v6644_v59 }
 0x70c   :  { %5440 = vmatpush3.bf16.msra.mxu0 %v5815_v5  ;;  %5464 = vmatpush3.bf16.msra.mxu1 %v5819_v6 }
 0x70d   :  { %5441 = vmatprep.subr.bf16.mxu0 %v6644_v59  ;;  %5465 = vmatprep.subr.bf16.mxu1 %v6644_v59 }
 0x710   :  { %5443 = vmatpush3.bf16.msra.mxu0 %v5828_v12  ;;  %5467 = vmatpush3.bf16.msra.mxu1 %v5832_v13 }
 0x711   :  { %5444 = vmatprep.subr.bf16.mxu0 %v6644_v59  ;;  %5468 = vmatprep.subr.bf16.mxu1 %v6644_v59 }
 0x714   :  { %5446 = vmatpush3.bf16.msra.mxu0 %v5841_v19  ;;  %5470 = vmatpush3.bf16.msra.mxu1 %v5845_v20 }
 0x715   :  { %5447 = vmatprep.subr.bf16.mxu0 %v6644_v59  ;;  %5471 = vmatprep.subr.bf16.mxu1 %v6644_v59 }
 0x718   :  { %5449 = vmatpush3.bf16.msra.mxu0 %v5854_v26  ;;  %5473 = vmatpush3.bf16.msra.mxu1 %v5858_v27 }
 0x719   :  { %5474 = vmatprep.subr.bf16.mxu0 %v6644_v59  ;;  %5498 = vmatprep.subr.bf16.mxu1 %v6644_v59 }
 0x7ae   :  { %v2428_v39 = vpop.f32.mrb[40].mxu0  ;;  %v2505_v41 = vpop.f32.mrb[40].mxu1 }
 0x7af   :  { %v2432_v48 = vadd.f32 %v2428_v39, %v6658_v47  ;;  %v2509_v55 = vadd.f32 %v2505_v41, %v6659_v54  ;;  %v4444_v61 = vpop.f32.mrb[41].mxu0  ;;  %v4479_v62 = vpop.f32.mrb[41].mxu1 }
 0x7b1   :  { %v3019_v5 = vmul.f32 -1.442695, %v2509_v55  ;;  %v3018_v6 = vmul.f32 -1.442695, %v2432_v48 }
 0x7b3   :  { %5625 = vpow2.f32 %v3019_v5 }
 0x7b4   :  { %5627 = vpow2.f32 %v3018_v6 }
 0x7bd   :  { %v5626_v12 = vpop.eup %5625 }
 0x7be   :  { %v5628_v13 = vpop.eup %5627  ;;  %v2513_v19 = vadd.f32 1.0, %v5626_v12 }
 0x7bf   :  { %v2436_v20 = vadd.f32 1.0, %v5628_v13 }
 0x7c0   :  { %5629 = vrcp.f32 %v2513_v19 }
 0x7c1   :  { %5631 = vrcp.f32 %v2436_v20 }
 0x7ca   :  { %v5630_v7 = vpop.eup %5629 }
 0x7cb   :  { %v5632_v14 = vpop.eup %5631  ;;  %v2665_v23 = vmul.f32 %v5630_v7, %v6485_v51 }
 0x7ce   :  { %v2582_v26 = vpop.f32.mrb[42].mxu0  ;;  %v2654_v27 = vpop.f32.mrb[42].mxu1 }
 0x7cf   :  { %v2586_v17 = vadd.f32 %v2582_v26, %v6660_v40  ;;  %v2658_v9 = vadd.f32 %v2654_v27, %v6661_v24  ;;  %v4514_v36 = vpop.f32.mrb[43].mxu0  ;;  %v4549_v45 = vpop.f32.mrb[43].mxu1 }
 0x7d1   :  { %5633 = vtanh.f32 %v2586_v17  ;;  %v3020_v56 = vmul.f32 -1.442695, %v2658_v9 }
 0x7d3   :  { %5635 = vpow2.f32 %v3020_v56 }
 0x7db   :  { %v5634_v53 = vpop.eup %5633 }
 0x7dc   :  { %v2666_v30 = vmul.f32 %v5634_v53, %v5632_v14 }
 0x7dd   :  { %v5636_v35 = vpop.eup %5635 }
 0x7de   :  { %v6568_v52 = vadd.f32 %v2666_v30, %v2665_v23  ;;  %v2662_v1 = vadd.f32 1.0, %v5636_v35 }
 0x7e0   :  { %5637 = vtanh.f32 %v6568_v52 }
 0x7e1   :  { %5639 = vrcp.f32 %v2662_v1 }
 0x7ea   :  { %v5638_v34 = vpop.eup %5637 }
 0x7eb   :  { %v5640_v46 = vpop.eup %5639 }
 0x7ec   :  { %v2669_v37 = vmul.f32 %v5640_v46, %v5638_v34 }
 0x7ee   :  { %3021 = vst [vmem:[%s6620_s4 + $0x30] sm:$0xff] %v2669_v37  ;;  %4583 = vmatmul.mubr.f32.vlgmr.msra.gmra.mrb[44].mxu0 %v2669_v37  ;;  %4618 = vmatmul.mubr.f32.vlgmr.msra.gmra.mrb[44].mxu1 %v2669_v37 }
 0x7ef   :  { %5476 = vmatpush3.bf16.msra.mxu0 %v5864_v32  ;;  %5500 = vmatpush3.bf16.msra.mxu1 %v5869_v33 }
 0x7f0   :  { %5477 = vmatprep.subr.bf16.mxu0 %v6644_v59  ;;  %5501 = vmatprep.subr.bf16.mxu1 %v6644_v59 }
 0x7f1   :  { %4652 = vmatprep.mubr.msk.f32.mxu0 %vm5711_vm0, %v6645_v4  ;;  %4687 = vmatprep.mubr.msk.f32.mxu1 %vm5711_vm0, %v6645_v4 }
 0x7f3   :  { %5479 = vmatpush3.bf16.msra.mxu0 %v5878_v38  ;;  %5503 = vmatpush3.bf16.msra.mxu1 %v5882_v42  ;;  %v6662_v38 = vld [vmem:[#allocation27_spill] sm:$0xff] }
 0x7f4   :  { %5480 = vmatprep.subr.bf16.mxu0 %v6644_v59  ;;  %5504 = vmatprep.subr.bf16.mxu1 %v6644_v59 }
 0x7f7   :  { %5482 = vmatpush3.bf16.msra.mxu0 %v5890_v49  ;;  %5506 = vmatpush3.bf16.msra.mxu1 %v5894_v50  ;;  %v6663_v49 = vld [vmem:[#allocation29_spill] sm:$0xff] }
 0x7f8   :  { %5483 = vmatprep.subr.bf16.mxu0 %v6644_v59  ;;  %5507 = vmatprep.subr.bf16.mxu1 %v6644_v59 }
 0x7fb   :  { %5485 = vmatpush3.bf16.msra.mxu0 %v5898_v57  ;;  %5509 = vmatpush3.bf16.msra.mxu1 %v5902_v58 }
 0x7fc   :  { %5486 = vmatprep.subr.bf16.mxu0 %v6644_v59  ;;  %5510 = vmatprep.subr.bf16.mxu1 %v6644_v59 }
 0x7ff   :  { %5488 = vmatpush3.bf16.msra.mxu0 %v5906_v2  ;;  %5512 = vmatpush3.bf16.msra.mxu1 %v5910_v3 }
 0x800   :  { %5489 = vmatprep.subr.bf16.mxu0 %v6644_v59  ;;  %5513 = vmatprep.subr.bf16.mxu1 %v6644_v59 }
 0x803   :  { %5491 = vmatpush3.bf16.msra.mxu0 %v5914_v10  ;;  %5515 = vmatpush3.bf16.msra.mxu1 %v5918_v11 }
 0x804   :  { %5492 = vmatprep.subr.bf16.mxu0 %v6644_v59  ;;  %5516 = vmatprep.subr.bf16.mxu1 %v6644_v59 }
 0x807   :  { %5494 = vmatpush3.bf16.msra.mxu0 %v5922_v18  ;;  %5518 = vmatpush3.bf16.msra.mxu1 %v5926_v21 }
 0x808   :  { %5495 = vmatprep.subr.bf16.mxu0 %v6644_v59  ;;  %5519 = vmatprep.subr.bf16.mxu1 %v6644_v59  ;;  %v6664_v59 = vld [vmem:[#allocation28_spill] sm:$0xff] }
 0x80b   :  { %5497 = vmatpush3.bf16.msra.mxu0 %v5930_v28  ;;  %5521 = vmatpush3.bf16.msra.mxu1 %v5934_v29 }
 0x80e   :  { %4653 = vmatmul.mubr.f32.vlgmr.msra.gmra.mrb[46].mxu0 %v2669_v37  ;;  %4688 = vmatmul.mubr.f32.vlgmr.msra.gmra.mrb[46].mxu1 %v2669_v37 }
 0x8c1   :  { %v2743_v32 = vpop.f32.mrb[44].mxu0  ;;  %v2820_v33 = vpop.f32.mrb[44].mxu1 }
 0x8c2   :  { %v2747_v42 = vadd.f32 %v2743_v32, %v6662_v38  ;;  %v2824_v50 = vadd.f32 %v2820_v33, %v6663_v49  ;;  %v4584_v57 = vpop.f32.mrb[45].mxu0  ;;  %v4619_v58 = vpop.f32.mrb[45].mxu1 }
 0x8c4   :  { %v3023_v2 = vmul.f32 -1.442695, %v2824_v50  ;;  %v3022_v3 = vmul.f32 -1.442695, %v2747_v42 }
 0x8c6   :  { %5641 = vpow2.f32 %v3023_v2 }
 0x8c7   :  { %5643 = vpow2.f32 %v3022_v3 }
 0x8d0   :  { %v5642_v10 = vpop.eup %5641 }
 0x8d1   :  { %v5644_v11 = vpop.eup %5643  ;;  %v2828_v18 = vadd.f32 1.0, %v5642_v10 }
 0x8d2   :  { %v2751_v21 = vadd.f32 1.0, %v5644_v11 }
 0x8d3   :  { %5645 = vrcp.f32 %v2828_v18 }
 0x8d4   :  { %5647 = vrcp.f32 %v2751_v21 }
 0x8dd   :  { %v5646_v63 = vpop.eup %5645 }
 0x8de   :  { %v5648_v43 = vpop.eup %5647  ;;  %v2980_v8 = vmul.f32 %v5646_v63, %v6568_v52 }
 0x8e1   :  { %v2897_v28 = vpop.f32.mrb[46].mxu0  ;;  %v2969_v29 = vpop.f32.mrb[46].mxu1 }
 0x8e2   :  { %v2901_v4 = vadd.f32 %v2897_v28, %v6664_v59  ;;  %v2973_v22 = vadd.f32 %v2969_v29, %v6063_v31  ;;  %v4654_v25 = vpop.f32.mrb[47].mxu0  ;;  %v4689_v0 = vpop.f32.mrb[47].mxu1 }
 0x8e4   :  { %5649 = vtanh.f32 %v2901_v4  ;;  %v3024_v44 = vmul.f32 -1.442695, %v2973_v22 }
 0x8e6   :  { %5651 = vpow2.f32 %v3024_v44 }
 0x8ee   :  { %v5650_v51 = vpop.eup %5649 }
 0x8ef   :  { %v2981_v60 = vmul.f32 %v5650_v51, %v5648_v43 }
 0x8f0   :  { %v5652_v15 = vpop.eup %5651 }
 0x8f1   :  { %v2982_v16 = vadd.f32 %v2981_v60, %v2980_v8  ;;  %v2977_v39 = vadd.f32 1.0, %v5652_v15 }
 0x8f3   :  { %5653 = vtanh.f32 %v2982_v16 }
 0x8f4   :  { %5655 = vrcp.f32 %v2977_v39 }
 0x8fd   :  { %v5654_v41 = vpop.eup %5653 }
 0x8fe   :  { %v5656_v47 = vpop.eup %5655 }
 0x8ff   :  { %v2984_v31 = vmul.f32 %v5656_v47, %v5654_v41 }
 0x901   :  { %3025 = vst [vmem:[%s6620_s4 + $0x38] sm:$0xff] %v2984_v31 }
 0x902   :  { %2993 = vsyncpa [#allocation6], 1 }
 0x903   :  { %2994 = vsyncpa [#allocation8], 1 }

// kernel: lstm_forward.3
= control target key start
LH: loop header
LB: loop body
LE: loop exit
PB: predicated region body
PF: predicated region fallthrough
CT: control target
= control target key end

     0   :  { %v7274_v3 = vmov 0.0|0.0   ;;  %v7272_v4 = vmov 0.0   ;;  %vm5877_vm0 = vmmov 0   ;;  %s7265_s1 = inlined_call_operand.vmem [shape: f32[128,512], index: 1, kind: input, shape index: {}]   ;;  %s7266_s3 = inlined_call_operand.vmem [shape: f32[128,512], index: 3, kind: input, shape index: {}]   ;;  %s7267_s0 = inlined_call_operand.vmem [shape: f32[8,8,128], index: 0, kind: input, shape index: {}]   ;;  %s7268_s2 = inlined_call_operand.vmem [shape: f32[1,512], index: 2, kind: input, shape index: {}]   ;;  %s7269_s4 = inlined_call_operand.vmem [shape: f32[128,128], index: 4, kind: input, shape index: {}]   ;;  %s7270_s5 = inlined_call_operand.vmem [shape: f32[1,128], index: 5, kind: input, shape index: {}]   ;;  %s7271_s6 = inlined_call_operand.vmem [shape: f32[8,8,128], index: 6, kind: output, shape index: {}]  }
   0x1   :  { %v32_v0 = vld [vmem:[%s7265_s1 + $0x8] sm:$0xff]  ;;  %v31_v2 = vld [vmem:[%s7265_s1] sm:$0xff]  ;;  %4944 = vmatprep.subr.bf16.mxu0 %v7274_v3  ;;  %181 = vmatprep.mubr.f32.mxu1 %v7272_v4 }
   0x2   :  { %v36_v1 = vld [vmem:[%s7265_s1 + $0x28] sm:$0xff]  ;;  %v35_v6 = vld [vmem:[%s7265_s1 + $0x20] sm:$0xff]  ;;  %3748 = vmatprep.mubr.msk.f32.mxu0 %vm5877_vm0, %v7272_v4 }
   0x3   :  { %v4880_v5 = vpack.c.bf16 %v36_v1, %v32_v0  ;;  %v381_v7 = vld [vmem:[%s7266_s3] sm:$0xff]  ;;  %v4882_v9 = vpack.c.bf16 %v35_v6, %v31_v2  ;;  %v40_v11 = vld [vmem:[%s7265_s1 + $0x48] sm:$0xff] }
   0x4   :  { %v382_v8 = vld [vmem:[%s7266_s3 + $0x20] sm:$0xff]  ;;  %v44_v12 = vld [vmem:[%s7265_s1 + $0x68] sm:$0xff] }
   0x5   :  { %v5935_v10 = vpack.c.bf16 %v382_v8, %v381_v7  ;;  %v39_v13 = vld [vmem:[%s7265_s1 + $0x40] sm:$0xff]  ;;  %4881 = vmatprep.subr.bf16.mxu1 %v4880_v5  ;;  %v4884_v14 = vpack.c.bf16 %v44_v12, %v40_v11  ;;  %v48_v20 = vld [vmem:[%s7265_s1 + $0x88] sm:$0xff]  ;;  %v34_v11 = vld [vmem:[%s7265_s1 + $0x18] sm:$0xff] }
   0x6   :  { %v43_v15 = vld [vmem:[%s7265_s1 + $0x60] sm:$0xff]  ;;  %4883 = vmatpush1.bf16.msra.mxu1 %v4882_v9  ;;  %v52_v21 = vld [vmem:[%s7265_s1 + $0xa8] sm:$0xff]  ;;  %v38_v12 = vld [vmem:[%s7265_s1 + $0x38] sm:$0xff] }
   0x7   :  { %v383_v16 = vld [vmem:[%s7266_s3 + $0x40] sm:$0xff]  ;;  %4946 = vmatpush3.bf16.msra.mxu0 %v5935_v10  ;;  %v4886_v18 = vpack.c.bf16 %v43_v15, %v39_v13  ;;  %4885 = vmatprep.subr.bf16.mxu1 %v4884_v14  ;;  %v4888_v23 = vpack.c.bf16 %v52_v21, %v48_v20  ;;  %v56_v27 = vld [vmem:[%s7265_s1 + $0xc8] sm:$0xff]  ;;  %v4912_v15 = vpack.c.bf16 %v38_v12, %v34_v11  ;;  %v414_v20 = vld [vmem:[%s7266_s3 + $0x30] sm:$0xff] }
   0x8   :  { %v384_v17 = vld [vmem:[%s7266_s3 + $0x60] sm:$0xff]  ;;  %4947 = vmatprep.subr.bf16.mxu0 %v7274_v3  ;;  %v60_v28 = vld [vmem:[%s7265_s1 + $0xe8] sm:$0xff]  ;;  %v42_v21 = vld [vmem:[%s7265_s1 + $0x58] sm:$0xff] }
   0x9   :  { %v5956_v19 = vpack.c.bf16 %v384_v17, %v383_v16  ;;  %v47_v22 = vld [vmem:[%s7265_s1 + $0x80] sm:$0xff]  ;;  %v4892_v32 = vpack.c.bf16 %v60_v28, %v56_v27  ;;  %v64_v36 = vld [vmem:[%s7265_s1 + $0x108] sm:$0xff]  ;;  %v33_v16 = vld [vmem:[%s7265_s1 + $0x10] sm:$0xff] }
   0xa   :  { %v51_v24 = vld [vmem:[%s7265_s1 + $0xa0] sm:$0xff]  ;;  %4887 = vmatpush1.bf16.msra.mxu1 %v4886_v18  ;;  %v68_v37 = vld [vmem:[%s7265_s1 + $0x128] sm:$0xff]  ;;  %v37_v17 = vld [vmem:[%s7265_s1 + $0x30] sm:$0xff] }
   0xb   :  { %v385_v25 = vld [vmem:[%s7266_s3 + $0x80] sm:$0xff]  ;;  %4949 = vmatpush3.bf16.msra.mxu0 %v5956_v19  ;;  %v4890_v29 = vpack.c.bf16 %v51_v24, %v47_v22  ;;  %4889 = vmatprep.subr.bf16.mxu1 %v4888_v23  ;;  %v4896_v41 = vpack.c.bf16 %v68_v37, %v64_v36  ;;  %v72_v45 = vld [vmem:[%s7265_s1 + $0x148] sm:$0xff]  ;;  %v413_v18 = vld [vmem:[%s7266_s3 + $0x10] sm:$0xff]  ;;  %v4914_v24 = vpack.c.bf16 %v37_v17, %v33_v16 }
   0xc   :  { %v386_v26 = vld [vmem:[%s7266_s3 + $0xa0] sm:$0xff]  ;;  %4950 = vmatprep.subr.bf16.mxu0 %v7274_v3  ;;  %v76_v46 = vld [vmem:[%s7265_s1 + $0x168] sm:$0xff]  ;;  %v46_v22 = vld [vmem:[%s7265_s1 + $0x78] sm:$0xff] }
   0xd   :  { %v5984_v30 = vpack.c.bf16 %v386_v26, %v385_v25  ;;  %v55_v31 = vld [vmem:[%s7265_s1 + $0xc0] sm:$0xff]  ;;  %v4900_v50 = vpack.c.bf16 %v76_v46, %v72_v45  ;;  %v80_v54 = vld [vmem:[%s7265_s1 + $0x188] sm:$0xff]  ;;  %v6122_v25 = vpack.c.bf16 %v414_v20, %v413_v18  ;;  %v4916_v26 = vpack.c.bf16 %v46_v22, %v42_v21  ;;  %v41_v27 = vld [vmem:[%s7265_s1 + $0x50] sm:$0xff] }
   0xe   :  { %v59_v33 = vld [vmem:[%s7265_s1 + $0xe0] sm:$0xff]  ;;  %4891 = vmatpush1.bf16.msra.mxu1 %v4890_v29  ;;  %v84_v55 = vld [vmem:[%s7265_s1 + $0x1a8] sm:$0xff]  ;;  %v45_v28 = vld [vmem:[%s7265_s1 + $0x70] sm:$0xff] }
   0xf   :  { %v387_v34 = vld [vmem:[%s7266_s3 + $0xc0] sm:$0xff]  ;;  %4952 = vmatpush3.bf16.msra.mxu0 %v5984_v30  ;;  %v4894_v38 = vpack.c.bf16 %v59_v33, %v55_v31  ;;  %4893 = vmatprep.subr.bf16.mxu1 %v4892_v32  ;;  %v4904_v59 = vpack.c.bf16 %v84_v55, %v80_v54  ;;  %v88_v63 = vld [vmem:[%s7265_s1 + $0x1c8] sm:$0xff]  ;;  %v415_v29 = vld [vmem:[%s7266_s3 + $0x50] sm:$0xff] }
  0x10   :  { %v388_v35 = vld [vmem:[%s7266_s3 + $0xe0] sm:$0xff]  ;;  %4953 = vmatprep.subr.bf16.mxu0 %v7274_v3  ;;  %v92_v0 = vld [vmem:[%s7265_s1 + $0x1e8] sm:$0xff]  ;;  %v416_v31 = vld [vmem:[%s7266_s3 + $0x70] sm:$0xff] }
  0x11   :  { %v6006_v39 = vpack.c.bf16 %v388_v35, %v387_v34  ;;  %v63_v40 = vld [vmem:[%s7265_s1 + $0x100] sm:$0xff]  ;;  %v4908_v6 = vpack.c.bf16 %v92_v0, %v88_v63  ;;  %v50_v32 = vld [vmem:[%s7265_s1 + $0x98] sm:$0xff]  ;;  %v6148_v34 = vld [vmem:[%s7267_s0 + $0x8] sm:$0xff]  ;;  %v4918_v35 = vpack.c.bf16 %v45_v28, %v41_v27  ;;  %v6151_v36 = vpack.c.bf16 %v416_v31, %v415_v29 }
  0x12   :  { %v67_v42 = vld [vmem:[%s7265_s1 + $0x120] sm:$0xff]  ;;  %4895 = vmatpush1.bf16.msra.mxu1 %v4894_v38  ;;  %v54_v33 = vld [vmem:[%s7265_s1 + $0xb8] sm:$0xff]  ;;  %v49_v38 = vld [vmem:[%s7265_s1 + $0x90] sm:$0xff] }
  0x13   :  { %v389_v43 = vld [vmem:[%s7266_s3 + $0x100] sm:$0xff]  ;;  %4955 = vmatpush3.bf16.msra.mxu0 %v6006_v39  ;;  %v4898_v47 = vpack.c.bf16 %v67_v42, %v63_v40  ;;  %4897 = vmatprep.subr.bf16.mxu1 %v4896_v41  ;;  %v4920_v37 = vpack.c.bf16 %v54_v33, %v50_v32  ;;  %v53_v40 = vld [vmem:[%s7265_s1 + $0xb0] sm:$0xff]  ;;  %v66_v54 = vld [vmem:[%s7265_s1 + $0x118] sm:$0xff] }
  0x14   :  { %v390_v44 = vld [vmem:[%s7266_s3 + $0x120] sm:$0xff]  ;;  %4956 = vmatprep.subr.bf16.mxu0 %v7274_v3  ;;  %v417_v41 = vld [vmem:[%s7266_s3 + $0x90] sm:$0xff]  ;;  %v4922_v46 = vpack.c.bf16 %v53_v40, %v49_v38  ;;  %v70_v55 = vld [vmem:[%s7265_s1 + $0x138] sm:$0xff] }
  0x15   :  { %v6028_v48 = vpack.c.bf16 %v390_v44, %v389_v43  ;;  %v71_v49 = vld [vmem:[%s7265_s1 + $0x140] sm:$0xff]  ;;  %v418_v42 = vld [vmem:[%s7266_s3 + $0xb0] sm:$0xff]  ;;  %v58_v43 = vld [vmem:[%s7265_s1 + $0xd8] sm:$0xff] }
  0x16   :  { %v75_v51 = vld [vmem:[%s7265_s1 + $0x160] sm:$0xff]  ;;  %4899 = vmatpush1.bf16.msra.mxu1 %v4898_v47  ;;  %v62_v44 = vld [vmem:[%s7265_s1 + $0xf8] sm:$0xff]  ;;  %v6179_v45 = vld [vmem:[%s7267_s0 + $0x10] sm:$0xff]  ;;  %v6182_v47 = vpack.c.bf16 %v418_v42, %v417_v41 }
  0x17   :  { %v391_v52 = vld [vmem:[%s7266_s3 + $0x140] sm:$0xff]  ;;  %4958 = vmatpush3.bf16.msra.mxu0 %v6028_v48  ;;  %v4902_v56 = vpack.c.bf16 %v75_v51, %v71_v49  ;;  %4901 = vmatprep.subr.bf16.mxu1 %v4900_v50  ;;  %v4924_v49 = vpack.c.bf16 %v62_v44, %v58_v43  ;;  %v57_v50 = vld [vmem:[%s7265_s1 + $0xd0] sm:$0xff]  ;;  %v82_v16 = vld [vmem:[%s7265_s1 + $0x198] sm:$0xff] }
  0x18   :  { %v392_v53 = vld [vmem:[%s7266_s3 + $0x160] sm:$0xff]  ;;  %4959 = vmatprep.subr.bf16.mxu0 %v7274_v3  ;;  %v61_v51 = vld [vmem:[%s7265_s1 + $0xf0] sm:$0xff]  ;;  %v86_v17 = vld [vmem:[%s7265_s1 + $0x1b8] sm:$0xff] }
  0x19   :  { %v6050_v57 = vpack.c.bf16 %v392_v53, %v391_v52  ;;  %v79_v58 = vld [vmem:[%s7265_s1 + $0x180] sm:$0xff]  ;;  %v419_v52 = vld [vmem:[%s7266_s3 + $0xd0] sm:$0xff]  ;;  %v6266_v18 = vld [vmem:[%s7267_s0 + $0x28] sm:$0xff]  ;;  %v4936_v22 = vpack.c.bf16 %v86_v17, %v82_v16 }
  0x1a   :  { %v83_v60 = vld [vmem:[%s7265_s1 + $0x1a0] sm:$0xff]  ;;  %4903 = vmatpush1.bf16.msra.mxu1 %v4902_v56  ;;  %v420_v53 = vld [vmem:[%s7266_s3 + $0xf0] sm:$0xff]  ;;  %v6208_v56 = vld [vmem:[%s7267_s0 + $0x18] sm:$0xff] }
  0x1b   :  { %v393_v61 = vld [vmem:[%s7266_s3 + $0x180] sm:$0xff]  ;;  %4961 = vmatpush3.bf16.msra.mxu0 %v6050_v57  ;;  %v4906_v1 = vpack.c.bf16 %v83_v60, %v79_v58  ;;  %4905 = vmatprep.subr.bf16.mxu1 %v4904_v59  ;;  %v4926_v58 = vpack.c.bf16 %v61_v51, %v57_v50  ;;  %v6211_v59 = vpack.c.bf16 %v420_v53, %v419_v52  ;;  %v421_v63 = vld [vmem:[%s7266_s3 + $0x110] sm:$0xff]  ;;  %v90_v29 = vld [vmem:[%s7265_s1 + $0x1d8] sm:$0xff] }
  0x1c   :  { %v394_v62 = vld [vmem:[%s7266_s3 + $0x1a0] sm:$0xff]  ;;  %4962 = vmatprep.subr.bf16.mxu0 %v7274_v3  ;;  %v4928_v60 = vpack.c.bf16 %v70_v55, %v66_v54  ;;  %v422_v0 = vld [vmem:[%s7266_s3 + $0x130] sm:$0xff]  ;;  %v94_v31 = vld [vmem:[%s7265_s1 + $0x1f8] sm:$0xff] }
  0x1d   :  { %v6072_v2 = vpack.c.bf16 %v394_v62, %v393_v61  ;;  %v87_v5 = vld [vmem:[%s7265_s1 + $0x1c0] sm:$0xff]  ;;  %v65_v61 = vld [vmem:[%s7265_s1 + $0x110] sm:$0xff]  ;;  %v6318_v43 = vld [vmem:[%s7267_s0 + $0x38] sm:$0xff] }
  0x1e   :  { %v91_v7 = vld [vmem:[%s7265_s1 + $0x1e0] sm:$0xff]  ;;  %4907 = vmatpush1.bf16.msra.mxu1 %v4906_v1  ;;  %v69_v62 = vld [vmem:[%s7265_s1 + $0x130] sm:$0xff]  ;;  %v74_v1 = vld [vmem:[%s7265_s1 + $0x158] sm:$0xff] }
  0x1f   :  { %v395_v8 = vld [vmem:[%s7266_s3 + $0x1c0] sm:$0xff]  ;;  %4964 = vmatpush3.bf16.msra.mxu0 %v6072_v2  ;;  %v4910_v13 = vpack.c.bf16 %v91_v7, %v87_v5  ;;  %4909 = vmatprep.subr.bf16.mxu1 %v4908_v6  ;;  %v78_v5 = vld [vmem:[%s7265_s1 + $0x178] sm:$0xff]  ;;  %v4930_v7 = vpack.c.bf16 %v69_v62, %v65_v61  ;;  %v73_v11 = vld [vmem:[%s7265_s1 + $0x150] sm:$0xff] }
  0x20   :  { %v396_v9 = vld [vmem:[%s7266_s3 + $0x1e0] sm:$0xff]  ;;  %4965 = vmatprep.subr.bf16.mxu0 %v7274_v3  ;;  %v77_v12 = vld [vmem:[%s7265_s1 + $0x170] sm:$0xff]  ;;  %v398_v50 = vld [vmem:[%s7266_s3 + $0x28] sm:$0xff] }
  0x21   :  { %v6094_v14 = vpack.c.bf16 %v396_v9, %v395_v8  ;;  %v6119_v23 = vld [vmem:[%s7267_s0] sm:$0xff]  ;;  %v6240_v8 = vpack.c.bf16 %v422_v0, %v421_v63  ;;  %v4932_v9 = vpack.c.bf16 %v78_v5, %v74_v1  ;;  %v4934_v20 = vpack.c.bf16 %v77_v12, %v73_v11  ;;  %v425_v27 = vld [vmem:[%s7266_s3 + $0x190] sm:$0xff]  ;;  %v399_v52 = vld [vmem:[%s7266_s3 + $0x48] sm:$0xff] }
  0x22   :  { %4911 = vmatpush1.bf16.msra.mxu1 %v4910_v13  ;;  %v6237_v6 = vld [vmem:[%s7267_s0 + $0x20] sm:$0xff]  ;;  %v423_v13 = vld [vmem:[%s7266_s3 + $0x150] sm:$0xff]  ;;  %v400_v53 = vld [vmem:[%s7266_s3 + $0x68] sm:$0xff] }
  0x23   :  { %4967 = vmatpush3.bf16.msra.mxu0 %v6094_v14  ;;  %4913 = vmatprep.subr.bf16.mxu1 %v4912_v15  ;;  %v424_v15 = vld [vmem:[%s7266_s3 + $0x170] sm:$0xff]  ;;  %v6346_v54 = vpack.c.bf16 %v400_v53, %v399_v52  ;;  %v401_v55 = vld [vmem:[%s7266_s3 + $0x88] sm:$0xff]  ;;  %v431_v17 = vld [vmem:[%s7266_s3 + $0x58] sm:$0xff]  ;;  %v97_v52 = vlaneseq }
  0x24   :  { %4992 = vmatprep.subr.bf16.mxu0 %v7274_v3  ;;  %v6269_v21 = vpack.c.bf16 %v424_v15, %v423_v13  ;;  %v426_v28 = vld [vmem:[%s7266_s3 + $0x1b0] sm:$0xff]  ;;  %v404_v61 = vld [vmem:[%s7266_s3 + $0xe8] sm:$0xff]  ;;  %v429_v13 = vld [vmem:[%s7266_s3 + $0x18] sm:$0xff] }
  0x25   :  { %182 = vmatmul.mubr.f32.vlgmr.msra.gmra.mrb[0].mxu1 %v6119_v23  ;;  %v6295_v32 = vld [vmem:[%s7267_s0 + $0x30] sm:$0xff]  ;;  %v405_v62 = vld [vmem:[%s7266_s3 + $0x108] sm:$0xff]  ;;  %v430_v15 = vld [vmem:[%s7266_s3 + $0x38] sm:$0xff]  ;;  %v98_v53 = vshrl.u32 %v97_v52, 7 }
  0x26   :  { %3749 = vmatmul.mubr.f32.vlgmr.msra.gmra.mrb[0].mxu0 %v7272_v4  ;;  %4915 = vmatpush1.bf16.msra.mxu1 %v4914_v24  ;;  %v81_v24 = vld [vmem:[%s7265_s1 + $0x190] sm:$0xff]  ;;  %v406_v63 = vld [vmem:[%s7266_s3 + $0x128] sm:$0xff]  ;;  %v6448_v16 = vpack.c.bf16 %v430_v15, %v429_v13 }
  0x27   :  { %187 = vmatprep.mubr.f32.mxu1 %v7272_v4  ;;  %4994 = vmatpush3.bf16.msra.mxu0 %v6122_v25  ;;  %v89_v38 = vld [vmem:[%s7265_s1 + $0x1d0] sm:$0xff]  ;;  %v407_v0 = vld [vmem:[%s7266_s3 + $0x148] sm:$0xff] }
  0x28   :  { %4917 = vmatprep.subr.bf16.mxu1 %v4916_v26  ;;  %4995 = vmatprep.subr.bf16.mxu0 %v7274_v3  ;;  %v85_v26 = vld [vmem:[%s7265_s1 + $0x1b0] sm:$0xff]  ;;  %v408_v1 = vld [vmem:[%s7266_s3 + $0x168] sm:$0xff] }
  0x29   :  { %3818 = vmatprep.mubr.msk.f32.mxu0 %vm5877_vm0, %v7272_v4  ;;  %188 = vmatmul.mubr.f32.gmra.mrb[2].mxu1 %v6148_v34  ;;  %v4938_v33 = vpack.c.bf16 %v85_v26, %v81_v24  ;;  %v93_v40 = vld [vmem:[%s7265_s1 + $0x1f0] sm:$0xff]  ;;  %v409_v5 = vld [vmem:[%s7266_s3 + $0x188] sm:$0xff]  ;;  %v434_v24 = vld [vmem:[%s7266_s3 + $0xb8] sm:$0xff] }
  0x2a   :  { %4919 = vmatpush1.bf16.msra.mxu1 %v4918_v35  ;;  %193 = vmatprep.mubr.f32.mxu1 %v7272_v4  ;;  %v6298_v35 = vpack.c.bf16 %v426_v28, %v425_v27  ;;  %v427_v41 = vld [vmem:[%s7266_s3 + $0x1d0] sm:$0xff]  ;;  %v4942_v44 = vpack.c.bf16 %v93_v40, %v89_v38  ;;  %v412_v11 = vld [vmem:[%s7266_s3 + $0x1e8] sm:$0xff]  ;;  %v435_v27 = vld [vmem:[%s7266_s3 + $0xd8] sm:$0xff] }
  0x2b   :  { %4997 = vmatpush3.bf16.msra.mxu0 %v6151_v36  ;;  %4921 = vmatprep.subr.bf16.mxu1 %v4920_v37  ;;  %v4940_v37 = vpack.c.bf16 %v94_v31, %v90_v29  ;;  %v428_v42 = vld [vmem:[%s7266_s3 + $0x1f0] sm:$0xff]  ;;  %v436_v28 = vld [vmem:[%s7266_s3 + $0xf8] sm:$0xff] }
  0x2c   :  { %4998 = vmatprep.subr.bf16.mxu0 %v7274_v3  ;;  %v6483_v29 = vpack.c.bf16 %v436_v28, %v435_v27  ;;  %v437_v31 = vld [vmem:[%s7266_s3 + $0x118] sm:$0xff] }
  0x2d   :  { %194 = vmatmul.mubr.f32.gmra.mrb[4].mxu1 %v6179_v45  ;;  %v440_v38 = vld [vmem:[%s7266_s3 + $0x178] sm:$0xff] }
  0x2e   :  { %4923 = vmatpush1.bf16.msra.mxu1 %v4922_v46  ;;  %199 = vmatprep.mubr.f32.mxu1 %v7272_v4  ;;  %v6321_v46 = vpack.c.bf16 %v428_v42, %v427_v41  ;;  %v441_v41 = vld [vmem:[%s7266_s3 + $0x198] sm:$0xff] }
  0x2f   :  { %5000 = vmatpush3.bf16.msra.mxu0 %v6182_v47  ;;  %4925 = vmatprep.subr.bf16.mxu1 %v4924_v49  ;;  %v397_v49 = vld [vmem:[%s7266_s3 + $0x8] sm:$0xff]  ;;  %v442_v42 = vld [vmem:[%s7266_s3 + $0x1b8] sm:$0xff] }
  0x30   :  { %5001 = vmatprep.subr.bf16.mxu0 %v7274_v3  ;;  %v6332_v51 = vpack.c.bf16 %v398_v50, %v397_v49  ;;  %v444_v49 = vld [vmem:[%s7266_s3 + $0x1f8] sm:$0xff] }
  0x31   :  { %200 = vmatmul.mubr.f32.gmra.mrb[6].mxu1 %v6208_v56 }
  0x32   :  { %4927 = vmatpush1.bf16.msra.mxu1 %v4926_v58  ;;  %205 = vmatprep.mubr.f32.mxu1 %v7272_v4  ;;  %v402_v58 = vld [vmem:[%s7266_s3 + $0xa8] sm:$0xff] }
  0x33   :  { %5003 = vmatpush3.bf16.msra.mxu0 %v6211_v59  ;;  %4929 = vmatprep.subr.bf16.mxu1 %v4928_v60  ;;  %v403_v60 = vld [vmem:[%s7266_s3 + $0xc8] sm:$0xff] }
  0x34   :  { %5004 = vmatprep.subr.bf16.mxu0 %v7274_v3 }
  0x35   :  { %206 = vmatmul.mubr.f32.gmra.mrb[8].mxu1 %v6237_v6 }
  0x36   :  { %4931 = vmatpush1.bf16.msra.mxu1 %v4930_v7  ;;  %211 = vmatprep.mubr.f32.mxu1 %v7272_v4  ;;  %v410_v7 = vld [vmem:[%s7266_s3 + $0x1a8] sm:$0xff] }
  0x37   :  { %5006 = vmatpush3.bf16.msra.mxu0 %v6240_v8  ;;  %4933 = vmatprep.subr.bf16.mxu1 %v4932_v9  ;;  %v411_v9 = vld [vmem:[%s7266_s3 + $0x1c8] sm:$0xff] }
  0x38   :  { %5007 = vmatprep.subr.bf16.mxu0 %v7274_v3  ;;  %v6433_v12 = vpack.c.bf16 %v412_v11, %v411_v9 }
  0x39   :  { %212 = vmatmul.mubr.f32.gmra.mrb[10].mxu1 %v6266_v18 }
  0x3a   :  { %4935 = vmatpush1.bf16.msra.mxu1 %v4934_v20  ;;  %217 = vmatprep.mubr.f32.mxu1 %v7272_v4 }
  0x3b   :  { %5009 = vmatpush3.bf16.msra.mxu0 %v6269_v21  ;;  %4937 = vmatprep.subr.bf16.mxu1 %v4936_v22  ;;  %v433_v22 = vld [vmem:[%s7266_s3 + $0x98] sm:$0xff] }
  0x3c   :  { %5010 = vmatprep.subr.bf16.mxu0 %v7274_v3  ;;  %v6473_v26 = vpack.c.bf16 %v434_v24, %v433_v22 }
  0x3d   :  { %218 = vmatmul.mubr.f32.gmra.mrb[12].mxu1 %v6295_v32 }
  0x3e   :  { %4939 = vmatpush1.bf16.msra.mxu1 %v4938_v33  ;;  %223 = vmatprep.mubr.f32.mxu1 %v7272_v4 }
  0x3f   :  { %5012 = vmatpush3.bf16.msra.mxu0 %v6298_v35  ;;  %4941 = vmatprep.subr.bf16.mxu1 %v4940_v37  ;;  %v439_v37 = vld [vmem:[%s7266_s3 + $0x158] sm:$0xff] }
  0x40   :  { %5013 = vmatprep.subr.bf16.mxu0 %v7274_v3  ;;  %v6503_v40 = vpack.c.bf16 %v440_v38, %v439_v37 }
  0x41   :  { %224 = vmatmul.mubr.f32.gmra.mrb[14].mxu1 %v6318_v43 }
  0x42   :  { %4943 = vmatpush1.bf16.msra.mxu1 %v4942_v44  ;;  %294 = vmatprep.mubr.f32.mxu1 %v7272_v4  ;;  %v443_v44 = vld [vmem:[%s7266_s3 + $0x1d8] sm:$0xff] }
  0x43   :  { %5015 = vmatpush3.bf16.msra.mxu0 %v6321_v46  ;;  %4968 = vmatprep.subr.bf16.mxu1 %v7274_v3  ;;  %v6523_v50 = vpack.c.bf16 %v444_v49, %v443_v44 }
  0x44   :  { %5040 = vmatprep.subr.bf16.mxu0 %v7274_v3 }
  0x45   :  { %295 = vmatmul.mubr.f32.vlgmr.msra.gmra.mrb[16].mxu1 %v6119_v23  ;;  %v6363_v23 = vpack.c.bf16 %v402_v58, %v401_v55  ;;  %v99_v55 = vsub.s32 0, %v98_v53  ;;  %v95_v58 = vld [vmem:[%s7268_s2] sm:$0xf] }
  0x46   :  { %4970 = vmatpush3.bf16.msra.mxu1 %v6332_v51  ;;  %3819 = vmatmul.mubr.f32.vlgmr.msra.gmra.mrb[2].mxu0 %v7272_v4 }
  0x47   :  { %300 = vmatprep.mubr.f32.mxu1 %v7272_v4  ;;  %4971 = vmatprep.subr.bf16.mxu1 %v7274_v3 }
  0x48   :  { %5042 = vmatpush3.bf16.msra.mxu0 %v5935_v10  ;;  %3888 = vmatprep.mubr.msk.f32.mxu0 %vm5877_vm0, %v7272_v4 }
  0x49   :  { %301 = vmatmul.mubr.f32.gmra.mrb[18].mxu1 %v6148_v34  ;;  %5043 = vmatprep.subr.bf16.mxu0 %v7274_v3  ;;  %v6377_v34 = vpack.c.bf16 %v404_v61, %v403_v60  ;;  %v100_v60 = vrot.slane %v95_v58, %v99_v55 }
  0x4a   :  { %4973 = vmatpush3.bf16.msra.mxu1 %v6346_v54  ;;  %306 = vmatprep.mubr.f32.mxu1 %v7272_v4 }
  0x4b   :  { %4974 = vmatprep.subr.bf16.mxu1 %v7274_v3 }
  0x4c   :  { %5045 = vmatpush3.bf16.msra.mxu0 %v5956_v19 }
  0x4d   :  { %307 = vmatmul.mubr.f32.gmra.mrb[20].mxu1 %v6179_v45  ;;  %5046 = vmatprep.subr.bf16.mxu0 %v7274_v3  ;;  %v6391_v45 = vpack.c.bf16 %v406_v63, %v405_v62  ;;  %v103_v62 = vsub.s32 1, %v98_v53 }
  0x4e   :  { %4976 = vmatpush3.bf16.msra.mxu1 %v6363_v23  ;;  %312 = vmatprep.mubr.f32.mxu1 %v7272_v4 }
  0x4f   :  { %4977 = vmatprep.subr.bf16.mxu1 %v7274_v3  ;;  %v6552_v9 = vrot.slane %v95_v58, %v103_v62 }
  0x50   :  { %5048 = vmatpush3.bf16.msra.mxu0 %v5984_v30 }
  0x51   :  { %313 = vmatmul.mubr.f32.gmra.mrb[22].mxu1 %v6208_v56  ;;  %5049 = vmatprep.subr.bf16.mxu0 %v7274_v3  ;;  %v6405_v56 = vpack.c.bf16 %v408_v1, %v407_v0 }
  0x52   :  { %4979 = vmatpush3.bf16.msra.mxu1 %v6377_v34  ;;  %318 = vmatprep.mubr.f32.mxu1 %v7272_v4 }
  0x53   :  { %4980 = vmatprep.subr.bf16.mxu1 %v7274_v3 }
  0x54   :  { %5051 = vmatpush3.bf16.msra.mxu0 %v6006_v39 }
  0x55   :  { %319 = vmatmul.mubr.f32.gmra.mrb[24].mxu1 %v6237_v6  ;;  %5052 = vmatprep.subr.bf16.mxu0 %v7274_v3  ;;  %v6419_v6 = vpack.c.bf16 %v410_v7, %v409_v5 }
  0x56   :  { %4982 = vmatpush3.bf16.msra.mxu1 %v6391_v45  ;;  %324 = vmatprep.mubr.f32.mxu1 %v7272_v4 }
  0x57   :  { %4983 = vmatprep.subr.bf16.mxu1 %v7274_v3 }
  0x58   :  { %5054 = vmatpush3.bf16.msra.mxu0 %v6028_v48 }
  0x59   :  { %325 = vmatmul.mubr.f32.gmra.mrb[26].mxu1 %v6266_v18  ;;  %5055 = vmatprep.subr.bf16.mxu0 %v7274_v3  ;;  %v432_v18 = vld [vmem:[%s7266_s3 + $0x78] sm:$0xff] }
  0x5a   :  { %4985 = vmatpush3.bf16.msra.mxu1 %v6405_v56  ;;  %330 = vmatprep.mubr.f32.mxu1 %v7272_v4  ;;  %v6461_v20 = vpack.c.bf16 %v432_v18, %v431_v17 }
  0x5b   :  { %4986 = vmatprep.subr.bf16.mxu1 %v7274_v3 }
  0x5c   :  { %5057 = vmatpush3.bf16.msra.mxu0 %v6050_v57 }
  0x5d   :  { %331 = vmatmul.mubr.f32.gmra.mrb[28].mxu1 %v6295_v32  ;;  %5058 = vmatprep.subr.bf16.mxu0 %v7274_v3  ;;  %v438_v32 = vld [vmem:[%s7266_s3 + $0x138] sm:$0xff] }
  0x5e   :  { %4988 = vmatpush3.bf16.msra.mxu1 %v6419_v6  ;;  %336 = vmatprep.mubr.f32.mxu1 %v7272_v4  ;;  %v6493_v33 = vpack.c.bf16 %v438_v32, %v437_v31 }
  0x5f   :  { %4989 = vmatprep.subr.bf16.mxu1 %v7274_v3 }
  0x60   :  { %5060 = vmatpush3.bf16.msra.mxu0 %v6072_v2 }
  0x61   :  { %337 = vmatmul.mubr.f32.gmra.mrb[30].mxu1 %v6318_v43  ;;  %5061 = vmatprep.subr.bf16.mxu0 %v7274_v3  ;;  %v6513_v43 = vpack.c.bf16 %v442_v42, %v441_v41 }
  0x62   :  { %4991 = vmatpush3.bf16.msra.mxu1 %v6433_v12  ;;  %3783 = vmatprep.mubr.msk.f32.mxu1 %vm5877_vm0, %v7272_v4 }
  0x63   :  { %5016 = vmatprep.subr.bf16.mxu1 %v7274_v3 }
  0x64   :  { %5063 = vmatpush3.bf16.msra.mxu0 %v6094_v14 }
  0x65   :  { %3784 = vmatmul.mubr.f32.vlgmr.msra.gmra.mrb[32].mxu1 %v7272_v4  ;;  %5088 = vmatprep.subr.bf16.mxu0 %v7274_v3 }
  0x66   :  { %5018 = vmatpush3.bf16.msra.mxu1 %v6448_v16  ;;  %3853 = vmatprep.mubr.msk.f32.mxu1 %vm5877_vm0, %v7272_v4 }
  0x67   :  { %5019 = vmatprep.subr.bf16.mxu1 %v7274_v3 }
  0x6a   :  { %5021 = vmatpush3.bf16.msra.mxu1 %v6461_v20 }
  0x6b   :  { %5022 = vmatprep.subr.bf16.mxu1 %v7274_v3 }
  0x6e   :  { %5024 = vmatpush3.bf16.msra.mxu1 %v6473_v26 }
  0x6f   :  { %5025 = vmatprep.subr.bf16.mxu1 %v7274_v3 }
  0x72   :  { %5027 = vmatpush3.bf16.msra.mxu1 %v6483_v29 }
  0x73   :  { %5028 = vmatprep.subr.bf16.mxu1 %v7274_v3 }
  0x76   :  { %5030 = vmatpush3.bf16.msra.mxu1 %v6493_v33 }
  0x77   :  { %5031 = vmatprep.subr.bf16.mxu1 %v7274_v3 }
  0x7a   :  { %5033 = vmatpush3.bf16.msra.mxu1 %v6503_v40 }
  0x7b   :  { %5034 = vmatprep.subr.bf16.mxu1 %v7274_v3 }
  0x7e   :  { %5036 = vmatpush3.bf16.msra.mxu1 %v6513_v43 }
  0x7f   :  { %5037 = vmatprep.subr.bf16.mxu1 %v7274_v3 }
  0x82   :  { %5039 = vmatpush3.bf16.msra.mxu1 %v6523_v50 }
  0x83   :  { %5064 = vmatprep.subr.bf16.mxu1 %v7274_v3 }
  0x85   :  { %3854 = vmatmul.mubr.f32.vlgmr.msra.gmra.mrb[34].mxu1 %v7272_v4 }
  0x86   :  { %5066 = vmatpush3.bf16.msra.mxu1 %v6332_v51  ;;  %3923 = vmatprep.mubr.msk.f32.mxu1 %vm5877_vm0, %v7272_v4 }
  0x87   :  { %5067 = vmatprep.subr.bf16.mxu1 %v7274_v3 }
  0x8a   :  { %5069 = vmatpush3.bf16.msra.mxu1 %v6346_v54 }
  0x8b   :  { %5070 = vmatprep.subr.bf16.mxu1 %v7274_v3 }
  0x8e   :  { %5072 = vmatpush3.bf16.msra.mxu1 %v6363_v23 }
  0x8f   :  { %5073 = vmatprep.subr.bf16.mxu1 %v7274_v3 }
  0x92   :  { %5075 = vmatpush3.bf16.msra.mxu1 %v6377_v34 }
  0x93   :  { %5076 = vmatprep.subr.bf16.mxu1 %v7274_v3 }
  0x96   :  { %5078 = vmatpush3.bf16.msra.mxu1 %v6391_v45 }
  0x97   :  { %5079 = vmatprep.subr.bf16.mxu1 %v7274_v3 }
  0x9a   :  { %5081 = vmatpush3.bf16.msra.mxu1 %v6405_v56 }
  0x9b   :  { %5082 = vmatprep.subr.bf16.mxu1 %v7274_v3 }
  0x9e   :  { %5084 = vmatpush3.bf16.msra.mxu1 %v6419_v6 }
  0x9f   :  { %5085 = vmatprep.subr.bf16.mxu1 %v7274_v3 }
  0xa2   :  { %5087 = vmatpush3.bf16.msra.mxu1 %v6433_v12 }
  0xa3   :  { %5112 = vmatprep.subr.bf16.mxu1 %v7274_v3 }
  0xf8   :  { %v183_v61 = vpop.f32.mrb[0].mxu1 }
  0xf9   :  { %v517_v63 = vpop.f32.mrb[0].mxu0  ;;  %v184_v0 = vadd.f32 %v183_v61, %v100_v60  ;;  %v6550_v1 = vpop.f32.mrb[1].mxu1 }
  0xfa   :  { %v3750_v5 = vpop.f32.mrb[1].mxu0 }
  0xfb   :  { %v521_v7 = vadd.f32 %v517_v63, %v184_v0 }
  0xfc   :  { %v189_v11 = vpop.f32.mrb[2].mxu1 }
  0xfd   :  { %v6554_v13 = vadd.f32 %v189_v11, %v100_v60  ;;  %v191_v15 = vpop.f32.mrb[3].mxu1  ;;  %v3123_v38 = vmul.f32 -1.442695, %v521_v7  ;;  %v107_v7 = vsub.s32 2, %v98_v53 }
  0xfe   :  { %v6557_v17 = vadd.f32 %v191_v15, %v6552_v9 }
  0xff   :  { %5747 = vpow2.f32 %v3123_v38 }
 0x100   :  { %v195_v18 = vpop.f32.mrb[4].mxu1 }
 0x101   :  { %v6559_v22 = vadd.f32 %v195_v18, %v100_v60  ;;  %v197_v24 = vpop.f32.mrb[5].mxu1 }
 0x102   :  { %v6562_v27 = vadd.f32 %v197_v24, %v6552_v9 }
 0x104   :  { %v201_v28 = vpop.f32.mrb[6].mxu1 }
 0x105   :  { %v6564_v31 = vadd.f32 %v201_v28, %v100_v60  ;;  %v203_v32 = vpop.f32.mrb[7].mxu1 }
 0x106   :  { %v6567_v37 = vadd.f32 %v203_v32, %v6552_v9  ;;  %v108_v32 = vrot.slane %v95_v58, %v107_v7 }
 0x108   :  { %v207_v41 = vpop.f32.mrb[8].mxu1 }
 0x109   :  { %v6569_v42 = vadd.f32 %v207_v41, %v100_v60  ;;  %v209_v44 = vpop.f32.mrb[9].mxu1  ;;  %v5748_v18 = vpop.eup %5747 }
 0x10a   :  { %v6572_v49 = vadd.f32 %v209_v44, %v6552_v9  ;;  %v525_v41 = vadd.f32 1.0, %v5748_v18 }
 0x10b   :  { %7276 = vst [vmem:[#allocation6_spill] sm:$0xff] %v6569_v42 }
 0x10c   :  { %7277 = vst [vmem:[#allocation7_spill] sm:$0xff] %v6572_v49  ;;  %v213_v52 = vpop.f32.mrb[10].mxu1  ;;  %5749 = vrcp.f32 %v525_v41 }
 0x10d   :  { %v6574_v55 = vadd.f32 %v213_v52, %v100_v60  ;;  %v215_v61 = vpop.f32.mrb[11].mxu1  ;;  %v111_v52 = vsub.s32 3, %v98_v53 }
 0x10e   :  { %v6577_v62 = vadd.f32 %v215_v61, %v6552_v9 }
 0x10f   :  { %7278 = vst [vmem:[#allocation8_spill] sm:$0xff] %v6574_v55 }
 0x110   :  { %7279 = vst [vmem:[#allocation9_spill] sm:$0xff] %v6577_v62  ;;  %v219_v63 = vpop.f32.mrb[12].mxu1 }
 0x111   :  { %v6579_v0 = vadd.f32 %v219_v63, %v100_v60  ;;  %v221_v5 = vpop.f32.mrb[13].mxu1 }
 0x112   :  { %v6582_v11 = vadd.f32 %v221_v5, %v6552_v9  ;;  %v112_v5 = vrot.slane %v95_v58, %v111_v52 }
 0x113   :  { %7280 = vst [vmem:[#allocation10_spill] sm:$0xff] %v6579_v0 }
 0x114   :  { %7281 = vst [vmem:[#allocation11_spill] sm:$0xff] %v6582_v11  ;;  %v225_v15 = vpop.f32.mrb[14].mxu1 }
 0x115   :  { %v6584_v24 = vadd.f32 %v225_v15, %v100_v60  ;;  %v227_v28 = vpop.f32.mrb[15].mxu1 }
 0x116   :  { %v6587_v38 = vadd.f32 %v227_v28, %v6552_v9 }
 0x117   :  { %7282 = vst [vmem:[#allocation12_spill] sm:$0xff] %v6584_v24 }
 0x118   :  { %7283 = vst [vmem:[#allocation13_spill] sm:$0xff] %v6587_v38  ;;  %v296_v44 = vpop.f32.mrb[16].mxu1 }
 0x119   :  { %v297_v61 = vadd.f32 %v296_v44, %v108_v32  ;;  %v298_v63 = vpop.f32.mrb[17].mxu1  ;;  %v671_v4 = vpop.f32.mrb[2].mxu0 }
 0x11a   :  { %v3820_v3 = vpop.f32.mrb[3].mxu0 }
 0x11b   :  { %v675_v0 = vadd.f32 %v671_v4, %v297_v61  ;;  %v5750_v4 = vpop.eup %5749 }
 0x11c   :  { %v302_v11 = vpop.f32.mrb[18].mxu1 }
 0x11d   :  { %5751 = vtanh.f32 %v675_v0  ;;  %v6589_v62 = vadd.f32 %v302_v11, %v108_v32  ;;  %v304_v60 = vpop.f32.mrb[19].mxu1 }
 0x11e   :  { %v6591_v15 = vadd.f32 %v304_v60, %v112_v5 }
 0x120   :  { %v308_v7 = vpop.f32.mrb[20].mxu1 }
 0x121   :  { %v6593_v28 = vadd.f32 %v308_v7, %v108_v32  ;;  %v310_v18 = vpop.f32.mrb[21].mxu1 }
 0x122   :  { %v6595_v38 = vadd.f32 %v310_v18, %v112_v5 }
 0x124   :  { %v314_v53 = vpop.f32.mrb[22].mxu1 }
 0x125   :  { %v6597_v44 = vadd.f32 %v314_v53, %v108_v32  ;;  %v316_v3 = vpop.f32.mrb[23].mxu1 }
 0x126   :  { %v6599_v41 = vadd.f32 %v316_v3, %v112_v5 }
 0x127   :  { %7284 = vst [vmem:[#allocation14_spill] sm:$0xff] %v6597_v44  ;;  %v5752_v58 = vpop.eup %5751 }
 0x128   :  { %7285 = vst [vmem:[#allocation15_spill] sm:$0xff] %v6599_v41  ;;  %v320_v0 = vpop.f32.mrb[24].mxu1  ;;  %v755_v11 = vmul.f32 %v5752_v58, %v5750_v4 }
 0x129   :  { %v6601_v52 = vadd.f32 %v320_v0, %v108_v32  ;;  %v322_v61 = vpop.f32.mrb[25].mxu1  ;;  %v186_v0 = vadd.f32 %v6550_v1, %v6552_v9 }
 0x12a   :  { %v6603_v60 = vadd.f32 %v322_v61, %v112_v5 }
 0x12c   :  { %7286 = vst [vmem:[#allocation16_spill] sm:$0xff] %v6603_v60  ;;  %v326_v7 = vpop.f32.mrb[26].mxu1 }
 0x12d   :  { %v6605_v24 = vadd.f32 %v326_v7, %v108_v32  ;;  %v328_v18 = vpop.f32.mrb[27].mxu1 }
 0x12e   :  { %v6607_v55 = vadd.f32 %v328_v18, %v112_v5 }
 0x12f   :  { %7287 = vst [vmem:[#allocation17_spill] sm:$0xff] %v6605_v24 }
 0x130   :  { %7288 = vst [vmem:[#allocation18_spill] sm:$0xff] %v6607_v55  ;;  %v332_v53 = vpop.f32.mrb[28].mxu1 }
 0x131   :  { %v6609_v49 = vadd.f32 %v332_v53, %v108_v32  ;;  %v334_v42 = vpop.f32.mrb[29].mxu1 }
 0x132   :  { %v6611_v3 = vadd.f32 %v334_v42, %v112_v5 }
 0x133   :  { %7289 = vst [vmem:[#allocation19_spill] sm:$0xff] %v6609_v49 }
 0x134   :  { %7290 = vst [vmem:[#allocation20_spill] sm:$0xff] %v6611_v3  ;;  %v338_v41 = vpop.f32.mrb[30].mxu1  ;;  %v299_v3 = vadd.f32 %v298_v63, %v112_v5 }
 0x135   :  { %v6613_v44 = vadd.f32 %v338_v41, %v108_v32  ;;  %v340_v4 = vpop.f32.mrb[31].mxu1 }
 0x136   :  { %v6615_v58 = vadd.f32 %v340_v4, %v112_v5 }
 0x137   :  { %7291 = vst [vmem:[#allocation21_spill] sm:$0xff] %v6613_v44 }
 0x138   :  { %7292 = vst [vmem:[#allocation22_spill] sm:$0xff] %v6615_v58  ;;  %v594_v61 = vpop.f32.mrb[32].mxu1 }
 0x139   :  { %v598_v7 = vadd.f32 %v594_v61, %v186_v0  ;;  %v3785_v24 = vpop.f32.mrb[33].mxu1 }
 0x13b   :  { %v3124_v18 = vmul.f32 -1.442695, %v598_v7 }
 0x13d   :  { %5753 = vpow2.f32 %v3124_v18 }
 0x147   :  { %v5754_v55 = vpop.eup %5753 }
 0x148   :  { %v602_v53 = vadd.f32 1.0, %v5754_v55  ;;  %v7294_v55 = vmov 0.0  }
 0x14a   :  { %5755 = vrcp.f32 %v602_v53 }
 0x154   :  { %v5756_v49 = vpop.eup %5755 }
 0x155   :  { %v754_v42 = vmul.f32 0.0, %v5756_v49  ;;  %v7293_v49 = vmov 0.0|0.0  }
 0x157   :  { %v6619_v60 = vadd.f32 %v755_v11, %v754_v42 }
 0x158   :  { %v743_v32 = vpop.f32.mrb[34].mxu1 }
 0x159   :  { %v747_v41 = vadd.f32 %v743_v32, %v299_v3  ;;  %v3855_v4 = vpop.f32.mrb[35].mxu1 }
 0x15b   :  { %v3125_v58 = vmul.f32 -1.442695, %v747_v41 }
 0x15d   :  { %5757 = vpow2.f32 %v3125_v58 }
 0x15e   :  { %5759 = vtanh.f32 %v6619_v60 }
 0x167   :  { %v5758_v44 = vpop.eup %5757 }
 0x168   :  { %v751_v1 = vadd.f32 1.0, %v5758_v44  ;;  %v5760_v9 = vpop.eup %5759 }
 0x16a   :  { %5761 = vrcp.f32 %v751_v1 }
 0x174   :  { %v5762_v24 = vpop.eup %5761 }
 0x175   :  { %v6622_v0 = vmul.f32 %v5762_v24, %v5760_v9 }
 0x177   :  { %3889 = vmatmul.mubr.f32.vlgmr.msra.gmra.mrb[4].mxu0 %v6622_v0  ;;  %3924 = vmatmul.mubr.f32.vlgmr.msra.gmra.mrb[36].mxu1 %v6622_v0 }
 0x178   :  { %5090 = vmatpush3.bf16.msra.mxu0 %v6122_v25  ;;  %5114 = vmatpush3.bf16.msra.mxu1 %v6448_v16 }
 0x179   :  { %5091 = vmatprep.subr.bf16.mxu0 %v7293_v49  ;;  %5115 = vmatprep.subr.bf16.mxu1 %v7293_v49 }
 0x17a   :  { %3958 = vmatprep.mubr.msk.f32.mxu0 %vm5877_vm0, %v7294_v55  ;;  %3993 = vmatprep.mubr.msk.f32.mxu1 %vm5877_vm0, %v7294_v55 }
 0x17c   :  { %5093 = vmatpush3.bf16.msra.mxu0 %v6151_v36  ;;  %5117 = vmatpush3.bf16.msra.mxu1 %v6461_v20 }
 0x17d   :  { %5094 = vmatprep.subr.bf16.mxu0 %v7293_v49  ;;  %5118 = vmatprep.subr.bf16.mxu1 %v7293_v49 }
 0x180   :  { %5096 = vmatpush3.bf16.msra.mxu0 %v6182_v47  ;;  %5120 = vmatpush3.bf16.msra.mxu1 %v6473_v26 }
 0x181   :  { %5097 = vmatprep.subr.bf16.mxu0 %v7293_v49  ;;  %5121 = vmatprep.subr.bf16.mxu1 %v7293_v49 }
 0x184   :  { %5099 = vmatpush3.bf16.msra.mxu0 %v6211_v59  ;;  %5123 = vmatpush3.bf16.msra.mxu1 %v6483_v29 }
 0x185   :  { %5100 = vmatprep.subr.bf16.mxu0 %v7293_v49  ;;  %5124 = vmatprep.subr.bf16.mxu1 %v7293_v49 }
 0x188   :  { %5102 = vmatpush3.bf16.msra.mxu0 %v6240_v8  ;;  %5126 = vmatpush3.bf16.msra.mxu1 %v6493_v33 }
 0x189   :  { %5103 = vmatprep.subr.bf16.mxu0 %v7293_v49  ;;  %5127 = vmatprep.subr.bf16.mxu1 %v7293_v49 }
 0x18c   :  { %5105 = vmatpush3.bf16.msra.mxu0 %v6269_v21  ;;  %5129 = vmatpush3.bf16.msra.mxu1 %v6503_v40 }
 0x18d   :  { %5106 = vmatprep.subr.bf16.mxu0 %v7293_v49  ;;  %5130 = vmatprep.subr.bf16.mxu1 %v7293_v49 }
 0x190   :  { %5108 = vmatpush3.bf16.msra.mxu0 %v6298_v35  ;;  %5132 = vmatpush3.bf16.msra.mxu1 %v6513_v43 }
 0x191   :  { %5109 = vmatprep.subr.bf16.mxu0 %v7293_v49  ;;  %5133 = vmatprep.subr.bf16.mxu1 %v7293_v49 }
 0x194   :  { %5111 = vmatpush3.bf16.msra.mxu0 %v6321_v46  ;;  %5135 = vmatpush3.bf16.msra.mxu1 %v6523_v50 }
 0x195   :  { %5136 = vmatprep.subr.bf16.mxu0 %v7293_v49  ;;  %5160 = vmatprep.subr.bf16.mxu1 %v7293_v49 }
 0x197   :  { %3959 = vmatmul.mubr.f32.vlgmr.msra.gmra.mrb[6].mxu0 %v6622_v0  ;;  %3994 = vmatmul.mubr.f32.vlgmr.msra.gmra.mrb[38].mxu1 %v6622_v0 }
 0x198   :  { %5138 = vmatpush3.bf16.msra.mxu0 %v5935_v10  ;;  %5162 = vmatpush3.bf16.msra.mxu1 %v6332_v51 }
 0x199   :  { %5139 = vmatprep.subr.bf16.mxu0 %v7293_v49  ;;  %5163 = vmatprep.subr.bf16.mxu1 %v7293_v49 }
 0x19a   :  { %4028 = vmatprep.mubr.msk.f32.mxu0 %vm5877_vm0, %v7294_v55  ;;  %4063 = vmatprep.mubr.msk.f32.mxu1 %vm5877_vm0, %v7294_v55 }
 0x19c   :  { %5141 = vmatpush3.bf16.msra.mxu0 %v5956_v19  ;;  %5165 = vmatpush3.bf16.msra.mxu1 %v6346_v54 }
 0x19d   :  { %5142 = vmatprep.subr.bf16.mxu0 %v7293_v49  ;;  %5166 = vmatprep.subr.bf16.mxu1 %v7293_v49 }
 0x1a0   :  { %5144 = vmatpush3.bf16.msra.mxu0 %v5984_v30  ;;  %5168 = vmatpush3.bf16.msra.mxu1 %v6363_v23 }
 0x1a1   :  { %5145 = vmatprep.subr.bf16.mxu0 %v7293_v49  ;;  %5169 = vmatprep.subr.bf16.mxu1 %v7293_v49 }
 0x1a4   :  { %5147 = vmatpush3.bf16.msra.mxu0 %v6006_v39  ;;  %5171 = vmatpush3.bf16.msra.mxu1 %v6377_v34 }
 0x1a5   :  { %5148 = vmatprep.subr.bf16.mxu0 %v7293_v49  ;;  %5172 = vmatprep.subr.bf16.mxu1 %v7293_v49 }
 0x1a8   :  { %5150 = vmatpush3.bf16.msra.mxu0 %v6028_v48  ;;  %5174 = vmatpush3.bf16.msra.mxu1 %v6391_v45 }
 0x1a9   :  { %5151 = vmatprep.subr.bf16.mxu0 %v7293_v49  ;;  %5175 = vmatprep.subr.bf16.mxu1 %v7293_v49 }
 0x1ac   :  { %5153 = vmatpush3.bf16.msra.mxu0 %v6050_v57  ;;  %5177 = vmatpush3.bf16.msra.mxu1 %v6405_v56 }
 0x1ad   :  { %5154 = vmatprep.subr.bf16.mxu0 %v7293_v49  ;;  %5178 = vmatprep.subr.bf16.mxu1 %v7293_v49 }
 0x1b0   :  { %5156 = vmatpush3.bf16.msra.mxu0 %v6072_v2  ;;  %5180 = vmatpush3.bf16.msra.mxu1 %v6419_v6 }
 0x1b1   :  { %5157 = vmatprep.subr.bf16.mxu0 %v7293_v49  ;;  %5181 = vmatprep.subr.bf16.mxu1 %v7293_v49 }
 0x1b4   :  { %5159 = vmatpush3.bf16.msra.mxu0 %v6094_v14  ;;  %5183 = vmatpush3.bf16.msra.mxu1 %v6433_v12 }
 0x1b5   :  { %5184 = vmatprep.subr.bf16.mxu0 %v7293_v49  ;;  %5208 = vmatprep.subr.bf16.mxu1 %v7293_v49 }
 0x24a   :  { %v831_v63 = vpop.f32.mrb[4].mxu0  ;;  %v908_v5 = vpop.f32.mrb[36].mxu1 }
 0x24b   :  { %v835_v44 = vadd.f32 %v831_v63, %v6554_v13  ;;  %v912_v11 = vadd.f32 %v908_v5, %v6557_v17  ;;  %v3890_v3 = vpop.f32.mrb[5].mxu0  ;;  %v3925_v58 = vpop.f32.mrb[37].mxu1 }
 0x24d   :  { %v3127_v61 = vmul.f32 -1.442695, %v912_v11  ;;  %v3126_v7 = vmul.f32 -1.442695, %v835_v44 }
 0x24f   :  { %5763 = vpow2.f32 %v3127_v61 }
 0x250   :  { %5765 = vpow2.f32 %v3126_v7 }
 0x259   :  { %v5764_v18 = vpop.eup %5763 }
 0x25a   :  { %v5766_v53 = vpop.eup %5765  ;;  %v916_v42 = vadd.f32 1.0, %v5764_v18 }
 0x25b   :  { %v839_v32 = vadd.f32 1.0, %v5766_v53 }
 0x25c   :  { %5767 = vrcp.f32 %v916_v42 }
 0x25d   :  { %5769 = vrcp.f32 %v839_v32 }
 0x266   :  { %v5768_v63 = vpop.eup %5767 }
 0x267   :  { %v5770_v5 = vpop.eup %5769  ;;  %v1068_v11 = vmul.f32 %v5768_v63, %v6619_v60 }
 0x26a   :  { %v985_v41 = vpop.f32.mrb[6].mxu0  ;;  %v1057_v4 = vpop.f32.mrb[38].mxu1 }
 0x26b   :  { %v989_v1 = vadd.f32 %v985_v41, %v6589_v62  ;;  %v1061_v9 = vadd.f32 %v1057_v4, %v6591_v15  ;;  %v3960_v13 = vpop.f32.mrb[7].mxu0  ;;  %v3995_v24 = vpop.f32.mrb[39].mxu1 }
 0x26d   :  { %5771 = vtanh.f32 %v989_v1  ;;  %v3128_v17 = vmul.f32 -1.442695, %v1061_v9 }
 0x26f   :  { %5773 = vpow2.f32 %v3128_v17 }
 0x277   :  { %v5772_v44 = vpop.eup %5771 }
 0x278   :  { %v1069_v3 = vmul.f32 %v5772_v44, %v5770_v5 }
 0x279   :  { %v5774_v58 = vpop.eup %5773 }
 0x27a   :  { %v6705_v61 = vadd.f32 %v1069_v3, %v1068_v11  ;;  %v1065_v7 = vadd.f32 1.0, %v5774_v58 }
 0x27c   :  { %5775 = vtanh.f32 %v6705_v61 }
 0x27d   :  { %5777 = vrcp.f32 %v1065_v7 }
 0x286   :  { %v5776_v62 = vpop.eup %5775 }
 0x287   :  { %v5778_v15 = vpop.eup %5777 }
 0x288   :  { %v6708_v18 = vmul.f32 %v5778_v15, %v5776_v62 }
 0x28a   :  { %4029 = vmatmul.mubr.f32.vlgmr.msra.gmra.mrb[8].mxu0 %v6708_v18  ;;  %4064 = vmatmul.mubr.f32.vlgmr.msra.gmra.mrb[40].mxu1 %v6708_v18 }
 0x28b   :  { %5186 = vmatpush3.bf16.msra.mxu0 %v6122_v25  ;;  %5210 = vmatpush3.bf16.msra.mxu1 %v6448_v16 }
 0x28c   :  { %5187 = vmatprep.subr.bf16.mxu0 %v7293_v49  ;;  %5211 = vmatprep.subr.bf16.mxu1 %v7293_v49 }
 0x28d   :  { %4098 = vmatprep.mubr.msk.f32.mxu0 %vm5877_vm0, %v7294_v55  ;;  %4133 = vmatprep.mubr.msk.f32.mxu1 %vm5877_vm0, %v7294_v55 }
 0x28f   :  { %5189 = vmatpush3.bf16.msra.mxu0 %v6151_v36  ;;  %5213 = vmatpush3.bf16.msra.mxu1 %v6461_v20 }
 0x290   :  { %5190 = vmatprep.subr.bf16.mxu0 %v7293_v49  ;;  %5214 = vmatprep.subr.bf16.mxu1 %v7293_v49 }
 0x293   :  { %5192 = vmatpush3.bf16.msra.mxu0 %v6182_v47  ;;  %5216 = vmatpush3.bf16.msra.mxu1 %v6473_v26 }
 0x294   :  { %5193 = vmatprep.subr.bf16.mxu0 %v7293_v49  ;;  %5217 = vmatprep.subr.bf16.mxu1 %v7293_v49 }
 0x297   :  { %5195 = vmatpush3.bf16.msra.mxu0 %v6211_v59  ;;  %5219 = vmatpush3.bf16.msra.mxu1 %v6483_v29 }
 0x298   :  { %5196 = vmatprep.subr.bf16.mxu0 %v7293_v49  ;;  %5220 = vmatprep.subr.bf16.mxu1 %v7293_v49 }
 0x29b   :  { %5198 = vmatpush3.bf16.msra.mxu0 %v6240_v8  ;;  %5222 = vmatpush3.bf16.msra.mxu1 %v6493_v33 }
 0x29c   :  { %5199 = vmatprep.subr.bf16.mxu0 %v7293_v49  ;;  %5223 = vmatprep.subr.bf16.mxu1 %v7293_v49 }
 0x29f   :  { %5201 = vmatpush3.bf16.msra.mxu0 %v6269_v21  ;;  %5225 = vmatpush3.bf16.msra.mxu1 %v6503_v40 }
 0x2a0   :  { %5202 = vmatprep.subr.bf16.mxu0 %v7293_v49  ;;  %5226 = vmatprep.subr.bf16.mxu1 %v7293_v49 }
 0x2a3   :  { %5204 = vmatpush3.bf16.msra.mxu0 %v6298_v35  ;;  %5228 = vmatpush3.bf16.msra.mxu1 %v6513_v43 }
 0x2a4   :  { %5205 = vmatprep.subr.bf16.mxu0 %v7293_v49  ;;  %5229 = vmatprep.subr.bf16.mxu1 %v7293_v49 }
 0x2a7   :  { %5207 = vmatpush3.bf16.msra.mxu0 %v6321_v46  ;;  %5231 = vmatpush3.bf16.msra.mxu1 %v6523_v50 }
 0x2a8   :  { %5232 = vmatprep.subr.bf16.mxu0 %v7293_v49  ;;  %5256 = vmatprep.subr.bf16.mxu1 %v7293_v49 }
 0x2aa   :  { %4099 = vmatmul.mubr.f32.vlgmr.msra.gmra.mrb[10].mxu0 %v6708_v18  ;;  %4134 = vmatmul.mubr.f32.vlgmr.msra.gmra.mrb[42].mxu1 %v6708_v18 }
 0x2ab   :  { %5234 = vmatpush3.bf16.msra.mxu0 %v5935_v10  ;;  %5258 = vmatpush3.bf16.msra.mxu1 %v6332_v51 }
 0x2ac   :  { %5235 = vmatprep.subr.bf16.mxu0 %v7293_v49  ;;  %5259 = vmatprep.subr.bf16.mxu1 %v7293_v49 }
 0x2ad   :  { %4168 = vmatprep.mubr.msk.f32.mxu0 %vm5877_vm0, %v7294_v55  ;;  %4203 = vmatprep.mubr.msk.f32.mxu1 %vm5877_vm0, %v7294_v55 }
 0x2af   :  { %5237 = vmatpush3.bf16.msra.mxu0 %v5956_v19  ;;  %5261 = vmatpush3.bf16.msra.mxu1 %v6346_v54 }
 0x2b0   :  { %5238 = vmatprep.subr.bf16.mxu0 %v7293_v49  ;;  %5262 = vmatprep.subr.bf16.mxu1 %v7293_v49 }
 0x2b3   :  { %5240 = vmatpush3.bf16.msra.mxu0 %v5984_v30  ;;  %5264 = vmatpush3.bf16.msra.mxu1 %v6363_v23 }
 0x2b4   :  { %5241 = vmatprep.subr.bf16.mxu0 %v7293_v49  ;;  %5265 = vmatprep.subr.bf16.mxu1 %v7293_v49 }
 0x2b7   :  { %5243 = vmatpush3.bf16.msra.mxu0 %v6006_v39  ;;  %5267 = vmatpush3.bf16.msra.mxu1 %v6377_v34 }
 0x2b8   :  { %5244 = vmatprep.subr.bf16.mxu0 %v7293_v49  ;;  %5268 = vmatprep.subr.bf16.mxu1 %v7293_v49 }
 0x2bb   :  { %5246 = vmatpush3.bf16.msra.mxu0 %v6028_v48  ;;  %5270 = vmatpush3.bf16.msra.mxu1 %v6391_v45 }
 0x2bc   :  { %5247 = vmatprep.subr.bf16.mxu0 %v7293_v49  ;;  %5271 = vmatprep.subr.bf16.mxu1 %v7293_v49 }
 0x2bf   :  { %5249 = vmatpush3.bf16.msra.mxu0 %v6050_v57  ;;  %5273 = vmatpush3.bf16.msra.mxu1 %v6405_v56 }
 0x2c0   :  { %5250 = vmatprep.subr.bf16.mxu0 %v7293_v49  ;;  %5274 = vmatprep.subr.bf16.mxu1 %v7293_v49 }
 0x2c3   :  { %5252 = vmatpush3.bf16.msra.mxu0 %v6072_v2  ;;  %5276 = vmatpush3.bf16.msra.mxu1 %v6419_v6 }
 0x2c4   :  { %5253 = vmatprep.subr.bf16.mxu0 %v7293_v49  ;;  %5277 = vmatprep.subr.bf16.mxu1 %v7293_v49 }
 0x2c7   :  { %5255 = vmatpush3.bf16.msra.mxu0 %v6094_v14  ;;  %5279 = vmatpush3.bf16.msra.mxu1 %v6433_v12 }
 0x2c8   :  { %5280 = vmatprep.subr.bf16.mxu0 %v7293_v49  ;;  %5304 = vmatprep.subr.bf16.mxu1 %v7293_v49 }
 0x35d   :  { %v1146_v60 = vpop.f32.mrb[8].mxu0  ;;  %v1223_v53 = vpop.f32.mrb[40].mxu1 }
 0x35e   :  { %v1150_v42 = vadd.f32 %v1146_v60, %v6559_v22  ;;  %v1227_v32 = vadd.f32 %v1223_v53, %v6562_v27  ;;  %v4030_v41 = vpop.f32.mrb[9].mxu0  ;;  %v4065_v4 = vpop.f32.mrb[41].mxu1 }
 0x360   :  { %v3130_v1 = vmul.f32 -1.442695, %v1227_v32  ;;  %v3129_v9 = vmul.f32 -1.442695, %v1150_v42 }
 0x362   :  { %5779 = vpow2.f32 %v3130_v1 }
 0x363   :  { %5781 = vpow2.f32 %v3129_v9 }
 0x36c   :  { %v5780_v13 = vpop.eup %5779 }
 0x36d   :  { %v5782_v24 = vpop.eup %5781  ;;  %v1231_v17 = vadd.f32 1.0, %v5780_v13 }
 0x36e   :  { %v1154_v63 = vadd.f32 1.0, %v5782_v24 }
 0x36f   :  { %5783 = vrcp.f32 %v1231_v17 }
 0x370   :  { %5785 = vrcp.f32 %v1154_v63 }
 0x379   :  { %v5784_v7 = vpop.eup %5783 }
 0x37a   :  { %v5786_v62 = vpop.eup %5785  ;;  %v1383_v60 = vmul.f32 %v5784_v7, %v6705_v61  ;;  %v7295_v7 = vld [vmem:[#allocation14_spill] sm:$0xff] }
 0x37d   :  { %v1300_v5 = vpop.f32.mrb[10].mxu0  ;;  %v1372_v44 = vpop.f32.mrb[42].mxu1 }
 0x37e   :  { %v1304_v11 = vadd.f32 %v1300_v5, %v6593_v28  ;;  %v1376_v3 = vadd.f32 %v1372_v44, %v6595_v38  ;;  %v4100_v22 = vpop.f32.mrb[11].mxu0  ;;  %v4135_v58 = vpop.f32.mrb[43].mxu1 }
 0x380   :  { %5787 = vtanh.f32 %v1304_v11  ;;  %v3131_v27 = vmul.f32 -1.442695, %v1376_v3 }
 0x382   :  { %5789 = vpow2.f32 %v3131_v27 }
 0x38a   :  { %v5788_v15 = vpop.eup %5787 }
 0x38b   :  { %v1384_v53 = vmul.f32 %v5788_v15, %v5786_v62  ;;  %v7296_v15 = vld [vmem:[#allocation15_spill] sm:$0xff] }
 0x38c   :  { %v5790_v42 = vpop.eup %5789 }
 0x38d   :  { %v6791_v32 = vadd.f32 %v1384_v53, %v1383_v60  ;;  %v1380_v41 = vadd.f32 1.0, %v5790_v42 }
 0x38f   :  { %5791 = vtanh.f32 %v6791_v32 }
 0x390   :  { %5793 = vrcp.f32 %v1380_v41 }
 0x399   :  { %v5792_v38 = vpop.eup %5791 }
 0x39a   :  { %v5794_v28 = vpop.eup %5793 }
 0x39b   :  { %v6794_v4 = vmul.f32 %v5794_v28, %v5792_v38 }
 0x39d   :  { %4169 = vmatmul.mubr.f32.vlgmr.msra.gmra.mrb[12].mxu0 %v6794_v4  ;;  %4204 = vmatmul.mubr.f32.vlgmr.msra.gmra.mrb[44].mxu1 %v6794_v4 }
 0x39e   :  { %5282 = vmatpush3.bf16.msra.mxu0 %v6122_v25  ;;  %5306 = vmatpush3.bf16.msra.mxu1 %v6448_v16 }
 0x39f   :  { %5283 = vmatprep.subr.bf16.mxu0 %v7293_v49  ;;  %5307 = vmatprep.subr.bf16.mxu1 %v7293_v49 }
 0x3a0   :  { %4238 = vmatprep.mubr.msk.f32.mxu0 %vm5877_vm0, %v7294_v55  ;;  %4273 = vmatprep.mubr.msk.f32.mxu1 %vm5877_vm0, %v7294_v55 }
 0x3a2   :  { %5285 = vmatpush3.bf16.msra.mxu0 %v6151_v36  ;;  %5309 = vmatpush3.bf16.msra.mxu1 %v6461_v20 }
 0x3a3   :  { %5286 = vmatprep.subr.bf16.mxu0 %v7293_v49  ;;  %5310 = vmatprep.subr.bf16.mxu1 %v7293_v49 }
 0x3a6   :  { %5288 = vmatpush3.bf16.msra.mxu0 %v6182_v47  ;;  %5312 = vmatpush3.bf16.msra.mxu1 %v6473_v26 }
 0x3a7   :  { %5289 = vmatprep.subr.bf16.mxu0 %v7293_v49  ;;  %5313 = vmatprep.subr.bf16.mxu1 %v7293_v49 }
 0x3aa   :  { %5291 = vmatpush3.bf16.msra.mxu0 %v6211_v59  ;;  %5315 = vmatpush3.bf16.msra.mxu1 %v6483_v29 }
 0x3ab   :  { %5292 = vmatprep.subr.bf16.mxu0 %v7293_v49  ;;  %5316 = vmatprep.subr.bf16.mxu1 %v7293_v49 }
 0x3ae   :  { %5294 = vmatpush3.bf16.msra.mxu0 %v6240_v8  ;;  %5318 = vmatpush3.bf16.msra.mxu1 %v6493_v33 }
 0x3af   :  { %5295 = vmatprep.subr.bf16.mxu0 %v7293_v49  ;;  %5319 = vmatprep.subr.bf16.mxu1 %v7293_v49 }
 0x3b2   :  { %5297 = vmatpush3.bf16.msra.mxu0 %v6269_v21  ;;  %5321 = vmatpush3.bf16.msra.mxu1 %v6503_v40 }
 0x3b3   :  { %5298 = vmatprep.subr.bf16.mxu0 %v7293_v49  ;;  %5322 = vmatprep.subr.bf16.mxu1 %v7293_v49 }
 0x3b6   :  { %5300 = vmatpush3.bf16.msra.mxu0 %v6298_v35  ;;  %5324 = vmatpush3.bf16.msra.mxu1 %v6513_v43 }
 0x3b7   :  { %5301 = vmatprep.subr.bf16.mxu0 %v7293_v49  ;;  %5325 = vmatprep.subr.bf16.mxu1 %v7293_v49 }
 0x3ba   :  { %5303 = vmatpush3.bf16.msra.mxu0 %v6321_v46  ;;  %5327 = vmatpush3.bf16.msra.mxu1 %v6523_v50 }
 0x3bb   :  { %5328 = vmatprep.subr.bf16.mxu0 %v7293_v49  ;;  %5352 = vmatprep.subr.bf16.mxu1 %v7293_v49 }
 0x3bd   :  { %4239 = vmatmul.mubr.f32.vlgmr.msra.gmra.mrb[14].mxu0 %v6794_v4  ;;  %4274 = vmatmul.mubr.f32.vlgmr.msra.gmra.mrb[46].mxu1 %v6794_v4 }
 0x3be   :  { %5330 = vmatpush3.bf16.msra.mxu0 %v5935_v10  ;;  %5354 = vmatpush3.bf16.msra.mxu1 %v6332_v51 }
 0x3bf   :  { %5331 = vmatprep.subr.bf16.mxu0 %v7293_v49  ;;  %5355 = vmatprep.subr.bf16.mxu1 %v7293_v49 }
 0x3c0   :  { %4308 = vmatprep.mubr.msk.f32.mxu0 %vm5877_vm0, %v7294_v55  ;;  %4343 = vmatprep.mubr.msk.f32.mxu1 %vm5877_vm0, %v7294_v55 }
 0x3c2   :  { %5333 = vmatpush3.bf16.msra.mxu0 %v5956_v19  ;;  %5357 = vmatpush3.bf16.msra.mxu1 %v6346_v54 }
 0x3c3   :  { %5334 = vmatprep.subr.bf16.mxu0 %v7293_v49  ;;  %5358 = vmatprep.subr.bf16.mxu1 %v7293_v49 }
 0x3c6   :  { %5336 = vmatpush3.bf16.msra.mxu0 %v5984_v30  ;;  %5360 = vmatpush3.bf16.msra.mxu1 %v6363_v23 }
 0x3c7   :  { %5337 = vmatprep.subr.bf16.mxu0 %v7293_v49  ;;  %5361 = vmatprep.subr.bf16.mxu1 %v7293_v49 }
 0x3ca   :  { %5339 = vmatpush3.bf16.msra.mxu0 %v6006_v39  ;;  %5363 = vmatpush3.bf16.msra.mxu1 %v6377_v34 }
 0x3cb   :  { %5340 = vmatprep.subr.bf16.mxu0 %v7293_v49  ;;  %5364 = vmatprep.subr.bf16.mxu1 %v7293_v49 }
 0x3ce   :  { %5342 = vmatpush3.bf16.msra.mxu0 %v6028_v48  ;;  %5366 = vmatpush3.bf16.msra.mxu1 %v6391_v45 }
 0x3cf   :  { %5343 = vmatprep.subr.bf16.mxu0 %v7293_v49  ;;  %5367 = vmatprep.subr.bf16.mxu1 %v7293_v49 }
 0x3d2   :  { %5345 = vmatpush3.bf16.msra.mxu0 %v6050_v57  ;;  %5369 = vmatpush3.bf16.msra.mxu1 %v6405_v56 }
 0x3d3   :  { %5346 = vmatprep.subr.bf16.mxu0 %v7293_v49  ;;  %5370 = vmatprep.subr.bf16.mxu1 %v7293_v49 }
 0x3d6   :  { %5348 = vmatpush3.bf16.msra.mxu0 %v6072_v2  ;;  %5372 = vmatpush3.bf16.msra.mxu1 %v6419_v6 }
 0x3d7   :  { %5349 = vmatprep.subr.bf16.mxu0 %v7293_v49  ;;  %5373 = vmatprep.subr.bf16.mxu1 %v7293_v49 }
 0x3da   :  { %5351 = vmatpush3.bf16.msra.mxu0 %v6094_v14  ;;  %5375 = vmatpush3.bf16.msra.mxu1 %v6433_v12 }
 0x3db   :  { %5376 = vmatprep.subr.bf16.mxu0 %v7293_v49  ;;  %5400 = vmatprep.subr.bf16.mxu1 %v7293_v49 }
 0x470   :  { %v1461_v61 = vpop.f32.mrb[12].mxu0  ;;  %v1538_v1 = vpop.f32.mrb[44].mxu1 }
 0x471   :  { %v1465_v9 = vadd.f32 %v1461_v61, %v6564_v31  ;;  %v1542_v13 = vadd.f32 %v1538_v1, %v6567_v37  ;;  %v4170_v24 = vpop.f32.mrb[13].mxu0  ;;  %v4205_v17 = vpop.f32.mrb[45].mxu1 }
 0x473   :  { %v3133_v63 = vmul.f32 -1.442695, %v1542_v13  ;;  %v3132_v5 = vmul.f32 -1.442695, %v1465_v9 }
 0x475   :  { %5795 = vpow2.f32 %v3133_v63 }
 0x476   :  { %5797 = vpow2.f32 %v3132_v5 }
 0x47f   :  { %v5796_v44 = vpop.eup %5795 }
 0x480   :  { %v5798_v11 = vpop.eup %5797  ;;  %v1546_v3 = vadd.f32 1.0, %v5796_v44  ;;  %v7297_v44 = vld [vmem:[#allocation6_spill] sm:$0xff] }
 0x481   :  { %v1469_v22 = vadd.f32 1.0, %v5798_v11 }
 0x482   :  { %5799 = vrcp.f32 %v1546_v3  ;;  %v7298_v3 = vld [vmem:[#allocation7_spill] sm:$0xff] }
 0x483   :  { %5801 = vrcp.f32 %v1469_v22 }
 0x48c   :  { %v5800_v42 = vpop.eup %5799 }
 0x48d   :  { %v5802_v41 = vpop.eup %5801  ;;  %v1698_v28 = vmul.f32 %v5800_v42, %v6791_v32 }
 0x490   :  { %v1615_v58 = vpop.f32.mrb[14].mxu0  ;;  %v1687_v27 = vpop.f32.mrb[46].mxu1 }
 0x491   :  { %v1619_v62 = vadd.f32 %v1615_v58, %v7295_v7  ;;  %v1691_v60 = vadd.f32 %v1687_v27, %v7296_v15  ;;  %v4240_v31 = vpop.f32.mrb[15].mxu0  ;;  %v4275_v53 = vpop.f32.mrb[47].mxu1 }
 0x493   :  { %5803 = vtanh.f32 %v1619_v62  ;;  %v3134_v37 = vmul.f32 -1.442695, %v1691_v60 }
 0x495   :  { %5805 = vpow2.f32 %v3134_v37 }
 0x49d   :  { %v5804_v38 = vpop.eup %5803 }
 0x49e   :  { %v1699_v61 = vmul.f32 %v5804_v38, %v5802_v41  ;;  %v7299_v38 = vld [vmem:[#allocation16_spill] sm:$0xff] }
 0x49f   :  { %v5806_v1 = vpop.eup %5805 }
 0x4a0   :  { %v6877_v9 = vadd.f32 %v1699_v61, %v1698_v28  ;;  %v1695_v13 = vadd.f32 1.0, %v5806_v1 }
 0x4a2   :  { %5807 = vtanh.f32 %v6877_v9 }
 0x4a3   :  { %5809 = vrcp.f32 %v1695_v13 }
 0x4ac   :  { %v5808_v24 = vpop.eup %5807 }
 0x4ad   :  { %v5810_v17 = vpop.eup %5809 }
 0x4ae   :  { %v6880_v63 = vmul.f32 %v5810_v17, %v5808_v24 }
 0x4b0   :  { %4309 = vmatmul.mubr.f32.vlgmr.msra.gmra.mrb[16].mxu0 %v6880_v63  ;;  %4344 = vmatmul.mubr.f32.vlgmr.msra.gmra.mrb[48].mxu1 %v6880_v63 }
 0x4b1   :  { %5378 = vmatpush3.bf16.msra.mxu0 %v6122_v25  ;;  %5402 = vmatpush3.bf16.msra.mxu1 %v6448_v16 }
 0x4b2   :  { %5379 = vmatprep.subr.bf16.mxu0 %v7293_v49  ;;  %5403 = vmatprep.subr.bf16.mxu1 %v7293_v49 }
 0x4b3   :  { %4378 = vmatprep.mubr.msk.f32.mxu0 %vm5877_vm0, %v7294_v55  ;;  %4413 = vmatprep.mubr.msk.f32.mxu1 %vm5877_vm0, %v7294_v55 }
 0x4b5   :  { %5381 = vmatpush3.bf16.msra.mxu0 %v6151_v36  ;;  %5405 = vmatpush3.bf16.msra.mxu1 %v6461_v20 }
 0x4b6   :  { %5382 = vmatprep.subr.bf16.mxu0 %v7293_v49  ;;  %5406 = vmatprep.subr.bf16.mxu1 %v7293_v49 }
 0x4b9   :  { %5384 = vmatpush3.bf16.msra.mxu0 %v6182_v47  ;;  %5408 = vmatpush3.bf16.msra.mxu1 %v6473_v26 }
 0x4ba   :  { %5385 = vmatprep.subr.bf16.mxu0 %v7293_v49  ;;  %5409 = vmatprep.subr.bf16.mxu1 %v7293_v49 }
 0x4bd   :  { %5387 = vmatpush3.bf16.msra.mxu0 %v6211_v59  ;;  %5411 = vmatpush3.bf16.msra.mxu1 %v6483_v29 }
 0x4be   :  { %5388 = vmatprep.subr.bf16.mxu0 %v7293_v49  ;;  %5412 = vmatprep.subr.bf16.mxu1 %v7293_v49 }
 0x4c1   :  { %5390 = vmatpush3.bf16.msra.mxu0 %v6240_v8  ;;  %5414 = vmatpush3.bf16.msra.mxu1 %v6493_v33 }
 0x4c2   :  { %5391 = vmatprep.subr.bf16.mxu0 %v7293_v49  ;;  %5415 = vmatprep.subr.bf16.mxu1 %v7293_v49 }
 0x4c5   :  { %5393 = vmatpush3.bf16.msra.mxu0 %v6269_v21  ;;  %5417 = vmatpush3.bf16.msra.mxu1 %v6503_v40 }
 0x4c6   :  { %5394 = vmatprep.subr.bf16.mxu0 %v7293_v49  ;;  %5418 = vmatprep.subr.bf16.mxu1 %v7293_v49 }
 0x4c9   :  { %5396 = vmatpush3.bf16.msra.mxu0 %v6298_v35  ;;  %5420 = vmatpush3.bf16.msra.mxu1 %v6513_v43 }
 0x4ca   :  { %5397 = vmatprep.subr.bf16.mxu0 %v7293_v49  ;;  %5421 = vmatprep.subr.bf16.mxu1 %v7293_v49 }
 0x4cd   :  { %5399 = vmatpush3.bf16.msra.mxu0 %v6321_v46  ;;  %5423 = vmatpush3.bf16.msra.mxu1 %v6523_v50 }
 0x4ce   :  { %5424 = vmatprep.subr.bf16.mxu0 %v7293_v49  ;;  %5448 = vmatprep.subr.bf16.mxu1 %v7293_v49 }
 0x4d0   :  { %4379 = vmatmul.mubr.f32.vlgmr.msra.gmra.mrb[18].mxu0 %v6880_v63  ;;  %4414 = vmatmul.mubr.f32.vlgmr.msra.gmra.mrb[50].mxu1 %v6880_v63 }
 0x4d1   :  { %5426 = vmatpush3.bf16.msra.mxu0 %v5935_v10  ;;  %5450 = vmatpush3.bf16.msra.mxu1 %v6332_v51 }
 0x4d2   :  { %5427 = vmatprep.subr.bf16.mxu0 %v7293_v49  ;;  %5451 = vmatprep.subr.bf16.mxu1 %v7293_v49 }
 0x4d3   :  { %4448 = vmatprep.mubr.msk.f32.mxu0 %vm5877_vm0, %v7294_v55  ;;  %4483 = vmatprep.mubr.msk.f32.mxu1 %vm5877_vm0, %v7294_v55 }
 0x4d5   :  { %5429 = vmatpush3.bf16.msra.mxu0 %v5956_v19  ;;  %5453 = vmatpush3.bf16.msra.mxu1 %v6346_v54 }
 0x4d6   :  { %5430 = vmatprep.subr.bf16.mxu0 %v7293_v49  ;;  %5454 = vmatprep.subr.bf16.mxu1 %v7293_v49 }
 0x4d9   :  { %5432 = vmatpush3.bf16.msra.mxu0 %v5984_v30  ;;  %5456 = vmatpush3.bf16.msra.mxu1 %v6363_v23 }
 0x4da   :  { %5433 = vmatprep.subr.bf16.mxu0 %v7293_v49  ;;  %5457 = vmatprep.subr.bf16.mxu1 %v7293_v49 }
 0x4dd   :  { %5435 = vmatpush3.bf16.msra.mxu0 %v6006_v39  ;;  %5459 = vmatpush3.bf16.msra.mxu1 %v6377_v34 }
 0x4de   :  { %5436 = vmatprep.subr.bf16.mxu0 %v7293_v49  ;;  %5460 = vmatprep.subr.bf16.mxu1 %v7293_v49 }
 0x4e1   :  { %5438 = vmatpush3.bf16.msra.mxu0 %v6028_v48  ;;  %5462 = vmatpush3.bf16.msra.mxu1 %v6391_v45 }
 0x4e2   :  { %5439 = vmatprep.subr.bf16.mxu0 %v7293_v49  ;;  %5463 = vmatprep.subr.bf16.mxu1 %v7293_v49 }
 0x4e5   :  { %5441 = vmatpush3.bf16.msra.mxu0 %v6050_v57  ;;  %5465 = vmatpush3.bf16.msra.mxu1 %v6405_v56 }
 0x4e6   :  { %5442 = vmatprep.subr.bf16.mxu0 %v7293_v49  ;;  %5466 = vmatprep.subr.bf16.mxu1 %v7293_v49 }
 0x4e9   :  { %5444 = vmatpush3.bf16.msra.mxu0 %v6072_v2  ;;  %5468 = vmatpush3.bf16.msra.mxu1 %v6419_v6 }
 0x4ea   :  { %5445 = vmatprep.subr.bf16.mxu0 %v7293_v49  ;;  %5469 = vmatprep.subr.bf16.mxu1 %v7293_v49 }
 0x4ed   :  { %5447 = vmatpush3.bf16.msra.mxu0 %v6094_v14  ;;  %5471 = vmatpush3.bf16.msra.mxu1 %v6433_v12 }
 0x4ee   :  { %5472 = vmatprep.subr.bf16.mxu0 %v7293_v49  ;;  %5496 = vmatprep.subr.bf16.mxu1 %v7293_v49 }
 0x583   :  { %v1776_v32 = vpop.f32.mrb[16].mxu0  ;;  %v1853_v5 = vpop.f32.mrb[48].mxu1 }
 0x584   :  { %v1780_v11 = vadd.f32 %v1776_v32, %v7297_v44  ;;  %v1857_v22 = vadd.f32 %v1853_v5, %v7298_v3  ;;  %v4310_v58 = vpop.f32.mrb[17].mxu0  ;;  %v4345_v27 = vpop.f32.mrb[49].mxu1 }
 0x586   :  { %v3136_v7 = vmul.f32 -1.442695, %v1857_v22  ;;  %v3135_v62 = vmul.f32 -1.442695, %v1780_v11 }
 0x588   :  { %5811 = vpow2.f32 %v3136_v7 }
 0x589   :  { %5813 = vpow2.f32 %v3135_v62  ;;  %v7300_v62 = vld [vmem:[#allocation8_spill] sm:$0xff] }
 0x592   :  { %v5812_v15 = vpop.eup %5811 }
 0x593   :  { %v5814_v60 = vpop.eup %5813  ;;  %v1861_v31 = vadd.f32 1.0, %v5812_v15 }
 0x594   :  { %v1784_v53 = vadd.f32 1.0, %v5814_v60  ;;  %v7301_v60 = vld [vmem:[#allocation9_spill] sm:$0xff] }
 0x595   :  { %5815 = vrcp.f32 %v1861_v31 }
 0x596   :  { %5817 = vrcp.f32 %v1784_v53 }
 0x59f   :  { %v5816_v24 = vpop.eup %5815 }
 0x5a0   :  { %v5818_v17 = vpop.eup %5817  ;;  %v2013_v5 = vmul.f32 %v5816_v24, %v6877_v9 }
 0x5a3   :  { %v1930_v37 = vpop.f32.mrb[18].mxu0  ;;  %v2002_v42 = vpop.f32.mrb[50].mxu1 }
 0x5a4   :  { %v1934_v41 = vadd.f32 %v1930_v37, %v6601_v52  ;;  %v2006_v28 = vadd.f32 %v2002_v42, %v7299_v38  ;;  %v4380_v61 = vpop.f32.mrb[19].mxu0  ;;  %v4415_v1 = vpop.f32.mrb[51].mxu1 }
 0x5a6   :  { %5819 = vtanh.f32 %v1934_v41  ;;  %v3137_v13 = vmul.f32 -1.442695, %v2006_v28 }
 0x5a8   :  { %5821 = vpow2.f32 %v3137_v13 }
 0x5b0   :  { %v5820_v32 = vpop.eup %5819 }
 0x5b1   :  { %v2014_v44 = vmul.f32 %v5820_v32, %v5818_v17  ;;  %v7302_v17 = vld [vmem:[#allocation17_spill] sm:$0xff] }
 0x5b2   :  { %v5822_v11 = vpop.eup %5821 }
 0x5b3   :  { %v6963_v3 = vadd.f32 %v2014_v44, %v2013_v5  ;;  %v2010_v22 = vadd.f32 1.0, %v5822_v11  ;;  %v7303_v5 = vld [vmem:[#allocation18_spill] sm:$0xff] }
 0x5b5   :  { %5823 = vtanh.f32 %v6963_v3 }
 0x5b6   :  { %5825 = vrcp.f32 %v2010_v22 }
 0x5bf   :  { %v5824_v52 = vpop.eup %5823 }
 0x5c0   :  { %v5826_v58 = vpop.eup %5825 }
 0x5c1   :  { %v6966_v27 = vmul.f32 %v5826_v58, %v5824_v52 }
 0x5c3   :  { %4449 = vmatmul.mubr.f32.vlgmr.msra.gmra.mrb[20].mxu0 %v6966_v27  ;;  %4484 = vmatmul.mubr.f32.vlgmr.msra.gmra.mrb[52].mxu1 %v6966_v27 }
 0x5c4   :  { %5474 = vmatpush3.bf16.msra.mxu0 %v6122_v25  ;;  %5498 = vmatpush3.bf16.msra.mxu1 %v6448_v16 }
 0x5c5   :  { %5475 = vmatprep.subr.bf16.mxu0 %v7293_v49  ;;  %5499 = vmatprep.subr.bf16.mxu1 %v7293_v49 }
 0x5c6   :  { %4518 = vmatprep.mubr.msk.f32.mxu0 %vm5877_vm0, %v7294_v55  ;;  %4553 = vmatprep.mubr.msk.f32.mxu1 %vm5877_vm0, %v7294_v55 }
 0x5c8   :  { %5477 = vmatpush3.bf16.msra.mxu0 %v6151_v36  ;;  %5501 = vmatpush3.bf16.msra.mxu1 %v6461_v20 }
 0x5c9   :  { %5478 = vmatprep.subr.bf16.mxu0 %v7293_v49  ;;  %5502 = vmatprep.subr.bf16.mxu1 %v7293_v49 }
 0x5cc   :  { %5480 = vmatpush3.bf16.msra.mxu0 %v6182_v47  ;;  %5504 = vmatpush3.bf16.msra.mxu1 %v6473_v26 }
 0x5cd   :  { %5481 = vmatprep.subr.bf16.mxu0 %v7293_v49  ;;  %5505 = vmatprep.subr.bf16.mxu1 %v7293_v49 }
 0x5d0   :  { %5483 = vmatpush3.bf16.msra.mxu0 %v6211_v59  ;;  %5507 = vmatpush3.bf16.msra.mxu1 %v6483_v29 }
 0x5d1   :  { %5484 = vmatprep.subr.bf16.mxu0 %v7293_v49  ;;  %5508 = vmatprep.subr.bf16.mxu1 %v7293_v49 }
 0x5d4   :  { %5486 = vmatpush3.bf16.msra.mxu0 %v6240_v8  ;;  %5510 = vmatpush3.bf16.msra.mxu1 %v6493_v33 }
 0x5d5   :  { %5487 = vmatprep.subr.bf16.mxu0 %v7293_v49  ;;  %5511 = vmatprep.subr.bf16.mxu1 %v7293_v49 }
 0x5d8   :  { %5489 = vmatpush3.bf16.msra.mxu0 %v6269_v21  ;;  %5513 = vmatpush3.bf16.msra.mxu1 %v6503_v40 }
 0x5d9   :  { %5490 = vmatprep.subr.bf16.mxu0 %v7293_v49  ;;  %5514 = vmatprep.subr.bf16.mxu1 %v7293_v49 }
 0x5dc   :  { %5492 = vmatpush3.bf16.msra.mxu0 %v6298_v35  ;;  %5516 = vmatpush3.bf16.msra.mxu1 %v6513_v43 }
 0x5dd   :  { %5493 = vmatprep.subr.bf16.mxu0 %v7293_v49  ;;  %5517 = vmatprep.subr.bf16.mxu1 %v7293_v49 }
 0x5e0   :  { %5495 = vmatpush3.bf16.msra.mxu0 %v6321_v46  ;;  %5519 = vmatpush3.bf16.msra.mxu1 %v6523_v50 }
 0x5e1   :  { %5520 = vmatprep.subr.bf16.mxu0 %v7293_v49  ;;  %5544 = vmatprep.subr.bf16.mxu1 %v7293_v49 }
 0x5e3   :  { %4519 = vmatmul.mubr.f32.vlgmr.msra.gmra.mrb[22].mxu0 %v6966_v27  ;;  %4554 = vmatmul.mubr.f32.vlgmr.msra.gmra.mrb[54].mxu1 %v6966_v27 }
 0x5e4   :  { %5522 = vmatpush3.bf16.msra.mxu0 %v5935_v10  ;;  %5546 = vmatpush3.bf16.msra.mxu1 %v6332_v51 }
 0x5e5   :  { %5523 = vmatprep.subr.bf16.mxu0 %v7293_v49  ;;  %5547 = vmatprep.subr.bf16.mxu1 %v7293_v49 }
 0x5e6   :  { %4588 = vmatprep.mubr.msk.f32.mxu0 %vm5877_vm0, %v7294_v55  ;;  %4623 = vmatprep.mubr.msk.f32.mxu1 %vm5877_vm0, %v7294_v55 }
 0x5e8   :  { %5525 = vmatpush3.bf16.msra.mxu0 %v5956_v19  ;;  %5549 = vmatpush3.bf16.msra.mxu1 %v6346_v54 }
 0x5e9   :  { %5526 = vmatprep.subr.bf16.mxu0 %v7293_v49  ;;  %5550 = vmatprep.subr.bf16.mxu1 %v7293_v49 }
 0x5ec   :  { %5528 = vmatpush3.bf16.msra.mxu0 %v5984_v30  ;;  %5552 = vmatpush3.bf16.msra.mxu1 %v6363_v23 }
 0x5ed   :  { %5529 = vmatprep.subr.bf16.mxu0 %v7293_v49  ;;  %5553 = vmatprep.subr.bf16.mxu1 %v7293_v49 }
 0x5f0   :  { %5531 = vmatpush3.bf16.msra.mxu0 %v6006_v39  ;;  %5555 = vmatpush3.bf16.msra.mxu1 %v6377_v34 }
 0x5f1   :  { %5532 = vmatprep.subr.bf16.mxu0 %v7293_v49  ;;  %5556 = vmatprep.subr.bf16.mxu1 %v7293_v49 }
 0x5f4   :  { %5534 = vmatpush3.bf16.msra.mxu0 %v6028_v48  ;;  %5558 = vmatpush3.bf16.msra.mxu1 %v6391_v45 }
 0x5f5   :  { %5535 = vmatprep.subr.bf16.mxu0 %v7293_v49  ;;  %5559 = vmatprep.subr.bf16.mxu1 %v7293_v49 }
 0x5f8   :  { %5537 = vmatpush3.bf16.msra.mxu0 %v6050_v57  ;;  %5561 = vmatpush3.bf16.msra.mxu1 %v6405_v56 }
 0x5f9   :  { %5538 = vmatprep.subr.bf16.mxu0 %v7293_v49  ;;  %5562 = vmatprep.subr.bf16.mxu1 %v7293_v49 }
 0x5fc   :  { %5540 = vmatpush3.bf16.msra.mxu0 %v6072_v2  ;;  %5564 = vmatpush3.bf16.msra.mxu1 %v6419_v6 }
 0x5fd   :  { %5541 = vmatprep.subr.bf16.mxu0 %v7293_v49  ;;  %5565 = vmatprep.subr.bf16.mxu1 %v7293_v49 }
 0x600   :  { %5543 = vmatpush3.bf16.msra.mxu0 %v6094_v14  ;;  %5567 = vmatpush3.bf16.msra.mxu1 %v6433_v12 }
 0x601   :  { %5568 = vmatprep.subr.bf16.mxu0 %v7293_v49  ;;  %5592 = vmatprep.subr.bf16.mxu1 %v7293_v49 }
 0x696   :  { %v2091_v9 = vpop.f32.mrb[20].mxu0  ;;  %v2168_v7 = vpop.f32.mrb[52].mxu1 }
 0x697   :  { %v2095_v15 = vadd.f32 %v2091_v9, %v7300_v62  ;;  %v2172_v31 = vadd.f32 %v2168_v7, %v7301_v60  ;;  %v4450_v53 = vpop.f32.mrb[21].mxu0  ;;  %v4485_v37 = vpop.f32.mrb[53].mxu1 }
 0x699   :  { %v3139_v42 = vmul.f32 -1.442695, %v2172_v31  ;;  %v3138_v41 = vmul.f32 -1.442695, %v2095_v15 }
 0x69b   :  { %5827 = vpow2.f32 %v3139_v42 }
 0x69c   :  { %5829 = vpow2.f32 %v3138_v41 }
 0x6a5   :  { %v5828_v38 = vpop.eup %5827 }
 0x6a6   :  { %v5830_v28 = vpop.eup %5829  ;;  %v2176_v61 = vadd.f32 1.0, %v5828_v38 }
 0x6a7   :  { %v2099_v1 = vadd.f32 1.0, %v5830_v28  ;;  %v7307_v28 = vld [vmem:[#allocation20_spill] sm:$0xff] }
 0x6a8   :  { %5831 = vrcp.f32 %v2176_v61 }
 0x6a9   :  { %5833 = vrcp.f32 %v2099_v1 }
 0x6b2   :  { %v5832_v58 = vpop.eup %5831 }
 0x6b3   :  { %v5834_v9 = vpop.eup %5833  ;;  %v2328_v62 = vmul.f32 %v5832_v58, %v6963_v3  ;;  %v7306_v3 = vld [vmem:[#allocation19_spill] sm:$0xff] }
 0x6b6   :  { %v2245_v13 = vpop.f32.mrb[22].mxu0  ;;  %v2317_v24 = vpop.f32.mrb[54].mxu1 }
 0x6b7   :  { %v2249_v32 = vadd.f32 %v2245_v13, %v7302_v17  ;;  %v2321_v44 = vadd.f32 %v2317_v24, %v7303_v5  ;;  %v4520_v11 = vpop.f32.mrb[23].mxu0  ;;  %v4555_v22 = vpop.f32.mrb[55].mxu1 }
 0x6b9   :  { %5835 = vtanh.f32 %v2249_v32  ;;  %v3140_v52 = vmul.f32 -1.442695, %v2321_v44 }
 0x6bb   :  { %5837 = vpow2.f32 %v3140_v52 }
 0x6c3   :  { %v5836_v7 = vpop.eup %5835 }
 0x6c4   :  { %v2329_v15 = vmul.f32 %v5836_v7, %v5834_v9 }
 0x6c5   :  { %v5838_v60 = vpop.eup %5837 }
 0x6c6   :  { %v7049_v31 = vadd.f32 %v2329_v15, %v2328_v62  ;;  %v2325_v53 = vadd.f32 1.0, %v5838_v60  ;;  %v2995_v15 = vld [vmem:[%s7269_s4 + $0x60] sm:$0xff]  ;;  %v2996_v60 = vld [vmem:[%s7269_s4 + $0x68] sm:$0xff] }
 0x6c8   :  { %5839 = vtanh.f32 %v7049_v31 }
 0x6c9   :  { %5841 = vrcp.f32 %v2325_v53  ;;  %v2997_v53 = vld [vmem:[%s7269_s4 + $0x70] sm:$0xff] }
 0x6d2   :  { %v5840_v37 = vpop.eup %5839 }
 0x6d3   :  { %v5842_v42 = vpop.eup %5841 }
 0x6d4   :  { %v7052_v41 = vmul.f32 %v5842_v42, %v5840_v37  ;;  %v2998_v37 = vld [vmem:[%s7269_s4 + $0x78] sm:$0xff] }
 0x6d5   :  { %v5740_v42 = vpack.c.bf16 %v2998_v37, %v2997_v53 }
 0x6d6   :  { %4589 = vmatmul.mubr.f32.vlgmr.msra.gmra.mrb[24].mxu0 %v7052_v41  ;;  %4624 = vmatmul.mubr.f32.vlgmr.msra.gmra.mrb[56].mxu1 %v7052_v41 }
 0x6d7   :  { %5570 = vmatpush3.bf16.msra.mxu0 %v6122_v25  ;;  %5594 = vmatpush3.bf16.msra.mxu1 %v6448_v16 }
 0x6d8   :  { %5571 = vmatprep.subr.bf16.mxu0 %v7293_v49  ;;  %5595 = vmatprep.subr.bf16.mxu1 %v7293_v49 }
 0x6d9   :  { %4658 = vmatprep.mubr.msk.f32.mxu0 %vm5877_vm0, %v7294_v55  ;;  %4693 = vmatprep.mubr.msk.f32.mxu1 %vm5877_vm0, %v7294_v55 }
 0x6db   :  { %5573 = vmatpush3.bf16.msra.mxu0 %v6151_v36  ;;  %5597 = vmatpush3.bf16.msra.mxu1 %v6461_v20 }
 0x6dc   :  { %5574 = vmatprep.subr.bf16.mxu0 %v7293_v49  ;;  %5598 = vmatprep.subr.bf16.mxu1 %v7293_v49 }
 0x6df   :  { %5576 = vmatpush3.bf16.msra.mxu0 %v6182_v47  ;;  %5600 = vmatpush3.bf16.msra.mxu1 %v6473_v26 }
 0x6e0   :  { %5577 = vmatprep.subr.bf16.mxu0 %v7293_v49  ;;  %5601 = vmatprep.subr.bf16.mxu1 %v7293_v49 }
 0x6e3   :  { %5579 = vmatpush3.bf16.msra.mxu0 %v6211_v59  ;;  %5603 = vmatpush3.bf16.msra.mxu1 %v6483_v29 }
 0x6e4   :  { %5580 = vmatprep.subr.bf16.mxu0 %v7293_v49  ;;  %5604 = vmatprep.subr.bf16.mxu1 %v7293_v49 }
 0x6e7   :  { %5582 = vmatpush3.bf16.msra.mxu0 %v6240_v8  ;;  %5606 = vmatpush3.bf16.msra.mxu1 %v6493_v33 }
 0x6e8   :  { %5583 = vmatprep.subr.bf16.mxu0 %v7293_v49  ;;  %5607 = vmatprep.subr.bf16.mxu1 %v7293_v49 }
 0x6eb   :  { %5585 = vmatpush3.bf16.msra.mxu0 %v6269_v21  ;;  %5609 = vmatpush3.bf16.msra.mxu1 %v6503_v40 }
 0x6ec   :  { %5586 = vmatprep.subr.bf16.mxu0 %v7293_v49  ;;  %5610 = vmatprep.subr.bf16.mxu1 %v7293_v49 }
 0x6ef   :  { %5588 = vmatpush3.bf16.msra.mxu0 %v6298_v35  ;;  %5612 = vmatpush3.bf16.msra.mxu1 %v6513_v43 }
 0x6f0   :  { %5589 = vmatprep.subr.bf16.mxu0 %v7293_v49  ;;  %5613 = vmatprep.subr.bf16.mxu1 %v7293_v49 }
 0x6f3   :  { %5591 = vmatpush3.bf16.msra.mxu0 %v6321_v46  ;;  %5615 = vmatpush3.bf16.msra.mxu1 %v6523_v50 }
 0x6f4   :  { %5616 = vmatprep.subr.bf16.mxu0 %v7293_v49  ;;  %5640 = vmatprep.subr.bf16.mxu1 %v7293_v49 }
 0x6f6   :  { %4659 = vmatmul.mubr.f32.vlgmr.msra.gmra.mrb[26].mxu0 %v7052_v41  ;;  %4694 = vmatmul.mubr.f32.vlgmr.msra.gmra.mrb[58].mxu1 %v7052_v41 }
 0x6f7   :  { %5618 = vmatpush3.bf16.msra.mxu0 %v5935_v10  ;;  %5642 = vmatpush3.bf16.msra.mxu1 %v6332_v51 }
 0x6f8   :  { %5619 = vmatprep.subr.bf16.mxu0 %v7293_v49  ;;  %5643 = vmatprep.subr.bf16.mxu1 %v7293_v49 }
 0x6f9   :  { %4728 = vmatprep.mubr.msk.f32.mxu0 %vm5877_vm0, %v7294_v55  ;;  %4763 = vmatprep.mubr.msk.f32.mxu1 %vm5877_vm0, %v7294_v55 }
 0x6fb   :  { %5621 = vmatpush3.bf16.msra.mxu0 %v5956_v19  ;;  %5645 = vmatpush3.bf16.msra.mxu1 %v6346_v54 }
 0x6fc   :  { %5622 = vmatprep.subr.bf16.mxu0 %v7293_v49  ;;  %5646 = vmatprep.subr.bf16.mxu1 %v7293_v49 }
 0x6ff   :  { %5624 = vmatpush3.bf16.msra.mxu0 %v5984_v30  ;;  %5648 = vmatpush3.bf16.msra.mxu1 %v6363_v23  ;;  %v7304_v30 = vld [vmem:[#allocation10_spill] sm:$0xff] }
 0x700   :  { %5625 = vmatprep.subr.bf16.mxu0 %v7293_v49  ;;  %5649 = vmatprep.subr.bf16.mxu1 %v7293_v49 }
 0x703   :  { %5627 = vmatpush3.bf16.msra.mxu0 %v6006_v39  ;;  %5651 = vmatpush3.bf16.msra.mxu1 %v6377_v34 }
 0x704   :  { %5628 = vmatprep.subr.bf16.mxu0 %v7293_v49  ;;  %5652 = vmatprep.subr.bf16.mxu1 %v7293_v49 }
 0x707   :  { %5630 = vmatpush3.bf16.msra.mxu0 %v6028_v48  ;;  %5654 = vmatpush3.bf16.msra.mxu1 %v6391_v45  ;;  %v7305_v48 = vld [vmem:[#allocation11_spill] sm:$0xff] }
 0x708   :  { %5631 = vmatprep.subr.bf16.mxu0 %v7293_v49  ;;  %5655 = vmatprep.subr.bf16.mxu1 %v7293_v49 }
 0x70b   :  { %5633 = vmatpush3.bf16.msra.mxu0 %v6050_v57  ;;  %5657 = vmatpush3.bf16.msra.mxu1 %v6405_v56 }
 0x70c   :  { %5634 = vmatprep.subr.bf16.mxu0 %v7293_v49  ;;  %5658 = vmatprep.subr.bf16.mxu1 %v7293_v49 }
 0x70f   :  { %5636 = vmatpush3.bf16.msra.mxu0 %v6072_v2  ;;  %5660 = vmatpush3.bf16.msra.mxu1 %v6419_v6 }
 0x710   :  { %5637 = vmatprep.subr.bf16.mxu0 %v7293_v49  ;;  %5661 = vmatprep.subr.bf16.mxu1 %v7293_v49 }
 0x713   :  { %5639 = vmatpush3.bf16.msra.mxu0 %v6094_v14  ;;  %5663 = vmatpush3.bf16.msra.mxu1 %v6433_v12 }
 0x714   :  { %5664 = vmatprep.subr.bf16.mxu0 %v7293_v49  ;;  %5688 = vmatprep.subr.bf16.mxu1 %v7293_v49 }
 0x7a9   :  { %v2406_v10 = vpop.f32.mrb[24].mxu0  ;;  %v2483_v19 = vpop.f32.mrb[56].mxu1 }
 0x7aa   :  { %v2410_v39 = vadd.f32 %v2406_v10, %v7304_v30  ;;  %v2487_v57 = vadd.f32 %v2483_v19, %v7305_v48  ;;  %v4590_v2 = vpop.f32.mrb[25].mxu0  ;;  %v4625_v51 = vpop.f32.mrb[57].mxu1  ;;  %v2976_v10 = vmax.f32 %v6708_v18, 0.0  ;;  %v2977_v19 = vmax.f32 %v6794_v4, 0.0 }
 0x7ab   :  { %v2978_v30 = vmax.f32 %v6880_v63, 0.0  ;;  %v2980_v48 = vmax.f32 %v7052_v41, 0.0 }
 0x7ac   :  { %v3142_v54 = vmul.f32 -1.442695, %v2487_v57  ;;  %v3141_v23 = vmul.f32 -1.442695, %v2410_v39  ;;  %v2979_v39 = vmax.f32 %v6966_v27, 0.0 }
 0x7ae   :  { %5843 = vpow2.f32 %v3142_v54  ;;  %v7308_v54 = vld [vmem:[#allocation12_spill] sm:$0xff] }
 0x7af   :  { %5845 = vpow2.f32 %v3141_v23  ;;  %v7309_v23 = vld [vmem:[#allocation13_spill] sm:$0xff] }
 0x7b8   :  { %v5844_v34 = vpop.eup %5843 }
 0x7b9   :  { %v5846_v14 = vpop.eup %5845  ;;  %v2491_v45 = vadd.f32 1.0, %v5844_v34 }
 0x7ba   :  { %v2414_v56 = vadd.f32 1.0, %v5846_v14 }
 0x7bb   :  { %5847 = vrcp.f32 %v2491_v45 }
 0x7bc   :  { %5849 = vrcp.f32 %v2414_v56 }
 0x7c5   :  { %v5848_v17 = vpop.eup %5847 }
 0x7c6   :  { %v5850_v32 = vpop.eup %5849  ;;  %v2643_v44 = vmul.f32 %v5848_v17, %v7049_v31  ;;  %v5736_v31 = vpack.c.bf16 %v2996_v60, %v2995_v15 }
 0x7c9   :  { %v2560_v6 = vpop.f32.mrb[26].mxu0  ;;  %v2632_v12 = vpop.f32.mrb[58].mxu1 }
 0x7ca   :  { %v2564_v38 = vadd.f32 %v2560_v6, %v7306_v3  ;;  %v2636_v61 = vadd.f32 %v2632_v12, %v7307_v28  ;;  %v4660_v1 = vpop.f32.mrb[27].mxu0  ;;  %v4695_v13 = vpop.f32.mrb[59].mxu1 }
 0x7cc   :  { %5851 = vtanh.f32 %v2564_v38  ;;  %v3143_v24 = vmul.f32 -1.442695, %v2636_v61  ;;  %v7310_v38 = vld [vmem:[#allocation21_spill] sm:$0xff]  ;;  %v7311_v61 = vld [vmem:[#allocation22_spill] sm:$0xff] }
 0x7ce   :  { %5853 = vpow2.f32 %v3143_v24 }
 0x7d6   :  { %v5852_v5 = vpop.eup %5851 }
 0x7d7   :  { %v2644_v11 = vmul.f32 %v5852_v5, %v5850_v32 }
 0x7d8   :  { %v5854_v22 = vpop.eup %5853 }
 0x7d9   :  { %v7135_v52 = vadd.f32 %v2644_v11, %v2643_v44  ;;  %v2640_v58 = vadd.f32 1.0, %v5854_v22 }
 0x7db   :  { %5855 = vtanh.f32 %v7135_v52 }
 0x7dc   :  { %5857 = vrcp.f32 %v2640_v58 }
 0x7e5   :  { %v5856_v9 = vpop.eup %5855 }
 0x7e6   :  { %v5858_v7 = vpop.eup %5857 }
 0x7e7   :  { %v7138_v62 = vmul.f32 %v5858_v7, %v5856_v9 }
 0x7e9   :  { %4729 = vmatmul.mubr.f32.vlgmr.msra.gmra.mrb[28].mxu0 %v7138_v62  ;;  %4764 = vmatmul.mubr.f32.vlgmr.msra.gmra.mrb[60].mxu1 %v7138_v62  ;;  %v2981_v57 = vmax.f32 %v7138_v62, 0.0 }
 0x7ea   :  { %5666 = vmatpush3.bf16.msra.mxu0 %v6122_v25  ;;  %5690 = vmatpush3.bf16.msra.mxu1 %v6448_v16  ;;  %v2983_v25 = vld [vmem:[%s7269_s4] sm:$0xff] }
 0x7eb   :  { %5667 = vmatprep.subr.bf16.mxu0 %v7293_v49  ;;  %5691 = vmatprep.subr.bf16.mxu1 %v7293_v49  ;;  %v2987_v16 = vld [vmem:[%s7269_s4 + $0x20] sm:$0xff] }
 0x7ec   :  { %4798 = vmatprep.mubr.msk.f32.mxu0 %vm5877_vm0, %v7294_v55  ;;  %4833 = vmatprep.mubr.msk.f32.mxu1 %vm5877_vm0, %v7294_v55 }
 0x7ee   :  { %5669 = vmatpush3.bf16.msra.mxu0 %v6151_v36  ;;  %5693 = vmatpush3.bf16.msra.mxu1 %v6461_v20  ;;  %v2984_v36 = vld [vmem:[%s7269_s4 + $0x8] sm:$0xff] }
 0x7ef   :  { %5670 = vmatprep.subr.bf16.mxu0 %v7293_v49  ;;  %5694 = vmatprep.subr.bf16.mxu1 %v7293_v49  ;;  %v2988_v20 = vld [vmem:[%s7269_s4 + $0x28] sm:$0xff] }
 0x7f2   :  { %5672 = vmatpush3.bf16.msra.mxu0 %v6182_v47  ;;  %5696 = vmatpush3.bf16.msra.mxu1 %v6473_v26  ;;  %v5712_v47 = vpack.c.bf16 %v2984_v36, %v2983_v25  ;;  %v2989_v26 = vld [vmem:[%s7269_s4 + $0x30] sm:$0xff]  ;;  %v3147_v36 = vld [vmem:[%s7270_s5] ss:$0 sm:$0xff] }
 0x7f3   :  { %5673 = vmatprep.subr.bf16.mxu0 %v7293_v49  ;;  %5697 = vmatprep.subr.bf16.mxu1 %v7293_v49 }
 0x7f6   :  { %5675 = vmatpush3.bf16.msra.mxu0 %v6211_v59  ;;  %5699 = vmatpush3.bf16.msra.mxu1 %v6483_v29  ;;  %v2985_v59 = vld [vmem:[%s7269_s4 + $0x10] sm:$0xff]  ;;  %v2990_v29 = vld [vmem:[%s7269_s4 + $0x38] sm:$0xff] }
 0x7f7   :  { %5676 = vmatprep.subr.bf16.mxu0 %v7293_v49  ;;  %5700 = vmatprep.subr.bf16.mxu1 %v7293_v49 }
 0x7fa   :  { %5678 = vmatpush3.bf16.msra.mxu0 %v6240_v8  ;;  %5702 = vmatpush3.bf16.msra.mxu1 %v6493_v33  ;;  %v2986_v8 = vld [vmem:[%s7269_s4 + $0x18] sm:$0xff]  ;;  %v5724_v33 = vpack.c.bf16 %v2990_v29, %v2989_v26 }
 0x7fb   :  { %5679 = vmatprep.subr.bf16.mxu0 %v7293_v49  ;;  %5703 = vmatprep.subr.bf16.mxu1 %v7293_v49 }
 0x7fe   :  { %5681 = vmatpush3.bf16.msra.mxu0 %v6269_v21  ;;  %5705 = vmatpush3.bf16.msra.mxu1 %v6503_v40  ;;  %v5716_v21 = vpack.c.bf16 %v2986_v8, %v2985_v59  ;;  %v2991_v40 = vld [vmem:[%s7269_s4 + $0x40] sm:$0xff] }
 0x7ff   :  { %5682 = vmatprep.subr.bf16.mxu0 %v7293_v49  ;;  %5706 = vmatprep.subr.bf16.mxu1 %v7293_v49 }
 0x802   :  { %5684 = vmatpush3.bf16.msra.mxu0 %v6298_v35  ;;  %5708 = vmatpush3.bf16.msra.mxu1 %v6513_v43  ;;  %v2975_v35 = vmax.f32 %v6622_v0, 0.0  ;;  %v2992_v43 = vld [vmem:[%s7269_s4 + $0x48] sm:$0xff]  ;;  %v2993_v0 = vld [vmem:[%s7269_s4 + $0x50] sm:$0xff] }
 0x803   :  { %5685 = vmatprep.subr.bf16.mxu0 %v7293_v49  ;;  %5709 = vmatprep.subr.bf16.mxu1 %v7293_v49  ;;  %v2994_v49 = vld [vmem:[%s7269_s4 + $0x58] sm:$0xff] }
 0x804   :  { %v5732_v55 = vpack.c.bf16 %v2994_v49, %v2993_v0 }
 0x806   :  { %5687 = vmatpush3.bf16.msra.mxu0 %v6321_v46  ;;  %5711 = vmatpush3.bf16.msra.mxu1 %v6523_v50  ;;  %v5720_v46 = vpack.c.bf16 %v2988_v20, %v2987_v16  ;;  %v5728_v50 = vpack.c.bf16 %v2992_v43, %v2991_v40 }
 0x807   :  { %5713 = vmatprep.subr.bf16.mxu0 %v5712_v47 }
 0x809   :  { %4799 = vmatmul.mubr.f32.vlgmr.msra.gmra.mrb[30].mxu0 %v7138_v62  ;;  %4834 = vmatmul.mubr.f32.vlgmr.msra.gmra.mrb[62].mxu1 %v7138_v62 }
 0x80a   :  { %5715 = vmatpush3.bf16.msra.mxu0 %v5712_v47  ;;  %4868 = vmatprep.mubr.f32.mxu0 %v2975_v35 }
 0x80b   :  { %5717 = vmatprep.subr.bf16.mxu0 %v5716_v21 }
 0x80e   :  { %5719 = vmatpush3.bf16.msra.mxu0 %v5716_v21 }
 0x80f   :  { %5721 = vmatprep.subr.bf16.mxu0 %v5720_v46 }
 0x812   :  { %5723 = vmatpush3.bf16.msra.mxu0 %v5720_v46 }
 0x813   :  { %5725 = vmatprep.subr.bf16.mxu0 %v5724_v33 }
 0x816   :  { %5727 = vmatpush3.bf16.msra.mxu0 %v5724_v33 }
 0x817   :  { %5729 = vmatprep.subr.bf16.mxu0 %v5728_v50 }
 0x81a   :  { %5731 = vmatpush3.bf16.msra.mxu0 %v5728_v50 }
 0x81b   :  { %5733 = vmatprep.subr.bf16.mxu0 %v5732_v55 }
 0x81e   :  { %5735 = vmatpush3.bf16.msra.mxu0 %v5732_v55 }
 0x81f   :  { %5737 = vmatprep.subr.bf16.mxu0 %v5736_v31 }
 0x822   :  { %5739 = vmatpush3.bf16.msra.mxu0 %v5736_v31 }
 0x823   :  { %5741 = vmatprep.subr.bf16.mxu0 %v5740_v42 }
 0x826   :  { %5743 = vmatpush3.bf16.msra.mxu0 %v5740_v42 }
 0x829   :  { %4869 = vmatmul.mubr.f32.vlgmr.msra.gmra.mrb[32].mxu0 %v2976_v10 }
 0x82a   :  { %4871 = vmatprep.mubr.f32.mxu0 %v2977_v19 }
 0x82d   :  { %4872 = vmatmul.mubr.f32.gmra.mrb[34].mxu0 %v2978_v30 }
 0x82e   :  { %4874 = vmatprep.mubr.f32.mxu0 %v2979_v39 }
 0x831   :  { %4875 = vmatmul.mubr.f32.gmra.mrb[36].mxu0 %v2980_v48 }
 0x832   :  { %4877 = vmatprep.mubr.f32.mxu0 %v2981_v57 }
 0x8bc   :  { %v2721_v2 = vpop.f32.mrb[28].mxu0  ;;  %v2798_v51 = vpop.f32.mrb[60].mxu1 }
 0x8bd   :  { %v2725_v18 = vadd.f32 %v2721_v2, %v7308_v54  ;;  %v2802_v4 = vadd.f32 %v2798_v51, %v7309_v23  ;;  %v4730_v34 = vpop.f32.mrb[29].mxu0  ;;  %v4765_v14 = vpop.f32.mrb[61].mxu1 }
 0x8bf   :  { %v3145_v45 = vmul.f32 -1.442695, %v2802_v4  ;;  %v3144_v63 = vmul.f32 -1.442695, %v2725_v18 }
 0x8c1   :  { %5859 = vpow2.f32 %v3145_v45 }
 0x8c2   :  { %5861 = vpow2.f32 %v3144_v63 }
 0x8cb   :  { %v5860_v27 = vpop.eup %5859 }
 0x8cc   :  { %v5862_v56 = vpop.eup %5861  ;;  %v2806_v6 = vadd.f32 1.0, %v5860_v27 }
 0x8cd   :  { %v2729_v41 = vadd.f32 1.0, %v5862_v56 }
 0x8ce   :  { %5863 = vrcp.f32 %v2806_v6 }
 0x8cf   :  { %5865 = vrcp.f32 %v2729_v41 }
 0x8d8   :  { %v5864_v32 = vpop.eup %5863 }
 0x8d9   :  { %v5866_v5 = vpop.eup %5865  ;;  %v2958_v11 = vmul.f32 %v5864_v32, %v7135_v52 }
 0x8dc   :  { %v2875_v12 = vpop.f32.mrb[30].mxu0  ;;  %v2947_v3 = vpop.f32.mrb[62].mxu1 }
 0x8dd   :  { %v2879_v28 = vadd.f32 %v2875_v12, %v7310_v38  ;;  %v2951_v1 = vadd.f32 %v2947_v3, %v7311_v61  ;;  %v4800_v13 = vpop.f32.mrb[31].mxu0  ;;  %v4835_v24 = vpop.f32.mrb[63].mxu1 }
 0x8df   :  { %5867 = vtanh.f32 %v2879_v28  ;;  %v3146_v17 = vmul.f32 -1.442695, %v2951_v1 }
 0x8e1   :  { %5869 = vpow2.f32 %v3146_v17 }
 0x8e9   :  { %v5868_v44 = vpop.eup %5867 }
 0x8ea   :  { %v2959_v22 = vmul.f32 %v5868_v44, %v5866_v5 }
 0x8eb   :  { %v5870_v58 = vpop.eup %5869 }
 0x8ec   :  { %v2960_v9 = vadd.f32 %v2959_v22, %v2958_v11  ;;  %v2955_v7 = vadd.f32 1.0, %v5870_v58 }
 0x8ee   :  { %5871 = vtanh.f32 %v2960_v9 }
 0x8ef   :  { %5873 = vrcp.f32 %v2955_v7 }
 0x8f8   :  { %v5872_v62 = vpop.eup %5871 }
 0x8f9   :  { %v5874_v25 = vpop.eup %5873 }
 0x8fa   :  { %v2962_v47 = vmul.f32 %v5874_v25, %v5872_v62 }
 0x8fc   :  { %v4870_v59 = vpop.f32.mrb[32].mxu0  ;;  %v2982_v8 = vmax.f32 %v2962_v47, 0.0 }
 0x8fd   :  { %v3078_v21 = vadd.f32 %v4870_v59, %v3147_v36  ;;  %v3072_v35 = vpop.f32.mrb[33].mxu0 }
 0x8fe   :  { %v3073_v16 = vadd.f32 %v3147_v36, %v3072_v35  ;;  %4878 = vmatmul.mubr.f32.gmra.mrb[38].mxu0 %v2982_v8 }
 0x8ff   :  { %3112 = vst [vmem:[%s7271_s6 + $0x8] sm:$0xff] %v3078_v21 }
 0x900   :  { %3111 = vst [vmem:[%s7271_s6] sm:$0xff] %v3073_v16  ;;  %v4873_v52 = vpop.f32.mrb[34].mxu0 }
 0x901   :  { %v3088_v20 = vadd.f32 %v4873_v52, %v3147_v36  ;;  %v3082_v46 = vpop.f32.mrb[35].mxu0 }
 0x902   :  { %v3083_v26 = vadd.f32 %v3147_v36, %v3082_v46 }
 0x903   :  { %3114 = vst [vmem:[%s7271_s6 + $0x18] sm:$0xff] %v3088_v20 }
 0x904   :  { %3113 = vst [vmem:[%s7271_s6 + $0x10] sm:$0xff] %v3083_v26  ;;  %v4876_v29 = vpop.f32.mrb[36].mxu0 }
 0x905   :  { %v3098_v33 = vadd.f32 %v4876_v29, %v3147_v36  ;;  %v3092_v40 = vpop.f32.mrb[37].mxu0 }
 0x906   :  { %v3093_v43 = vadd.f32 %v3147_v36, %v3092_v40 }
 0x907   :  { %3116 = vst [vmem:[%s7271_s6 + $0x28] sm:$0xff] %v3098_v33 }
 0x908   :  { %3115 = vst [vmem:[%s7271_s6 + $0x20] sm:$0xff] %v3093_v43 }
 0x9d1   :  { %v4879_v50 = vpop.f32.mrb[38].mxu0 }
 0x9d2   :  { %v3108_v0 = vadd.f32 %v4879_v50, %v3147_v36  ;;  %v3102_v49 = vpop.f32.mrb[39].mxu0 }
 0x9d3   :  { %v3103_v55 = vadd.f32 %v3147_v36, %v3102_v49 }
 0x9d4   :  { %3118 = vst [vmem:[%s7271_s6 + $0x38] sm:$0xff] %v3108_v0 }
 0x9d5   :  { %3117 = vst [vmem:[%s7271_s6 + $0x30] sm:$0xff] %v3103_v55 }

</bundles_post_ra>
